<compile_context>
chip_gen: v5e
topology: v5e:2x2
jax: 0.10.0
libtpu: 0.0.40
codegen_flags: <defaults>
</compile_context>

<pallas_src>
import functools

import jax
import jax.numpy as jnp
from jax.experimental import pallas as pl
from jax.experimental.pallas import tpu as pltpu


def _round_up(v, m):
    return (v + m - 1) // m * m


def _doubleconv_kernel(H, TH, Wp, img_rows,
                       x_hbm, w1_ref, s1_ref, b1_ref, w2_ref, s2_ref, b2_ref,
                       cmask_ref, o_ref, xv_ref, dma_sem):
    # x_hbm    : (N*(Hp+6)*Wp, Cpi) bf16 in HBM. Spatially flattened, zero-padded
    #            (2-row/col halo + alignment slack), channel padded.
    # w*_ref   : (9, Cp_in, Cp_out) bf16. One (Cp_in, Cp_out) block per 3x3 tap.
    # s*/b*    : (1, Cp_out) f32. Folded eval-mode BatchNorm scale / shift.
    # cmask_ref: ((TH+3)*Wp, 1) f32 column mask (realizes conv2's left/right pad).
    # o_ref    : (TH*Wp, Cpo) bf16 output tile, lane-dense.
    # xv_ref   : (2, (TH+6)*Wp, Cpi) bf16 double-buffered haloed input tile.
    # dma_sem  : (2,) DMA semaphores, one per slot.
    n = pl.program_id(0)
    h = pl.program_id(1)
    n_h = pl.num_programs(1)

    rows_in = TH + 6            # fetched rows: TH + halo + flat-window slack
    rows_y = TH + 3             # conv1 output rows: TH + halo + slack
    LR = rows_in * Wp
    M1 = rows_y * Wp
    M2 = TH * Wp

    # ---------------- double-buffered halo fetch (HBM -> VMEM) ----------------
    def halo_copy(hh, slot):
        hh = jnp.minimum(hh, n_h - 1)           # clamp; guarded call is dead anyway
        base = n * img_rows + hh * (TH * Wp)    # Wp % 8 == 0  =>  base % 8 == 0
        base = pl.multiple_of(base, 8)
        return pltpu.make_async_copy(
            x_hbm.at[pl.ds(base, LR)], xv_ref.at[slot], dma_sem.at[slot])

    @pl.when(h == 0)                            # prime the pipeline once per image
    def _():
        halo_copy(0, 0).start()

    @pl.when(h + 1 < n_h)                       # prefetch next tile of this image
    def _():
        halo_copy(h + 1, (h + 1) % 2).start()

    slot = h % 2
    halo_copy(h, slot).wait()
    xs = xv_ref.at[slot]                        # ((TH+6)*Wp, Cpi) view, no copy

    # ------ 3x3 conv = 9 accumulated MXU matmuls over flat shifted windows ------
    def conv9(load, w_ref, m):
        acc = None
        for kh in range(3):
            for kw in range(3):
                a = load(kh * Wp + kw, m)
                part = jnp.dot(a, w_ref[kh * 3 + kw],
                               preferred_element_type=jnp.float32)
                acc = part if acc is None else acc + part
        return acc

    # conv1 + folded BN + ReLU on the halo-extended tile (f32 accumulation).
    y = conv9(lambda off, m: xs[pl.ds(off, m), :], w1_ref, M1)
    y = jnp.maximum(y * s1_ref[...] + b1_ref[...], 0.0)

    # Zero the positions that realize conv2's zero padding: left/right columns
    # (precomputed cmask) and the rows just outside the image (flat-iota compares).
    p = jax.lax.broadcasted_iota(jnp.int32, (M1, 1), 0)
    lo = (1 - h * TH) * Wp                      # global conv1 row >= 0
    hi = (H + 1 - h * TH) * Wp                  # global conv1 row <  H
    mask = jnp.where(jnp.logical_and(p >= lo, p < hi), cmask_ref[...], 0.0)
    y = (y * mask).astype(jnp.bfloat16)

    # conv2 + folded BN + ReLU; bf16 lane-dense store at full Wp width.
    z = conv9(lambda off, m: y[off:off + m, :], w2_ref, M2)
    z = jnp.maximum(z * s2_ref[...] + b2_ref[...], 0.0)
    o_ref[...] = z.astype(o_ref.dtype)


@functools.partial(jax.jit, static_argnames=("eps", "tile_h"))
def double_conv(x_nchw, w1, g1, be1, rm1, rv1, w2, g2, be2, rm2, rv2,
                eps=1e-5, tile_h=32):
    """Eval-mode DoubleConv forward. (N, Cin, H, W) f32 -> (N, Cout, H, W) f32."""
    N, Cin, H, W = x_nchw.shape
    Cout = w1.shape[0]
    Cpi = _round_up(Cin, 128)          # lane-dense conv1 K channels
    Cpo = _round_up(Cout, 128)         # lane-dense output / conv2 channels

    # H tiling: TH = ceil(H / n_tiles), no whole-image fallback. Bottom rows of
    # the last tile (if Hp > H) are computed on zero padding and sliced off.
    n_h = -(-H // min(tile_h, H))
    TH = -(-H // n_h)
    Hp = TH * n_h
    Wp = _round_up(W + 4, 8)           # 2 halo cols each side + sublane alignment

    # NCHW -> NHWC, zero-pad halo/alignment/channels, flatten spatially, bf16.
    x_nhwc = jnp.transpose(x_nchw, (0, 2, 3, 1)).astype(jnp.float32)
    x_pad = jnp.pad(x_nhwc,
                    ((0, 0), (2, Hp - H + 4), (2, Wp - W - 2), (0, Cpi - Cin)))
    x_flat = x_pad.astype(jnp.bfloat16).reshape(N * (Hp + 6) * Wp, Cpi)

    # OIHW -> (9, Cp_in, Cp_out) bf16, one weight block per tap (kh*3 + kw).
    def prep_w(w, cin, cpi):
        w_hwio = jnp.transpose(w, (2, 3, 1, 0)).astype(jnp.float32)   # (3,3,cin,Cout)
        w_hwio = jnp.pad(w_hwio, ((0, 0), (0, 0), (0, cpi - cin), (0, Cpo - Cout)))
        return w_hwio.reshape(9, cpi, Cpo).astype(jnp.bfloat16)

    w1f = prep_w(w1, Cin, Cpi)
    w2f = prep_w(w2, Cout, Cpo)

    # Fold eval-mode BatchNorm into per-channel scale / shift (padded channels stay 0).
    def fold_bn(g, b, m, v):
        inv = g / jnp.sqrt(v + eps)
        s = jnp.pad(inv, (0, Cpo - Cout)).reshape(1, Cpo).astype(jnp.float32)
        t = jnp.pad(b - m * inv, (0, Cpo - Cout)).reshape(1, Cpo).astype(jnp.float32)
        return s, t

    s1, b1 = fold_bn(g1, be1, rm1, rv1)
    s2, b2 = fold_bn(g2, be2, rm2, rv2)

    # Static column mask: keep conv1-output columns 1..W, zero col 0 / >= W+1.
    col = jnp.arange(Wp, dtype=jnp.int32)
    cmask = jnp.tile(((col >= 1) & (col <= W)).astype(jnp.float32), TH + 3)
    cmask = cmask.reshape((TH + 3) * Wp, 1)

    kernel = functools.partial(_doubleconv_kernel, H, TH, Wp, (Hp + 6) * Wp)
    out_flat = pl.pallas_call(
        kernel,
        out_shape=jax.ShapeDtypeStruct((N * Hp * Wp, Cpo), jnp.bfloat16),
        grid_spec=pltpu.PrefetchScalarGridSpec(
            num_scalar_prefetch=0,
            grid=(N, n_h),
            in_specs=[
                pl.BlockSpec(memory_space=pl.ANY),                      # x (HBM, manual DMA)
                pl.BlockSpec((9, Cpi, Cpo), lambda n, h: (0, 0, 0),
                             pipeline_mode=pl.Buffered(1)),             # w1 (resident)
                pl.BlockSpec((1, Cpo), lambda n, h: (0, 0)),            # s1
                pl.BlockSpec((1, Cpo), lambda n, h: (0, 0)),            # b1
                pl.BlockSpec((9, Cpo, Cpo), lambda n, h: (0, 0, 0),
                             pipeline_mode=pl.Buffered(1)),             # w2 (resident)
                pl.BlockSpec((1, Cpo), lambda n, h: (0, 0)),            # s2
                pl.BlockSpec((1, Cpo), lambda n, h: (0, 0)),            # b2
                pl.BlockSpec(((TH + 3) * Wp, 1), lambda n, h: (0, 0)),  # column mask
            ],
            out_specs=pl.BlockSpec((TH * Wp, Cpo),
                                   lambda n, h: (n * n_h + h, 0)),
            scratch_shapes=[
                pltpu.VMEM((2, (TH + 6) * Wp, Cpi), jnp.bfloat16),      # 2-slot halo tile
                pltpu.SemaphoreType.DMA((2,)),
            ],
        ),
        compiler_params=pltpu.CompilerParams(
            dimension_semantics=("parallel", "arbitrary"),
            vmem_limit_bytes=48 * 1024 * 1024,
        ),
    )(x_flat, w1f, s1, b1, w2f, s2, b2, cmask)

    # strip padding / alignment, NHWC -> NCHW, back to f32 at the module boundary.
    out = out_flat.reshape(N, Hp, Wp, Cpo)[:, :H, :W, :Cout]
    return jnp.transpose(out, (0, 3, 1, 2)).astype(jnp.float32)


def _reference(x, w1, g1, be1, rm1, rv1, w2, g2, be2, rm2, rv2, eps=1e-5):
    """Plain-JAX eval-mode DoubleConv. Conv operands (and the final output) are
    rounded through bf16 to mirror the kernel's bf16 MXU inputs / bf16 store;
    accumulation and BN/ReLU stay f32 on both sides."""
    r = lambda a: a.astype(jnp.bfloat16).astype(jnp.float32)

    def conv(t, w):
        return jax.lax.conv_general_dilated(
            t, w, window_strides=(1, 1), padding=((1, 1), (1, 1)),
            dimension_numbers=("NCHW", "OIHW", "NCHW"),
            precision=jax.lax.Precision.HIGHEST)

    def bn(t, g, b, m, v):
        shp = (1, -1, 1, 1)
        return (t - m.reshape(shp)) / jnp.sqrt(v.reshape(shp) + eps) \
            * g.reshape(shp) + b.reshape(shp)

    y = jax.nn.relu(bn(conv(r(x), r(w1)), g1, be1, rm1, rv1))
    z = jax.nn.relu(bn(conv(r(y), r(w2)), g2, be2, rm2, rv2))
    return r(z)


if __name__ == "__main__":
    key = jax.random.PRNGKey(0)
    N, Cin, Cout, H, W = 2, 4, 8, 16, 16

    ks = jax.random.split(key, 11)
    x = jax.random.normal(ks[0], (N, Cin, H, W), jnp.float32)

    # Conv2d weights (OIHW), bias=False
    w1 = jax.random.normal(ks[1], (Cout, Cin, 3, 3), jnp.float32) * 0.2
    w2 = jax.random.normal(ks[2], (Cout, Cout, 3, 3), jnp.float32) * 0.2
    # BatchNorm2d params + running stats (deterministic, non-trivial)
    g1 = jax.random.uniform(ks[3], (Cout,), jnp.float32, 0.5, 1.5)
    be1 = jax.random.normal(ks[4], (Cout,), jnp.float32) * 0.1
    rm1 = jax.random.normal(ks[5], (Cout,), jnp.float32) * 0.1
    rv1 = jax.random.uniform(ks[6], (Cout,), jnp.float32, 0.5, 1.5)
    g2 = jax.random.uniform(ks[7], (Cout,), jnp.float32, 0.5, 1.5)
    be2 = jax.random.normal(ks[8], (Cout,), jnp.float32) * 0.1
    rm2 = jax.random.normal(ks[9], (Cout,), jnp.float32) * 0.1
    rv2 = jax.random.uniform(ks[10], (Cout,), jnp.float32, 0.5, 1.5)

    # tile_h=8 -> 2 H-tiles per image: exercises the double-buffered halo DMA path.
    out = double_conv(x, w1, g1, be1, rm1, rv1, w2, g2, be2, rm2, rv2, tile_h=8)
    out = jax.block_until_ready(out)

    ref = _reference(x, w1, g1, be1, rm1, rv1, w2, g2, be2, rm2, rv2)
    assert out.shape == (N, Cout, H, W)
    err = jnp.max(jnp.abs(out - ref))
    assert jnp.allclose(out, ref, atol=1e-2, rtol=1e-2), f"max err {err}"

    print("KERNEL_OK")
</pallas_src>

<mosaic_0001>
module attributes {stable_mosaic.version = 11 : i64} {
  func.func @_doubleconv_kernel(%arg0: i32, %arg1: i32, %arg2: memref<1056x128xbf16, #tpu.memory_space<any>>, %arg3: memref<9x128x128xbf16, #tpu.memory_space<vmem>>, %arg4: memref<1x128xf32, #tpu.memory_space<vmem>>, %arg5: memref<1x128xf32, #tpu.memory_space<vmem>>, %arg6: memref<9x128x128xbf16, #tpu.memory_space<vmem>>, %arg7: memref<1x128xf32, #tpu.memory_space<vmem>>, %arg8: memref<1x128xf32, #tpu.memory_space<vmem>>, %arg9: memref<264x1xf32, #tpu.memory_space<vmem>>, %arg10: memref<192x128xbf16, #tpu.memory_space<vmem>>, %arg11: memref<2x336x128xbf16, #tpu.memory_space<vmem>>, %arg12: memref<2x!tpu.dma_semaphore, #tpu.memory_space<semaphore_mem>>) attributes {dimension_semantics = [#tpu.dimension_semantics<parallel>, #tpu.dimension_semantics<arbitrary>], iteration_bounds = array<i64: 2, 2>, scalar_prefetch = 0 : i64, scratch_operands = 2 : i64, tpu.core_type = #tpu.core_type<tc>, window_params = [{}, {pipeline_mode = #tpu.pipeline_mode<synchronous>, transform_indices = @transform_1, window_bounds = array<i64: 9, 128, 128>}, {pipeline_mode = #tpu.pipeline_mode<synchronous>, transform_indices = @transform_2, window_bounds = array<i64: 1, 128>}, {pipeline_mode = #tpu.pipeline_mode<synchronous>, transform_indices = @transform_3, window_bounds = array<i64: 1, 128>}, {pipeline_mode = #tpu.pipeline_mode<synchronous>, transform_indices = @transform_4, window_bounds = array<i64: 9, 128, 128>}, {pipeline_mode = #tpu.pipeline_mode<synchronous>, transform_indices = @transform_5, window_bounds = array<i64: 1, 128>}, {pipeline_mode = #tpu.pipeline_mode<synchronous>, transform_indices = @transform_6, window_bounds = array<i64: 1, 128>}, {pipeline_mode = #tpu.pipeline_mode<synchronous>, transform_indices = @transform_7, window_bounds = array<i64: 264, 1>}, {transform_indices = @transform_8, window_bounds = array<i64: 192, 128>}]} {
    %c0_i32 = arith.constant 0 : i32
    %0 = arith.cmpi eq, %arg1, %c0_i32 : i32
    %1 = arith.extui %0 : i1 to i32
    %c0_i32_0 = arith.constant 0 : i32
    %2 = arith.cmpi ne, %1, %c0_i32_0 : i32
    scf.if %2 {
      %c0_i32_122 = arith.constant 0 : i32
      %c1_i32_123 = arith.constant 1 : i32
      %169 = arith.minsi %c0_i32_122, %c1_i32_123 : i32
      %c528_i32_124 = arith.constant 528 : i32
      %170 = arith.muli %arg0, %c528_i32_124 : i32
      %c192_i32_125 = arith.constant 192 : i32
      %171 = arith.muli %169, %c192_i32_125 : i32
      %172 = arith.addi %170, %171 : i32
      %173 = tpu.assume_multiple %172, 8 : i32
      %c0_i32_126 = arith.constant 0 : i32
      %c0_i32_127 = arith.constant 0 : i32
      %c0_i32_128 = arith.constant 0 : i32
      %174 = tpu.memref_slice %arg2[%173, %c0_i32_128] : memref<1056x128xbf16, #tpu.memory_space<any>> -> memref<336x128xbf16, #tpu.memory_space<any>>
      %c0_i32_129 = arith.constant 0 : i32
      %c0_i32_130 = arith.constant 0 : i32
      %175 = tpu.memref_slice %arg11[%c0_i32_126, %c0_i32_129, %c0_i32_130] : memref<2x336x128xbf16, #tpu.memory_space<vmem>> -> memref<1x336x128xbf16, #tpu.memory_space<vmem>>
      %176 = tpu.memref_squeeze %175 : memref<1x336x128xbf16, #tpu.memory_space<vmem>> -> memref<336x128xbf16, #tpu.memory_space<vmem>>
      %177 = tpu.memref_slice %arg12[%c0_i32_127] : memref<2x!tpu.dma_semaphore, #tpu.memory_space<semaphore_mem>> -> memref<1x!tpu.dma_semaphore, #tpu.memory_space<semaphore_mem>>
      %178 = tpu.memref_squeeze %177 : memref<1x!tpu.dma_semaphore, #tpu.memory_space<semaphore_mem>> -> memref<!tpu.dma_semaphore, #tpu.memory_space<semaphore_mem>>
      tpu.enqueue_dma source(%174 : memref<336x128xbf16, #tpu.memory_space<any>>) target(%176 : memref<336x128xbf16, #tpu.memory_space<vmem>>) target_semaphore(%178 : memref<!tpu.dma_semaphore, #tpu.memory_space<semaphore_mem>>)
    } else {
    }
    %c1_i32 = arith.constant 1 : i32
    %3 = arith.addi %arg1, %c1_i32 : i32
    %c2_i32 = arith.constant 2 : i32
    %4 = arith.cmpi slt, %3, %c2_i32 : i32
    %5 = arith.extui %4 : i1 to i32
    %c0_i32_1 = arith.constant 0 : i32
    %6 = arith.cmpi ne, %5, %c0_i32_1 : i32
    scf.if %6 {
      %c1_i32_122 = arith.constant 1 : i32
      %169 = arith.addi %arg1, %c1_i32_122 : i32
      %c1_i32_123 = arith.constant 1 : i32
      %170 = arith.addi %arg1, %c1_i32_123 : i32
      %c2_i32_124 = arith.constant 2 : i32
      %c0_i32_125 = arith.constant 0 : i32
      %171 = arith.cmpi eq, %c2_i32_124, %c0_i32_125 : i32
      %c1_i32_126 = arith.constant 1 : i32
      %172 = arith.select %171, %c1_i32_126, %c2_i32_124 : i32
      %173 = arith.remsi %170, %172 : i32
      %c0_i32_127 = arith.constant 0 : i32
      %174 = arith.cmpi ne, %173, %c0_i32_127 : i32
      %c0_i32_128 = arith.constant 0 : i32
      %175 = arith.cmpi slt, %173, %c0_i32_128 : i32
      %c0_i32_129 = arith.constant 0 : i32
      %176 = arith.cmpi slt, %172, %c0_i32_129 : i32
      %177 = arith.xori %175, %176 : i1
      %178 = arith.andi %177, %174 : i1
      %179 = arith.addi %173, %172 : i32
      %180 = arith.select %178, %179, %173 : i32
      %c1_i32_130 = arith.constant 1 : i32
      %181 = arith.minsi %169, %c1_i32_130 : i32
      %c528_i32_131 = arith.constant 528 : i32
      %182 = arith.muli %arg0, %c528_i32_131 : i32
      %c192_i32_132 = arith.constant 192 : i32
      %183 = arith.muli %181, %c192_i32_132 : i32
      %184 = arith.addi %182, %183 : i32
      %185 = tpu.assume_multiple %184, 8 : i32
      %c0_i32_133 = arith.constant 0 : i32
      %186 = tpu.memref_slice %arg2[%185, %c0_i32_133] : memref<1056x128xbf16, #tpu.memory_space<any>> -> memref<336x128xbf16, #tpu.memory_space<any>>
      %c0_i32_134 = arith.constant 0 : i32
      %c0_i32_135 = arith.constant 0 : i32
      %187 = tpu.memref_slice %arg11[%180, %c0_i32_134, %c0_i32_135] : memref<2x336x128xbf16, #tpu.memory_space<vmem>> -> memref<1x336x128xbf16, #tpu.memory_space<vmem>>
      %188 = tpu.memref_squeeze %187 : memref<1x336x128xbf16, #tpu.memory_space<vmem>> -> memref<336x128xbf16, #tpu.memory_space<vmem>>
      %189 = tpu.memref_slice %arg12[%180] : memref<2x!tpu.dma_semaphore, #tpu.memory_space<semaphore_mem>> -> memref<1x!tpu.dma_semaphore, #tpu.memory_space<semaphore_mem>>
      %190 = tpu.memref_squeeze %189 : memref<1x!tpu.dma_semaphore, #tpu.memory_space<semaphore_mem>> -> memref<!tpu.dma_semaphore, #tpu.memory_space<semaphore_mem>>
      tpu.enqueue_dma source(%186 : memref<336x128xbf16, #tpu.memory_space<any>>) target(%188 : memref<336x128xbf16, #tpu.memory_space<vmem>>) target_semaphore(%190 : memref<!tpu.dma_semaphore, #tpu.memory_space<semaphore_mem>>)
    } else {
    }
    %c2_i32_2 = arith.constant 2 : i32
    %c0_i32_3 = arith.constant 0 : i32
    %7 = arith.cmpi eq, %c2_i32_2, %c0_i32_3 : i32
    %c1_i32_4 = arith.constant 1 : i32
    %8 = arith.select %7, %c1_i32_4, %c2_i32_2 : i32
    %9 = arith.remsi %arg1, %8 : i32
    %c0_i32_5 = arith.constant 0 : i32
    %10 = arith.cmpi ne, %9, %c0_i32_5 : i32
    %c0_i32_6 = arith.constant 0 : i32
    %11 = arith.cmpi slt, %9, %c0_i32_6 : i32
    %c0_i32_7 = arith.constant 0 : i32
    %12 = arith.cmpi slt, %8, %c0_i32_7 : i32
    %13 = arith.xori %11, %12 : i1
    %14 = arith.andi %13, %10 : i1
    %15 = arith.addi %9, %8 : i32
    %16 = arith.select %14, %15, %9 : i32
    %c1_i32_8 = arith.constant 1 : i32
    %17 = arith.minsi %arg1, %c1_i32_8 : i32
    %c528_i32 = arith.constant 528 : i32
    %18 = arith.muli %arg0, %c528_i32 : i32
    %c192_i32 = arith.constant 192 : i32
    %19 = arith.muli %17, %c192_i32 : i32
    %20 = arith.addi %18, %19 : i32
    %21 = tpu.assume_multiple %20, 8 : i32
    %c0_i32_9 = arith.constant 0 : i32
    %22 = tpu.memref_slice %arg2[%21, %c0_i32_9] : memref<1056x128xbf16, #tpu.memory_space<any>> -> memref<336x128xbf16, #tpu.memory_space<any>>
    %c0_i32_10 = arith.constant 0 : i32
    %c0_i32_11 = arith.constant 0 : i32
    %23 = tpu.memref_slice %arg11[%16, %c0_i32_10, %c0_i32_11] : memref<2x336x128xbf16, #tpu.memory_space<vmem>> -> memref<1x336x128xbf16, #tpu.memory_space<vmem>>
    %24 = tpu.memref_squeeze %23 : memref<1x336x128xbf16, #tpu.memory_space<vmem>> -> memref<336x128xbf16, #tpu.memory_space<vmem>>
    %25 = tpu.memref_slice %arg12[%16] : memref<2x!tpu.dma_semaphore, #tpu.memory_space<semaphore_mem>> -> memref<1x!tpu.dma_semaphore, #tpu.memory_space<semaphore_mem>>
    %26 = tpu.memref_squeeze %25 : memref<1x!tpu.dma_semaphore, #tpu.memory_space<semaphore_mem>> -> memref<!tpu.dma_semaphore, #tpu.memory_space<semaphore_mem>>
    tpu.wait_dma2 semaphore(%26 : memref<!tpu.dma_semaphore, #tpu.memory_space<semaphore_mem>>) src(%22 : memref<336x128xbf16, #tpu.memory_space<any>>) dst(%24 : memref<336x128xbf16, #tpu.memory_space<vmem>>)
    %c0_i32_12 = arith.constant 0 : i32
    %c0_i32_13 = arith.constant 0 : i32
    %27 = tpu.memref_slice %arg11[%16, %c0_i32_12, %c0_i32_13] : memref<2x336x128xbf16, #tpu.memory_space<vmem>> -> memref<1x336x128xbf16, #tpu.memory_space<vmem>>
    %28 = tpu.memref_squeeze %27 : memref<1x336x128xbf16, #tpu.memory_space<vmem>> -> memref<336x128xbf16, #tpu.memory_space<vmem>>
    %c0 = arith.constant 0 : index
    %c0_14 = arith.constant 0 : index
    %29 = vector.load %28[%c0, %c0_14] : memref<336x128xbf16, #tpu.memory_space<vmem>>, vector<264x128xbf16>
    %c0_15 = arith.constant 0 : index
    %c0_16 = arith.constant 0 : index
    %c0_17 = arith.constant 0 : index
    %30 = vector.load %arg3[%c0_15, %c0_16, %c0_17] : memref<9x128x128xbf16, #tpu.memory_space<vmem>>, vector<1x128x128xbf16>
    %31 = vector.shape_cast %30 : vector<1x128x128xbf16> to vector<128x128xbf16>
    %cst = arith.constant dense<0.000000e+00> : vector<264x128xf32>
    %32 = tpu.matmul %29, %31, %cst {dimension_numbers = #tpu.dot_dimension_numbers<[1], [0], [0], [1], [0, 0, 1, 1], [], []>} : vector<264x128xbf16>, vector<128x128xbf16>, vector<264x128xf32> -> vector<264x128xf32>
    %c0_i32_18 = arith.constant 0 : i32
    %c0_i32_19 = arith.constant 0 : i32
    %33 = tpu.memref_slice %arg11[%16, %c0_i32_18, %c0_i32_19] : memref<2x336x128xbf16, #tpu.memory_space<vmem>> -> memref<1x336x128xbf16, #tpu.memory_space<vmem>>
    %34 = tpu.memref_squeeze %33 : memref<1x336x128xbf16, #tpu.memory_space<vmem>> -> memref<336x128xbf16, #tpu.memory_space<vmem>>
    %c1 = arith.constant 1 : index
    %c0_20 = arith.constant 0 : index
    %35 = vector.load %34[%c1, %c0_20] : memref<336x128xbf16, #tpu.memory_space<vmem>>, vector<264x128xbf16>
    %c1_21 = arith.constant 1 : index
    %c0_22 = arith.constant 0 : index
    %c0_23 = arith.constant 0 : index
    %36 = vector.load %arg3[%c1_21, %c0_22, %c0_23] : memref<9x128x128xbf16, #tpu.memory_space<vmem>>, vector<1x128x128xbf16>
    %37 = vector.shape_cast %36 : vector<1x128x128xbf16> to vector<128x128xbf16>
    %cst_24 = arith.constant dense<0.000000e+00> : vector<264x128xf32>
    %38 = tpu.matmul %35, %37, %cst_24 {dimension_numbers = #tpu.dot_dimension_numbers<[1], [0], [0], [1], [0, 0, 1, 1], [], []>} : vector<264x128xbf16>, vector<128x128xbf16>, vector<264x128xf32> -> vector<264x128xf32>
    %39 = arith.addf %32, %38 : vector<264x128xf32>
    %c0_i32_25 = arith.constant 0 : i32
    %c0_i32_26 = arith.constant 0 : i32
    %40 = tpu.memref_slice %arg11[%16, %c0_i32_25, %c0_i32_26] : memref<2x336x128xbf16, #tpu.memory_space<vmem>> -> memref<1x336x128xbf16, #tpu.memory_space<vmem>>
    %41 = tpu.memref_squeeze %40 : memref<1x336x128xbf16, #tpu.memory_space<vmem>> -> memref<336x128xbf16, #tpu.memory_space<vmem>>
    %c2 = arith.constant 2 : index
    %c0_27 = arith.constant 0 : index
    %42 = vector.load %41[%c2, %c0_27] : memref<336x128xbf16, #tpu.memory_space<vmem>>, vector<264x128xbf16>
    %c2_28 = arith.constant 2 : index
    %c0_29 = arith.constant 0 : index
    %c0_30 = arith.constant 0 : index
    %43 = vector.load %arg3[%c2_28, %c0_29, %c0_30] : memref<9x128x128xbf16, #tpu.memory_space<vmem>>, vector<1x128x128xbf16>
    %44 = vector.shape_cast %43 : vector<1x128x128xbf16> to vector<128x128xbf16>
    %cst_31 = arith.constant dense<0.000000e+00> : vector<264x128xf32>
    %45 = tpu.matmul %42, %44, %cst_31 {dimension_numbers = #tpu.dot_dimension_numbers<[1], [0], [0], [1], [0, 0, 1, 1], [], []>} : vector<264x128xbf16>, vector<128x128xbf16>, vector<264x128xf32> -> vector<264x128xf32>
    %46 = arith.addf %39, %45 : vector<264x128xf32>
    %c0_i32_32 = arith.constant 0 : i32
    %c0_i32_33 = arith.constant 0 : i32
    %47 = tpu.memref_slice %arg11[%16, %c0_i32_32, %c0_i32_33] : memref<2x336x128xbf16, #tpu.memory_space<vmem>> -> memref<1x336x128xbf16, #tpu.memory_space<vmem>>
    %48 = tpu.memref_squeeze %47 : memref<1x336x128xbf16, #tpu.memory_space<vmem>> -> memref<336x128xbf16, #tpu.memory_space<vmem>>
    %c24 = arith.constant 24 : index
    %c0_34 = arith.constant 0 : index
    %49 = vector.load %48[%c24, %c0_34] : memref<336x128xbf16, #tpu.memory_space<vmem>>, vector<264x128xbf16>
    %c3 = arith.constant 3 : index
    %c0_35 = arith.constant 0 : index
    %c0_36 = arith.constant 0 : index
    %50 = vector.load %arg3[%c3, %c0_35, %c0_36] : memref<9x128x128xbf16, #tpu.memory_space<vmem>>, vector<1x128x128xbf16>
    %51 = vector.shape_cast %50 : vector<1x128x128xbf16> to vector<128x128xbf16>
    %cst_37 = arith.constant dense<0.000000e+00> : vector<264x128xf32>
    %52 = tpu.matmul %49, %51, %cst_37 {dimension_numbers = #tpu.dot_dimension_numbers<[1], [0], [0], [1], [0, 0, 1, 1], [], []>} : vector<264x128xbf16>, vector<128x128xbf16>, vector<264x128xf32> -> vector<264x128xf32>
    %53 = arith.addf %46, %52 : vector<264x128xf32>
    %c0_i32_38 = arith.constant 0 : i32
    %c0_i32_39 = arith.constant 0 : i32
    %54 = tpu.memref_slice %arg11[%16, %c0_i32_38, %c0_i32_39] : memref<2x336x128xbf16, #tpu.memory_space<vmem>> -> memref<1x336x128xbf16, #tpu.memory_space<vmem>>
    %55 = tpu.memref_squeeze %54 : memref<1x336x128xbf16, #tpu.memory_space<vmem>> -> memref<336x128xbf16, #tpu.memory_space<vmem>>
    %c25 = arith.constant 25 : index
    %c0_40 = arith.constant 0 : index
    %56 = vector.load %55[%c25, %c0_40] : memref<336x128xbf16, #tpu.memory_space<vmem>>, vector<264x128xbf16>
    %c4 = arith.constant 4 : index
    %c0_41 = arith.constant 0 : index
    %c0_42 = arith.constant 0 : index
    %57 = vector.load %arg3[%c4, %c0_41, %c0_42] : memref<9x128x128xbf16, #tpu.memory_space<vmem>>, vector<1x128x128xbf16>
    %58 = vector.shape_cast %57 : vector<1x128x128xbf16> to vector<128x128xbf16>
    %cst_43 = arith.constant dense<0.000000e+00> : vector<264x128xf32>
    %59 = tpu.matmul %56, %58, %cst_43 {dimension_numbers = #tpu.dot_dimension_numbers<[1], [0], [0], [1], [0, 0, 1, 1], [], []>} : vector<264x128xbf16>, vector<128x128xbf16>, vector<264x128xf32> -> vector<264x128xf32>
    %60 = arith.addf %53, %59 : vector<264x128xf32>
    %c0_i32_44 = arith.constant 0 : i32
    %c0_i32_45 = arith.constant 0 : i32
    %61 = tpu.memref_slice %arg11[%16, %c0_i32_44, %c0_i32_45] : memref<2x336x128xbf16, #tpu.memory_space<vmem>> -> memref<1x336x128xbf16, #tpu.memory_space<vmem>>
    %62 = tpu.memref_squeeze %61 : memref<1x336x128xbf16, #tpu.memory_space<vmem>> -> memref<336x128xbf16, #tpu.memory_space<vmem>>
    %c26 = arith.constant 26 : index
    %c0_46 = arith.constant 0 : index
    %63 = vector.load %62[%c26, %c0_46] : memref<336x128xbf16, #tpu.memory_space<vmem>>, vector<264x128xbf16>
    %c5 = arith.constant 5 : index
    %c0_47 = arith.constant 0 : index
    %c0_48 = arith.constant 0 : index
    %64 = vector.load %arg3[%c5, %c0_47, %c0_48] : memref<9x128x128xbf16, #tpu.memory_space<vmem>>, vector<1x128x128xbf16>
    %65 = vector.shape_cast %64 : vector<1x128x128xbf16> to vector<128x128xbf16>
    %cst_49 = arith.constant dense<0.000000e+00> : vector<264x128xf32>
    %66 = tpu.matmul %63, %65, %cst_49 {dimension_numbers = #tpu.dot_dimension_numbers<[1], [0], [0], [1], [0, 0, 1, 1], [], []>} : vector<264x128xbf16>, vector<128x128xbf16>, vector<264x128xf32> -> vector<264x128xf32>
    %67 = arith.addf %60, %66 : vector<264x128xf32>
    %c0_i32_50 = arith.constant 0 : i32
    %c0_i32_51 = arith.constant 0 : i32
    %68 = tpu.memref_slice %arg11[%16, %c0_i32_50, %c0_i32_51] : memref<2x336x128xbf16, #tpu.memory_space<vmem>> -> memref<1x336x128xbf16, #tpu.memory_space<vmem>>
    %69 = tpu.memref_squeeze %68 : memref<1x336x128xbf16, #tpu.memory_space<vmem>> -> memref<336x128xbf16, #tpu.memory_space<vmem>>
    %c48 = arith.constant 48 : index
    %c0_52 = arith.constant 0 : index
    %70 = vector.load %69[%c48, %c0_52] : memref<336x128xbf16, #tpu.memory_space<vmem>>, vector<264x128xbf16>
    %c6 = arith.constant 6 : index
    %c0_53 = arith.constant 0 : index
    %c0_54 = arith.constant 0 : index
    %71 = vector.load %arg3[%c6, %c0_53, %c0_54] : memref<9x128x128xbf16, #tpu.memory_space<vmem>>, vector<1x128x128xbf16>
    %72 = vector.shape_cast %71 : vector<1x128x128xbf16> to vector<128x128xbf16>
    %cst_55 = arith.constant dense<0.000000e+00> : vector<264x128xf32>
    %73 = tpu.matmul %70, %72, %cst_55 {dimension_numbers = #tpu.dot_dimension_numbers<[1], [0], [0], [1], [0, 0, 1, 1], [], []>} : vector<264x128xbf16>, vector<128x128xbf16>, vector<264x128xf32> -> vector<264x128xf32>
    %74 = arith.addf %67, %73 : vector<264x128xf32>
    %c0_i32_56 = arith.constant 0 : i32
    %c0_i32_57 = arith.constant 0 : i32
    %75 = tpu.memref_slice %arg11[%16, %c0_i32_56, %c0_i32_57] : memref<2x336x128xbf16, #tpu.memory_space<vmem>> -> memref<1x336x128xbf16, #tpu.memory_space<vmem>>
    %76 = tpu.memref_squeeze %75 : memref<1x336x128xbf16, #tpu.memory_space<vmem>> -> memref<336x128xbf16, #tpu.memory_space<vmem>>
    %c49 = arith.constant 49 : index
    %c0_58 = arith.constant 0 : index
    %77 = vector.load %76[%c49, %c0_58] : memref<336x128xbf16, #tpu.memory_space<vmem>>, vector<264x128xbf16>
    %c7 = arith.constant 7 : index
    %c0_59 = arith.constant 0 : index
    %c0_60 = arith.constant 0 : index
    %78 = vector.load %arg3[%c7, %c0_59, %c0_60] : memref<9x128x128xbf16, #tpu.memory_space<vmem>>, vector<1x128x128xbf16>
    %79 = vector.shape_cast %78 : vector<1x128x128xbf16> to vector<128x128xbf16>
    %cst_61 = arith.constant dense<0.000000e+00> : vector<264x128xf32>
    %80 = tpu.matmul %77, %79, %cst_61 {dimension_numbers = #tpu.dot_dimension_numbers<[1], [0], [0], [1], [0, 0, 1, 1], [], []>} : vector<264x128xbf16>, vector<128x128xbf16>, vector<264x128xf32> -> vector<264x128xf32>
    %81 = arith.addf %74, %80 : vector<264x128xf32>
    %c0_i32_62 = arith.constant 0 : i32
    %c0_i32_63 = arith.constant 0 : i32
    %82 = tpu.memref_slice %arg11[%16, %c0_i32_62, %c0_i32_63] : memref<2x336x128xbf16, #tpu.memory_space<vmem>> -> memref<1x336x128xbf16, #tpu.memory_space<vmem>>
    %83 = tpu.memref_squeeze %82 : memref<1x336x128xbf16, #tpu.memory_space<vmem>> -> memref<336x128xbf16, #tpu.memory_space<vmem>>
    %c50 = arith.constant 50 : index
    %c0_64 = arith.constant 0 : index
    %84 = vector.load %83[%c50, %c0_64] : memref<336x128xbf16, #tpu.memory_space<vmem>>, vector<264x128xbf16>
    %c8 = arith.constant 8 : index
    %c0_65 = arith.constant 0 : index
    %c0_66 = arith.constant 0 : index
    %85 = vector.load %arg3[%c8, %c0_65, %c0_66] : memref<9x128x128xbf16, #tpu.memory_space<vmem>>, vector<1x128x128xbf16>
    %86 = vector.shape_cast %85 : vector<1x128x128xbf16> to vector<128x128xbf16>
    %cst_67 = arith.constant dense<0.000000e+00> : vector<264x128xf32>
    %87 = tpu.matmul %84, %86, %cst_67 {dimension_numbers = #tpu.dot_dimension_numbers<[1], [0], [0], [1], [0, 0, 1, 1], [], []>} : vector<264x128xbf16>, vector<128x128xbf16>, vector<264x128xf32> -> vector<264x128xf32>
    %88 = arith.addf %81, %87 : vector<264x128xf32>
    %c0_68 = arith.constant 0 : index
    %c0_69 = arith.constant 0 : index
    %89 = vector.load %arg4[%c0_68, %c0_69] : memref<1x128xf32, #tpu.memory_space<vmem>>, vector<1x128xf32>
    %90 = vector.broadcast %89 : vector<1x128xf32> to vector<264x128xf32>
    %91 = arith.mulf %88, %90 : vector<264x128xf32>
    %c0_70 = arith.constant 0 : index
    %c0_71 = arith.constant 0 : index
    %92 = vector.load %arg5[%c0_70, %c0_71] : memref<1x128xf32, #tpu.memory_space<vmem>>, vector<1x128xf32>
    %93 = vector.broadcast %92 : vector<1x128xf32> to vector<264x128xf32>
    %94 = arith.addf %91, %93 : vector<264x128xf32>
    %cst_72 = arith.constant 0.000000e+00 : f32
    %95 = vector.broadcast %cst_72 : f32 to vector<264x128xf32>
    %96 = arith.maximumf %94, %95 : vector<264x128xf32>
    %97 = tpu.iota {dimensions = array<i32: 0>} : vector<264x1xi32>
    %c8_i32 = arith.constant 8 : i32
    %98 = arith.muli %arg1, %c8_i32 : i32
    %c1_i32_73 = arith.constant 1 : i32
    %99 = arith.subi %c1_i32_73, %98 : i32
    %c24_i32 = arith.constant 24 : i32
    %100 = arith.muli %99, %c24_i32 : i32
    %c8_i32_74 = arith.constant 8 : i32
    %101 = arith.muli %arg1, %c8_i32_74 : i32
    %c17_i32 = arith.constant 17 : i32
    %102 = arith.subi %c17_i32, %101 : i32
    %c24_i32_75 = arith.constant 24 : i32
    %103 = arith.muli %102, %c24_i32_75 : i32
    %104 = vector.broadcast %100 : i32 to vector<264x1xi32>
    %105 = arith.cmpi sge, %97, %104 : vector<264x1xi32>
    %106 = vector.broadcast %103 : i32 to vector<264x1xi32>
    %107 = arith.cmpi slt, %97, %106 : vector<264x1xi32>
    %108 = arith.andi %105, %107 : vector<264x1xi1>
    %c0_76 = arith.constant 0 : index
    %c0_77 = arith.constant 0 : index
    %109 = vector.load %arg9[%c0_76, %c0_77] : memref<264x1xf32, #tpu.memory_space<vmem>>, vector<264x1xf32>
    %cst_78 = arith.constant 0.000000e+00 : f32
    %110 = vector.broadcast %cst_78 : f32 to vector<264x1xf32>
    %111 = arith.select %108, %109, %110 : vector<264x1xi1>, vector<264x1xf32>
    %112 = vector.broadcast %111 : vector<264x1xf32> to vector<264x128xf32>
    %113 = arith.mulf %96, %112 : vector<264x128xf32>
    %114 = arith.truncf %113 : vector<264x128xf32> to vector<264x128xbf16>
    %115 = vector.extract_strided_slice %114 {offsets = [0, 0], sizes = [192, 128], strides = [1, 1]} : vector<264x128xbf16> to vector<192x128xbf16>
    %c0_79 = arith.constant 0 : index
    %c0_80 = arith.constant 0 : index
    %c0_81 = arith.constant 0 : index
    %116 = vector.load %arg6[%c0_79, %c0_80, %c0_81] : memref<9x128x128xbf16, #tpu.memory_space<vmem>>, vector<1x128x128xbf16>
    %117 = vector.shape_cast %116 : vector<1x128x128xbf16> to vector<128x128xbf16>
    %cst_82 = arith.constant dense<0.000000e+00> : vector<192x128xf32>
    %118 = tpu.matmul %115, %117, %cst_82 {dimension_numbers = #tpu.dot_dimension_numbers<[1], [0], [0], [1], [0, 0, 1, 1], [], []>} : vector<192x128xbf16>, vector<128x128xbf16>, vector<192x128xf32> -> vector<192x128xf32>
    %119 = vector.extract_strided_slice %114 {offsets = [1, 0], sizes = [192, 128], strides = [1, 1]} : vector<264x128xbf16> to vector<192x128xbf16>
    %c1_83 = arith.constant 1 : index
    %c0_84 = arith.constant 0 : index
    %c0_85 = arith.constant 0 : index
    %120 = vector.load %arg6[%c1_83, %c0_84, %c0_85] : memref<9x128x128xbf16, #tpu.memory_space<vmem>>, vector<1x128x128xbf16>
    %121 = vector.shape_cast %120 : vector<1x128x128xbf16> to vector<128x128xbf16>
    %cst_86 = arith.constant dense<0.000000e+00> : vector<192x128xf32>
    %122 = tpu.matmul %119, %121, %cst_86 {dimension_numbers = #tpu.dot_dimension_numbers<[1], [0], [0], [1], [0, 0, 1, 1], [], []>} : vector<192x128xbf16>, vector<128x128xbf16>, vector<192x128xf32> -> vector<192x128xf32>
    %123 = arith.addf %118, %122 : vector<192x128xf32>
    %124 = vector.extract_strided_slice %114 {offsets = [2, 0], sizes = [192, 128], strides = [1, 1]} : vector<264x128xbf16> to vector<192x128xbf16>
    %c2_87 = arith.constant 2 : index
    %c0_88 = arith.constant 0 : index
    %c0_89 = arith.constant 0 : index
    %125 = vector.load %arg6[%c2_87, %c0_88, %c0_89] : memref<9x128x128xbf16, #tpu.memory_space<vmem>>, vector<1x128x128xbf16>
    %126 = vector.shape_cast %125 : vector<1x128x128xbf16> to vector<128x128xbf16>
    %cst_90 = arith.constant dense<0.000000e+00> : vector<192x128xf32>
    %127 = tpu.matmul %124, %126, %cst_90 {dimension_numbers = #tpu.dot_dimension_numbers<[1], [0], [0], [1], [0, 0, 1, 1], [], []>} : vector<192x128xbf16>, vector<128x128xbf16>, vector<192x128xf32> -> vector<192x128xf32>
    %128 = arith.addf %123, %127 : vector<192x128xf32>
    %129 = vector.extract_strided_slice %114 {offsets = [24, 0], sizes = [192, 128], strides = [1, 1]} : vector<264x128xbf16> to vector<192x128xbf16>
    %c3_91 = arith.constant 3 : index
    %c0_92 = arith.constant 0 : index
    %c0_93 = arith.constant 0 : index
    %130 = vector.load %arg6[%c3_91, %c0_92, %c0_93] : memref<9x128x128xbf16, #tpu.memory_space<vmem>>, vector<1x128x128xbf16>
    %131 = vector.shape_cast %130 : vector<1x128x128xbf16> to vector<128x128xbf16>
    %cst_94 = arith.constant dense<0.000000e+00> : vector<192x128xf32>
    %132 = tpu.matmul %129, %131, %cst_94 {dimension_numbers = #tpu.dot_dimension_numbers<[1], [0], [0], [1], [0, 0, 1, 1], [], []>} : vector<192x128xbf16>, vector<128x128xbf16>, vector<192x128xf32> -> vector<192x128xf32>
    %133 = arith.addf %128, %132 : vector<192x128xf32>
    %134 = vector.extract_strided_slice %114 {offsets = [25, 0], sizes = [192, 128], strides = [1, 1]} : vector<264x128xbf16> to vector<192x128xbf16>
    %c4_95 = arith.constant 4 : index
    %c0_96 = arith.constant 0 : index
    %c0_97 = arith.constant 0 : index
    %135 = vector.load %arg6[%c4_95, %c0_96, %c0_97] : memref<9x128x128xbf16, #tpu.memory_space<vmem>>, vector<1x128x128xbf16>
    %136 = vector.shape_cast %135 : vector<1x128x128xbf16> to vector<128x128xbf16>
    %cst_98 = arith.constant dense<0.000000e+00> : vector<192x128xf32>
    %137 = tpu.matmul %134, %136, %cst_98 {dimension_numbers = #tpu.dot_dimension_numbers<[1], [0], [0], [1], [0, 0, 1, 1], [], []>} : vector<192x128xbf16>, vector<128x128xbf16>, vector<192x128xf32> -> vector<192x128xf32>
    %138 = arith.addf %133, %137 : vector<192x128xf32>
    %139 = vector.extract_strided_slice %114 {offsets = [26, 0], sizes = [192, 128], strides = [1, 1]} : vector<264x128xbf16> to vector<192x128xbf16>
    %c5_99 = arith.constant 5 : index
    %c0_100 = arith.constant 0 : index
    %c0_101 = arith.constant 0 : index
    %140 = vector.load %arg6[%c5_99, %c0_100, %c0_101] : memref<9x128x128xbf16, #tpu.memory_space<vmem>>, vector<1x128x128xbf16>
    %141 = vector.shape_cast %140 : vector<1x128x128xbf16> to vector<128x128xbf16>
    %cst_102 = arith.constant dense<0.000000e+00> : vector<192x128xf32>
    %142 = tpu.matmul %139, %141, %cst_102 {dimension_numbers = #tpu.dot_dimension_numbers<[1], [0], [0], [1], [0, 0, 1, 1], [], []>} : vector<192x128xbf16>, vector<128x128xbf16>, vector<192x128xf32> -> vector<192x128xf32>
    %143 = arith.addf %138, %142 : vector<192x128xf32>
    %144 = vector.extract_strided_slice %114 {offsets = [48, 0], sizes = [192, 128], strides = [1, 1]} : vector<264x128xbf16> to vector<192x128xbf16>
    %c6_103 = arith.constant 6 : index
    %c0_104 = arith.constant 0 : index
    %c0_105 = arith.constant 0 : index
    %145 = vector.load %arg6[%c6_103, %c0_104, %c0_105] : memref<9x128x128xbf16, #tpu.memory_space<vmem>>, vector<1x128x128xbf16>
    %146 = vector.shape_cast %145 : vector<1x128x128xbf16> to vector<128x128xbf16>
    %cst_106 = arith.constant dense<0.000000e+00> : vector<192x128xf32>
    %147 = tpu.matmul %144, %146, %cst_106 {dimension_numbers = #tpu.dot_dimension_numbers<[1], [0], [0], [1], [0, 0, 1, 1], [], []>} : vector<192x128xbf16>, vector<128x128xbf16>, vector<192x128xf32> -> vector<192x128xf32>
    %148 = arith.addf %143, %147 : vector<192x128xf32>
    %149 = vector.extract_strided_slice %114 {offsets = [49, 0], sizes = [192, 128], strides = [1, 1]} : vector<264x128xbf16> to vector<192x128xbf16>
    %c7_107 = arith.constant 7 : index
    %c0_108 = arith.constant 0 : index
    %c0_109 = arith.constant 0 : index
    %150 = vector.load %arg6[%c7_107, %c0_108, %c0_109] : memref<9x128x128xbf16, #tpu.memory_space<vmem>>, vector<1x128x128xbf16>
    %151 = vector.shape_cast %150 : vector<1x128x128xbf16> to vector<128x128xbf16>
    %cst_110 = arith.constant dense<0.000000e+00> : vector<192x128xf32>
    %152 = tpu.matmul %149, %151, %cst_110 {dimension_numbers = #tpu.dot_dimension_numbers<[1], [0], [0], [1], [0, 0, 1, 1], [], []>} : vector<192x128xbf16>, vector<128x128xbf16>, vector<192x128xf32> -> vector<192x128xf32>
    %153 = arith.addf %148, %152 : vector<192x128xf32>
    %154 = vector.extract_strided_slice %114 {offsets = [50, 0], sizes = [192, 128], strides = [1, 1]} : vector<264x128xbf16> to vector<192x128xbf16>
    %c8_111 = arith.constant 8 : index
    %c0_112 = arith.constant 0 : index
    %c0_113 = arith.constant 0 : index
    %155 = vector.load %arg6[%c8_111, %c0_112, %c0_113] : memref<9x128x128xbf16, #tpu.memory_space<vmem>>, vector<1x128x128xbf16>
    %156 = vector.shape_cast %155 : vector<1x128x128xbf16> to vector<128x128xbf16>
    %cst_114 = arith.constant dense<0.000000e+00> : vector<192x128xf32>
    %157 = tpu.matmul %154, %156, %cst_114 {dimension_numbers = #tpu.dot_dimension_numbers<[1], [0], [0], [1], [0, 0, 1, 1], [], []>} : vector<192x128xbf16>, vector<128x128xbf16>, vector<192x128xf32> -> vector<192x128xf32>
    %158 = arith.addf %153, %157 : vector<192x128xf32>
    %c0_115 = arith.constant 0 : index
    %c0_116 = arith.constant 0 : index
    %159 = vector.load %arg7[%c0_115, %c0_116] : memref<1x128xf32, #tpu.memory_space<vmem>>, vector<1x128xf32>
    %160 = vector.broadcast %159 : vector<1x128xf32> to vector<192x128xf32>
    %161 = arith.mulf %158, %160 : vector<192x128xf32>
    %c0_117 = arith.constant 0 : index
    %c0_118 = arith.constant 0 : index
    %162 = vector.load %arg8[%c0_117, %c0_118] : memref<1x128xf32, #tpu.memory_space<vmem>>, vector<1x128xf32>
    %163 = vector.broadcast %162 : vector<1x128xf32> to vector<192x128xf32>
    %164 = arith.addf %161, %163 : vector<192x128xf32>
    %cst_119 = arith.constant 0.000000e+00 : f32
    %165 = vector.broadcast %cst_119 : f32 to vector<192x128xf32>
    %166 = arith.maximumf %164, %165 : vector<192x128xf32>
    %167 = arith.truncf %166 : vector<192x128xf32> to vector<192x128xbf16>
    %c0_120 = arith.constant 0 : index
    %c0_121 = arith.constant 0 : index
    %168 = vector.load %arg10[%c0_120, %c0_121] : memref<192x128xbf16, #tpu.memory_space<vmem>>, vector<192x128xbf16>
    tpu.vector_store %arg10[%c0_120, %c0_121], %167 {strides = array<i32>} : memref<192x128xbf16, #tpu.memory_space<vmem>>, vector<192x128xbf16>,
    return
  }
  func.func @transform_1(%arg0: i32, %arg1: i32) -> (i32, i32, i32) {
    %c0_i32 = arith.constant 0 : i32
    %c0_i32_0 = arith.constant 0 : i32
    %c0_i32_1 = arith.constant 0 : i32
    %c0_i32_2 = arith.constant 0 : i32
    return %c0_i32, %c0_i32_0, %c0_i32_1 : i32, i32, i32
  }
  func.func @transform_2(%arg0: i32, %arg1: i32) -> (i32, i32) {
    %c0_i32 = arith.constant 0 : i32
    %c0_i32_0 = arith.constant 0 : i32
    %c0_i32_1 = arith.constant 0 : i32
    return %c0_i32, %c0_i32_0 : i32, i32
  }
  func.func @transform_3(%arg0: i32, %arg1: i32) -> (i32, i32) {
    %c0_i32 = arith.constant 0 : i32
    %c0_i32_0 = arith.constant 0 : i32
    %c0_i32_1 = arith.constant 0 : i32
    return %c0_i32, %c0_i32_0 : i32, i32
  }
  func.func @transform_4(%arg0: i32, %arg1: i32) -> (i32, i32, i32) {
    %c0_i32 = arith.constant 0 : i32
    %c0_i32_0 = arith.constant 0 : i32
    %c0_i32_1 = arith.constant 0 : i32
    %c0_i32_2 = arith.constant 0 : i32
    return %c0_i32, %c0_i32_0, %c0_i32_1 : i32, i32, i32
  }
  func.func @transform_5(%arg0: i32, %arg1: i32) -> (i32, i32) {
    %c0_i32 = arith.constant 0 : i32
    %c0_i32_0 = arith.constant 0 : i32
    %c0_i32_1 = arith.constant 0 : i32
    return %c0_i32, %c0_i32_0 : i32, i32
  }
  func.func @transform_6(%arg0: i32, %arg1: i32) -> (i32, i32) {
    %c0_i32 = arith.constant 0 : i32
    %c0_i32_0 = arith.constant 0 : i32
    %c0_i32_1 = arith.constant 0 : i32
    return %c0_i32, %c0_i32_0 : i32, i32
  }
  func.func @transform_7(%arg0: i32, %arg1: i32) -> (i32, i32) {
    %c0_i32 = arith.constant 0 : i32
    %c0_i32_0 = arith.constant 0 : i32
    %c0_i32_1 = arith.constant 0 : i32
    return %c0_i32, %c0_i32_0 : i32, i32
  }
  func.func @transform_8(%arg0: i32, %arg1: i32) -> (i32, i32) {
    %c2_i32 = arith.constant 2 : i32
    %0 = arith.muli %arg0, %c2_i32 : i32
    %1 = arith.addi %0, %arg1 : i32
    %c0_i32 = arith.constant 0 : i32
    %c0_i32_0 = arith.constant 0 : i32
    return %1, %c0_i32 : i32, i32
  }
}

</mosaic_0001>

<bundles_post_ra>
// kernel: tile.8
= control target key start
LH: loop header
LB: loop body
LE: loop exit
PB: predicated region body
PF: predicated region fallthrough
CT: control target
= control target key end

     0   :  { %s28_s0 = inlined_call_operand.vmem [shape: f32[24], index: 0, kind: input, shape index: {}]   ;;  %s29_s1 = inlined_call_operand.vmem [shape: f32[11,24], index: 1, kind: output, shape index: {}]  }
   0x1   :  { %v4_v0 = vld [vmem:[%s28_s0] ss:$0 sm:$0xff] }
   0x2   :  { %5 = vst [vmem:[%s29_s1] sm:$0xff] %v4_v0 }
   0x3   :  { %8 = vst [vmem:[%s29_s1 + $0x8] sm:$0xff] %v4_v0 }

// kernel: tile.0
= control target key start
LH: loop header
LB: loop body
LE: loop exit
PB: predicated region body
PF: predicated region fallthrough
CT: control target
= control target key end

     0   :  { %s656_s8 = smov 127   ;;  %s657_s9 = smov 126   ;;  %vm3_vm0 = vcmask 7168   ;;  %s1266_s0 = inlined_call_operand.vmem [shape: f32[11,24], index: 0, kind: input, shape index: {}]   ;;  %s1267_s1 = inlined_call_operand.vmem [shape: f32[264,1], index: 1, kind: output, shape index: {}]  }
   0x1   :  { %v11_v0 = vld.sshfl [vmem:[%s1266_s0] sm:$0xff pattern:$0x56741230]   ;;  %s658_s10 = smov 125   ;;  %s659_s13 = smov 124  }
   0x2   :  { %12 = vrot.lane.b32.xlu0 %v11_v0, %s656_s8  ;;  %33 = vrot.lane.b32.xlu1 %v11_v0, %s657_s9  ;;  %v484_v1 = vld.sshfl [vmem:[%s1266_s0 + $0x8] sm:$0xff pattern:$0x11111120]   ;;  %s660_s14 = smov 123   ;;  %s661_s15 = smov 122   ;;  %v2_v58 = vld [vmem:[%s1266_s0] sm:$0xff]  }
   0x3   :  { %54 = vrot.lane.b32.xlu2 %v11_v0, %s658_s10  ;;  %s662_s16 = smov 121   ;;  %v179_v2 = vld.sshfl [vmem:[%s1266_s0] sm:$0xff pattern:$0x67452301]   ;;  %s663_s19 = smov 120  }
   0x4   :  { %v533_v3 = vld.sshfl [vmem:[%s1266_s0 + $0x8] sm:$0xff pattern:$0x22222201]   ;;  %s664_s22 = smov 119   ;;  %s665_s23 = smov 118  }
   0x5   :  { %s666_s24 = smov 117   ;;  %s667_s25 = smov 116   ;;  %v326_v4 = vld.sshfl [vmem:[%s1266_s0] sm:$0xff pattern:$0x74563012]  }
   0x6   :  { %s668_s26 = smov 115   ;;  %s669_s27 = smov 114   ;;  %v589_v5 = vld [vmem:[%s1266_s0 + $0xa] ss:$-1 sm:$0x7]  }
   0x7   :  { %s670_s28 = smov 113   ;;  %s671_s4 = smov 112   ;;  %v595_v6 = vld [vmem:[%s1266_s0 + $0xa] ss:$-1 sm:$0x7]  }
   0x8   :  { %s672_s5 = smov 111   ;;  %v601_v7 = vld [vmem:[%s1266_s0 + $0xa] ss:$-1 sm:$0x7]   ;;  %s676_s2 = smov 107  }
   0x9   :  { %v607_v9 = vld [vmem:[%s1266_s0 + $0xa] ss:$-1 sm:$0x7]   ;;  %s677_s11 = smov 106  }
   0xa   :  { %25 = vrot.lane.b32.xlu0 %v484_v1, %s656_s8  ;;  %46 = vrot.lane.b32.xlu1 %v484_v1, %s657_s9  ;;  %v613_v11 = vld [vmem:[%s1266_s0 + $0xa] ss:$-1 sm:$0x7]   ;;  %4 = vst.msk [vmem:[%s1267_s1] ss:$24 sm:$0xf] %vm3_vm0, %v2_v58  }
   0xb   :  { %67 = vrot.lane.b32.xlu2 %v484_v1, %s658_s10  ;;  %s673_s10 = smov 110   ;;  %v619_v12 = vld [vmem:[%s1266_s0 + $0xa] ss:$-1 sm:$0x7]  }
   0xc   :  { %v625_v14 = vld [vmem:[%s1266_s0 + $0xa] ss:$-1 sm:$0x7]   ;;  %5 = vst.msk [vmem:[%s1267_s1] ss:$24 sm:$0xf0] %vm3_vm0, %v2_v58  }
   0xd   :  { %v631_v18 = vld [vmem:[%s1266_s0 + $0xa] ss:$-1 sm:$0x7]  }
   0xe   :  { %v478_v60 = vld [vmem:[%s1266_s0 + $0x8] sm:$0x7]  }
   0xf   :  { %479 = vst.msk [vmem:[%s1267_s1 + $0xc0] ss:$24 sm:$0x7] %vm3_vm0, %v478_v60  }
  0x12   :  { %75 = vrot.lane.b32.xlu0 %v11_v0, %s659_s13  ;;  %88 = vrot.lane.b32.xlu1 %v484_v1, %s659_s13 }
  0x13   :  { %96 = vrot.lane.b32.xlu2 %v11_v0, %s660_s14 }
  0x1a   :  { %109 = vrot.lane.b32.xlu0 %v484_v1, %s660_s14  ;;  %117 = vrot.lane.b32.xlu1 %v11_v0, %s661_s15  ;;  %s678_s14 = smov 105  }
  0x1b   :  { %130 = vrot.lane.b32.xlu2 %v484_v1, %s661_s15 }
  0x22   :  { %138 = vrot.lane.b32.xlu0 %v11_v0, %s662_s16  ;;  %151 = vrot.lane.b32.xlu1 %v484_v1, %s662_s16 }
  0x23   :  { %159 = vrot.lane.b32.xlu2 %v179_v2, %s663_s19 }
  0x2a   :  { %172 = vrot.lane.b32.xlu0 %v533_v3, %s663_s19  ;;  %180 = vrot.lane.b32.xlu1 %v179_v2, %s664_s22  ;;  %s674_s19 = smov 109  }
  0x2b   :  { %193 = vrot.lane.b32.xlu2 %v533_v3, %s664_s22  ;;  %s675_s22 = smov 108  }
  0x32   :  { %201 = vrot.lane.b32.xlu0 %v179_v2, %s665_s23  ;;  %214 = vrot.lane.b32.xlu1 %v533_v3, %s665_s23 }
  0x33   :  { %222 = vrot.lane.b32.xlu2 %v179_v2, %s666_s24 }
  0x3a   :  { %235 = vrot.lane.b32.xlu0 %v533_v3, %s666_s24  ;;  %243 = vrot.lane.b32.xlu1 %v179_v2, %s667_s25 }
  0x3b   :  { %256 = vrot.lane.b32.xlu2 %v533_v3, %s667_s25 }
  0x42   :  { %264 = vrot.lane.b32.xlu0 %v179_v2, %s668_s26  ;;  %277 = vrot.lane.b32.xlu1 %v533_v3, %s668_s26 }
  0x43   :  { %285 = vrot.lane.b32.xlu2 %v179_v2, %s669_s27 }
  0x4a   :  { %298 = vrot.lane.b32.xlu0 %v533_v3, %s669_s27  ;;  %306 = vrot.lane.b32.xlu1 %v179_v2, %s670_s28 }
  0x4b   :  { %319 = vrot.lane.b32.xlu2 %v533_v3, %s670_s28 }
  0x52   :  { %327 = vrot.lane.b32.xlu0 %v326_v4, %s671_s4  ;;  %340 = vrot.lane.b32.xlu1 %v589_v5, %s671_s4 }
  0x53   :  { %346 = vrot.lane.b32.xlu2 %v326_v4, %s672_s5 }
  0x5a   :  { %359 = vrot.lane.b32.xlu0 %v595_v6, %s672_s5  ;;  %365 = vrot.lane.b32.xlu1 %v326_v4, %s673_s10 }
  0x5b   :  { %378 = vrot.lane.b32.xlu2 %v601_v7, %s673_s10 }
  0x5d   :  { %v55_v8 = vpop.permute.xlu2 %54  }
  0x5e   :  { %494 = vst.msk [vmem:[%s1267_s1 + $0x3] ss:$72 sm:$0x3] %vm3_vm0, %v55_v8  }
  0x5f   :  { %495 = vst.msk [vmem:[%s1267_s1 + $0x63] ss:$-24 sm:$0xc] %vm3_vm0, %v55_v8  }
  0x60   :  { %496 = vst.msk [vmem:[%s1267_s1 - $0xbd] ss:$72 sm:$0x30] %vm3_vm0, %v55_v8  }
  0x61   :  { %497 = vst.msk [vmem:[%s1267_s1 + $0x123] ss:$-24 sm:$0xc0] %vm3_vm0, %v55_v8  }
  0x62   :  { %384 = vrot.lane.b32.xlu0 %v326_v4, %s674_s19  ;;  %397 = vrot.lane.b32.xlu1 %v607_v9, %s674_s19 }
  0x63   :  { %403 = vrot.lane.b32.xlu2 %v326_v4, %s675_s22 }
  0x65   :  { %v68_v10 = vpop.permute.xlu2 %67  }
  0x66   :  { %499 = vst.msk [vmem:[%s1267_s1 + $0xc3] ss:$48 sm:$0x3] %vm3_vm0, %v68_v10  }
  0x67   :  { %500 = vst.msk [vmem:[%s1267_s1 + $0xd9] sm:$0x4] %vm3_vm0, %v68_v10  }
  0x6a   :  { %416 = vrot.lane.b32.xlu0 %v613_v11, %s675_s22  ;;  %422 = vrot.lane.b32.xlu1 %v326_v4, %s676_s2 }
  0x6b   :  { %435 = vrot.lane.b32.xlu2 %v619_v12, %s676_s2 }
  0x6d   :  { %v97_v13 = vpop.permute.xlu2 %96  }
  0x6e   :  { %508 = vst.msk [vmem:[%s1267_s1 + $0x5] ss:$72 sm:$0x3] %vm3_vm0, %v97_v13  }
  0x6f   :  { %509 = vst.msk [vmem:[%s1267_s1 + $0x65] ss:$-24 sm:$0xc] %vm3_vm0, %v97_v13  }
  0x70   :  { %510 = vst.msk [vmem:[%s1267_s1 - $0xbb] ss:$72 sm:$0x30] %vm3_vm0, %v97_v13  }
  0x71   :  { %511 = vst.msk [vmem:[%s1267_s1 + $0x125] ss:$-24 sm:$0xc0] %vm3_vm0, %v97_v13  }
  0x72   :  { %441 = vrot.lane.b32.xlu0 %v326_v4, %s677_s11  ;;  %454 = vrot.lane.b32.xlu1 %v625_v14, %s677_s11 }
  0x73   :  { %460 = vrot.lane.b32.xlu2 %v326_v4, %s678_s14 }
  0x74   :  { %v13_v15 = vpop.permute.xlu0 %12   ;;  %v34_v16 = vpop.permute.xlu1 %33  }
  0x75   :  { %480 = vst.msk [vmem:[%s1267_s1 + $0x1] ss:$72 sm:$0x3] %vm3_vm0, %v13_v15   ;;  %v131_v17 = vpop.permute.xlu2 %130  }
  0x76   :  { %481 = vst.msk [vmem:[%s1267_s1 + $0x61] ss:$-24 sm:$0xc] %vm3_vm0, %v13_v15  }
  0x77   :  { %482 = vst.msk [vmem:[%s1267_s1 - $0xbf] ss:$72 sm:$0x30] %vm3_vm0, %v13_v15  }
  0x78   :  { %483 = vst.msk [vmem:[%s1267_s1 + $0x121] ss:$-24 sm:$0xc0] %vm3_vm0, %v13_v15  }
  0x79   :  { %487 = vst.msk [vmem:[%s1267_s1 + $0x2] ss:$72 sm:$0x3] %vm3_vm0, %v34_v16  }
  0x7a   :  { %473 = vrot.lane.b32.xlu0 %v631_v18, %s678_s14  ;;  %488 = vst.msk [vmem:[%s1267_s1 + $0x62] ss:$-24 sm:$0xc] %vm3_vm0, %v34_v16  }
  0x7b   :  { %489 = vst.msk [vmem:[%s1267_s1 - $0xbe] ss:$72 sm:$0x30] %vm3_vm0, %v34_v16  }
  0x7c   :  { %490 = vst.msk [vmem:[%s1267_s1 + $0x122] ss:$-24 sm:$0xc0] %vm3_vm0, %v34_v16   ;;  %v26_v19 = vpop.permute.xlu0 %25   ;;  %v47_v20 = vpop.permute.xlu1 %46  }
  0x7d   :  { %485 = vst.msk [vmem:[%s1267_s1 + $0xc1] ss:$48 sm:$0x3] %vm3_vm0, %v26_v19   ;;  %v160_v21 = vpop.permute.xlu2 %159  }
  0x7e   :  { %486 = vst.msk [vmem:[%s1267_s1 + $0xd7] sm:$0x4] %vm3_vm0, %v26_v19  }
  0x7f   :  { %492 = vst.msk [vmem:[%s1267_s1 + $0xc2] ss:$48 sm:$0x3] %vm3_vm0, %v47_v20  }
  0x80   :  { %493 = vst.msk [vmem:[%s1267_s1 + $0xd8] sm:$0x4] %vm3_vm0, %v47_v20  }
  0x81   :  { %520 = vst.msk [vmem:[%s1267_s1 + $0xc6] ss:$48 sm:$0x3] %vm3_vm0, %v131_v17  }
  0x82   :  { %521 = vst.msk [vmem:[%s1267_s1 + $0xdc] sm:$0x4] %vm3_vm0, %v131_v17  }
  0x83   :  { %529 = vst.msk [vmem:[%s1267_s1 + $0x20] ss:$-24 sm:$0x3] %vm3_vm0, %v160_v21  }
  0x84   :  { %v76_v22 = vpop.permute.xlu0 %75   ;;  %v89_v23 = vpop.permute.xlu1 %88   ;;  %530 = vst.msk [vmem:[%s1267_s1 + $0x80] ss:$-24 sm:$0xc] %vm3_vm0, %v160_v21  }
  0x85   :  { %501 = vst.msk [vmem:[%s1267_s1 + $0x4] ss:$72 sm:$0x3] %vm3_vm0, %v76_v22   ;;  %v194_v24 = vpop.permute.xlu2 %193  }
  0x86   :  { %502 = vst.msk [vmem:[%s1267_s1 + $0x64] ss:$-24 sm:$0xc] %vm3_vm0, %v76_v22  }
  0x87   :  { %503 = vst.msk [vmem:[%s1267_s1 - $0xbc] ss:$72 sm:$0x30] %vm3_vm0, %v76_v22  }
  0x88   :  { %504 = vst.msk [vmem:[%s1267_s1 + $0x124] ss:$-24 sm:$0xc0] %vm3_vm0, %v76_v22  }
  0x89   :  { %506 = vst.msk [vmem:[%s1267_s1 + $0xc4] ss:$48 sm:$0x3] %vm3_vm0, %v89_v23  }
  0x8a   :  { %507 = vst.msk [vmem:[%s1267_s1 + $0xda] sm:$0x4] %vm3_vm0, %v89_v23  }
  0x8b   :  { %531 = vst.msk [vmem:[%s1267_s1 + $0xe0] ss:$-24 sm:$0x30] %vm3_vm0, %v160_v21  }
  0x8c   :  { %v110_v25 = vpop.permute.xlu0 %109   ;;  %v118_v26 = vpop.permute.xlu1 %117   ;;  %532 = vst.msk [vmem:[%s1267_s1 + $0x140] ss:$-24 sm:$0xc0] %vm3_vm0, %v160_v21  }
  0x8d   :  { %513 = vst.msk [vmem:[%s1267_s1 + $0xc5] ss:$48 sm:$0x3] %vm3_vm0, %v110_v25   ;;  %v223_v27 = vpop.permute.xlu2 %222  }
  0x8e   :  { %514 = vst.msk [vmem:[%s1267_s1 + $0xdb] sm:$0x4] %vm3_vm0, %v110_v25  }
  0x8f   :  { %515 = vst.msk [vmem:[%s1267_s1 + $0x6] ss:$72 sm:$0x3] %vm3_vm0, %v118_v26  }
  0x90   :  { %516 = vst.msk [vmem:[%s1267_s1 + $0x66] ss:$-24 sm:$0xc] %vm3_vm0, %v118_v26  }
  0x91   :  { %517 = vst.msk [vmem:[%s1267_s1 - $0xba] ss:$72 sm:$0x30] %vm3_vm0, %v118_v26  }
  0x92   :  { %518 = vst.msk [vmem:[%s1267_s1 + $0x126] ss:$-24 sm:$0xc0] %vm3_vm0, %v118_v26  }
  0x93   :  { %541 = vst.msk [vmem:[%s1267_s1 + $0xe1] ss:$-24 sm:$0x3] %vm3_vm0, %v194_v24  }
  0x94   :  { %v139_v28 = vpop.permute.xlu0 %138   ;;  %v152_v29 = vpop.permute.xlu1 %151   ;;  %542 = vst.msk [vmem:[%s1267_s1 + $0xf7] sm:$0x4] %vm3_vm0, %v194_v24  }
  0x95   :  { %522 = vst.msk [vmem:[%s1267_s1 + $0x7] ss:$72 sm:$0x3] %vm3_vm0, %v139_v28   ;;  %v257_v30 = vpop.permute.xlu2 %256  }
  0x96   :  { %523 = vst.msk [vmem:[%s1267_s1 + $0x67] ss:$-24 sm:$0xc] %vm3_vm0, %v139_v28  }
  0x97   :  { %524 = vst.msk [vmem:[%s1267_s1 - $0xb9] ss:$72 sm:$0x30] %vm3_vm0, %v139_v28  }
  0x98   :  { %525 = vst.msk [vmem:[%s1267_s1 + $0x127] ss:$-24 sm:$0xc0] %vm3_vm0, %v139_v28  }
  0x99   :  { %527 = vst.msk [vmem:[%s1267_s1 + $0xc7] ss:$48 sm:$0x3] %vm3_vm0, %v152_v29  }
  0x9a   :  { %528 = vst.msk [vmem:[%s1267_s1 + $0xdd] sm:$0x4] %vm3_vm0, %v152_v29  }
  0x9b   :  { %550 = vst.msk [vmem:[%s1267_s1 + $0x23] ss:$-24 sm:$0x3] %vm3_vm0, %v223_v27  }
  0x9c   :  { %v173_v31 = vpop.permute.xlu0 %172   ;;  %v181_v32 = vpop.permute.xlu1 %180   ;;  %551 = vst.msk [vmem:[%s1267_s1 + $0x83] ss:$-24 sm:$0xc] %vm3_vm0, %v223_v27  }
  0x9d   :  { %534 = vst.msk [vmem:[%s1267_s1 + $0xe0] ss:$-24 sm:$0x3] %vm3_vm0, %v173_v31   ;;  %v286_v33 = vpop.permute.xlu2 %285  }
  0x9e   :  { %535 = vst.msk [vmem:[%s1267_s1 + $0xf6] sm:$0x4] %vm3_vm0, %v173_v31  }
  0x9f   :  { %536 = vst.msk [vmem:[%s1267_s1 + $0x21] ss:$-24 sm:$0x3] %vm3_vm0, %v181_v32  }
  0xa0   :  { %537 = vst.msk [vmem:[%s1267_s1 + $0x81] ss:$-24 sm:$0xc] %vm3_vm0, %v181_v32  }
  0xa1   :  { %538 = vst.msk [vmem:[%s1267_s1 + $0xe1] ss:$-24 sm:$0x30] %vm3_vm0, %v181_v32  }
  0xa2   :  { %539 = vst.msk [vmem:[%s1267_s1 + $0x141] ss:$-24 sm:$0xc0] %vm3_vm0, %v181_v32  }
  0xa3   :  { %552 = vst.msk [vmem:[%s1267_s1 + $0xe3] ss:$-24 sm:$0x30] %vm3_vm0, %v223_v27  }
  0xa4   :  { %v202_v34 = vpop.permute.xlu0 %201   ;;  %553 = vst.msk [vmem:[%s1267_s1 + $0x143] ss:$-24 sm:$0xc0] %vm3_vm0, %v223_v27   ;;  %v215_v35 = vpop.permute.xlu1 %214  }
  0xa5   :  { %543 = vst.msk [vmem:[%s1267_s1 + $0x22] ss:$-24 sm:$0x3] %vm3_vm0, %v202_v34   ;;  %v320_v36 = vpop.permute.xlu2 %319  }
  0xa6   :  { %544 = vst.msk [vmem:[%s1267_s1 + $0x82] ss:$-24 sm:$0xc] %vm3_vm0, %v202_v34  }
  0xa7   :  { %545 = vst.msk [vmem:[%s1267_s1 + $0xe2] ss:$-24 sm:$0x30] %vm3_vm0, %v202_v34  }
  0xa8   :  { %546 = vst.msk [vmem:[%s1267_s1 + $0x142] ss:$-24 sm:$0xc0] %vm3_vm0, %v202_v34  }
  0xa9   :  { %548 = vst.msk [vmem:[%s1267_s1 + $0xe2] ss:$-24 sm:$0x3] %vm3_vm0, %v215_v35  }
  0xaa   :  { %549 = vst.msk [vmem:[%s1267_s1 + $0xf8] sm:$0x4] %vm3_vm0, %v215_v35  }
  0xab   :  { %562 = vst.msk [vmem:[%s1267_s1 + $0xe4] ss:$-24 sm:$0x3] %vm3_vm0, %v257_v30  }
  0xac   :  { %v236_v37 = vpop.permute.xlu0 %235   ;;  %563 = vst.msk [vmem:[%s1267_s1 + $0xfa] sm:$0x4] %vm3_vm0, %v257_v30   ;;  %v244_v38 = vpop.permute.xlu1 %243  }
  0xad   :  { %555 = vst.msk [vmem:[%s1267_s1 + $0xe3] ss:$-24 sm:$0x3] %vm3_vm0, %v236_v37   ;;  %v347_v39 = vpop.permute.xlu2 %346  }
  0xae   :  { %556 = vst.msk [vmem:[%s1267_s1 + $0xf9] sm:$0x4] %vm3_vm0, %v236_v37  }
  0xaf   :  { %557 = vst.msk [vmem:[%s1267_s1 + $0x24] ss:$-24 sm:$0x3] %vm3_vm0, %v244_v38  }
  0xb0   :  { %558 = vst.msk [vmem:[%s1267_s1 + $0x84] ss:$-24 sm:$0xc] %vm3_vm0, %v244_v38  }
  0xb1   :  { %559 = vst.msk [vmem:[%s1267_s1 + $0xe4] ss:$-24 sm:$0x30] %vm3_vm0, %v244_v38  }
  0xb2   :  { %560 = vst.msk [vmem:[%s1267_s1 + $0x144] ss:$-24 sm:$0xc0] %vm3_vm0, %v244_v38  }
  0xb3   :  { %571 = vst.msk [vmem:[%s1267_s1 + $0x26] ss:$-24 sm:$0x3] %vm3_vm0, %v286_v33  }
  0xb4   :  { %v265_v40 = vpop.permute.xlu0 %264   ;;  %572 = vst.msk [vmem:[%s1267_s1 + $0x86] ss:$-24 sm:$0xc] %vm3_vm0, %v286_v33   ;;  %v278_v41 = vpop.permute.xlu1 %277  }
  0xb5   :  { %564 = vst.msk [vmem:[%s1267_s1 + $0x25] ss:$-24 sm:$0x3] %vm3_vm0, %v265_v40   ;;  %v379_v42 = vpop.permute.xlu2 %378  }
  0xb6   :  { %565 = vst.msk [vmem:[%s1267_s1 + $0x85] ss:$-24 sm:$0xc] %vm3_vm0, %v265_v40  }
  0xb7   :  { %566 = vst.msk [vmem:[%s1267_s1 + $0xe5] ss:$-24 sm:$0x30] %vm3_vm0, %v265_v40  }
  0xb8   :  { %567 = vst.msk [vmem:[%s1267_s1 + $0x145] ss:$-24 sm:$0xc0] %vm3_vm0, %v265_v40  }
  0xb9   :  { %573 = vst.msk [vmem:[%s1267_s1 + $0xe6] ss:$-24 sm:$0x30] %vm3_vm0, %v286_v33  }
  0xba   :  { %574 = vst.msk [vmem:[%s1267_s1 + $0x146] ss:$-24 sm:$0xc0] %vm3_vm0, %v286_v33  }
  0xbb   :  { %569 = vst.msk [vmem:[%s1267_s1 + $0xe5] ss:$-24 sm:$0x3] %vm3_vm0, %v278_v41  }
  0xbc   :  { %570 = vst.msk [vmem:[%s1267_s1 + $0xfb] sm:$0x4] %vm3_vm0, %v278_v41   ;;  %v299_v43 = vpop.permute.xlu0 %298   ;;  %v307_v44 = vpop.permute.xlu1 %306  }
  0xbd   :  { %576 = vst.msk [vmem:[%s1267_s1 + $0xe6] ss:$-24 sm:$0x3] %vm3_vm0, %v299_v43   ;;  %v404_v45 = vpop.permute.xlu2 %403  }
  0xbe   :  { %577 = vst.msk [vmem:[%s1267_s1 + $0xfc] sm:$0x4] %vm3_vm0, %v299_v43  }
  0xbf   :  { %583 = vst.msk [vmem:[%s1267_s1 + $0xe7] ss:$-24 sm:$0x3] %vm3_vm0, %v320_v36  }
  0xc0   :  { %584 = vst.msk [vmem:[%s1267_s1 + $0xfd] sm:$0x4] %vm3_vm0, %v320_v36  }
  0xc1   :  { %578 = vst.msk [vmem:[%s1267_s1 + $0x27] ss:$-24 sm:$0x3] %vm3_vm0, %v307_v44  }
  0xc2   :  { %579 = vst.msk [vmem:[%s1267_s1 + $0x87] ss:$-24 sm:$0xc] %vm3_vm0, %v307_v44  }
  0xc3   :  { %580 = vst.msk [vmem:[%s1267_s1 + $0xe7] ss:$-24 sm:$0x30] %vm3_vm0, %v307_v44  }
  0xc4   :  { %581 = vst.msk [vmem:[%s1267_s1 + $0x147] ss:$-24 sm:$0xc0] %vm3_vm0, %v307_v44   ;;  %v328_v46 = vpop.permute.xlu0 %327   ;;  %v341_v47 = vpop.permute.xlu1 %340  }
  0xc5   :  { %585 = vst.msk [vmem:[%s1267_s1 + $0x40] ss:$-24 sm:$0x7] %vm3_vm0, %v328_v46   ;;  %v436_v48 = vpop.permute.xlu2 %435  }
  0xc6   :  { %586 = vst.msk [vmem:[%s1267_s1 - $0x80] ss:$72 sm:$0x18] %vm3_vm0, %v328_v46  }
  0xc7   :  { %587 = vst.msk [vmem:[%s1267_s1 + $0x100] ss:$-24 sm:$0x60] %vm3_vm0, %v328_v46  }
  0xc8   :  { %588 = vst.msk [vmem:[%s1267_s1 + $0xb1] sm:$0x80] %vm3_vm0, %v328_v46  }
  0xc9   :  { %591 = vst.msk [vmem:[%s1267_s1 + $0x41] ss:$-24 sm:$0x7] %vm3_vm0, %v347_v39  }
  0xca   :  { %592 = vst.msk [vmem:[%s1267_s1 - $0x7f] ss:$72 sm:$0x18] %vm3_vm0, %v347_v39  }
  0xcb   :  { %593 = vst.msk [vmem:[%s1267_s1 + $0x101] ss:$-24 sm:$0x60] %vm3_vm0, %v347_v39  }
  0xcc   :  { %594 = vst.msk [vmem:[%s1267_s1 + $0xb2] sm:$0x80] %vm3_vm0, %v347_v39   ;;  %v360_v49 = vpop.permute.xlu0 %359   ;;  %v366_v50 = vpop.permute.xlu1 %365  }
  0xcd   :  { %590 = vst.msk [vmem:[%s1267_s1 + $0x100] ss:$-24 sm:$0x7] %vm3_vm0, %v341_v47   ;;  %v461_v51 = vpop.permute.xlu2 %460  }
  0xce   :  { %596 = vst.msk [vmem:[%s1267_s1 + $0x101] ss:$-24 sm:$0x7] %vm3_vm0, %v360_v49  }
  0xcf   :  { %602 = vst.msk [vmem:[%s1267_s1 + $0x102] ss:$-24 sm:$0x7] %vm3_vm0, %v379_v42  }
  0xd0   :  { %597 = vst.msk [vmem:[%s1267_s1 + $0x42] ss:$-24 sm:$0x7] %vm3_vm0, %v366_v50  }
  0xd1   :  { %598 = vst.msk [vmem:[%s1267_s1 - $0x7e] ss:$72 sm:$0x18] %vm3_vm0, %v366_v50  }
  0xd2   :  { %599 = vst.msk [vmem:[%s1267_s1 + $0x102] ss:$-24 sm:$0x60] %vm3_vm0, %v366_v50  }
  0xd3   :  { %600 = vst.msk [vmem:[%s1267_s1 + $0xb3] sm:$0x80] %vm3_vm0, %v366_v50  }
  0xd4   :  { %v385_v52 = vpop.permute.xlu0 %384   ;;  %609 = vst.msk [vmem:[%s1267_s1 + $0x44] ss:$-24 sm:$0x7] %vm3_vm0, %v404_v45   ;;  %v398_v53 = vpop.permute.xlu1 %397  }
  0xd5   :  { %603 = vst.msk [vmem:[%s1267_s1 + $0x43] ss:$-24 sm:$0x7] %vm3_vm0, %v385_v52  }
  0xd6   :  { %604 = vst.msk [vmem:[%s1267_s1 - $0x7d] ss:$72 sm:$0x18] %vm3_vm0, %v385_v52  }
  0xd7   :  { %605 = vst.msk [vmem:[%s1267_s1 + $0x103] ss:$-24 sm:$0x60] %vm3_vm0, %v385_v52  }
  0xd8   :  { %606 = vst.msk [vmem:[%s1267_s1 + $0xb4] sm:$0x80] %vm3_vm0, %v385_v52  }
  0xd9   :  { %610 = vst.msk [vmem:[%s1267_s1 - $0x7c] ss:$72 sm:$0x18] %vm3_vm0, %v404_v45  }
  0xda   :  { %611 = vst.msk [vmem:[%s1267_s1 + $0x104] ss:$-24 sm:$0x60] %vm3_vm0, %v404_v45  }
  0xdb   :  { %612 = vst.msk [vmem:[%s1267_s1 + $0xb5] sm:$0x80] %vm3_vm0, %v404_v45  }
  0xdc   :  { %608 = vst.msk [vmem:[%s1267_s1 + $0x103] ss:$-24 sm:$0x7] %vm3_vm0, %v398_v53   ;;  %v417_v54 = vpop.permute.xlu0 %416   ;;  %v423_v55 = vpop.permute.xlu1 %422  }
  0xdd   :  { %614 = vst.msk [vmem:[%s1267_s1 + $0x104] ss:$-24 sm:$0x7] %vm3_vm0, %v417_v54  }
  0xde   :  { %620 = vst.msk [vmem:[%s1267_s1 + $0x105] ss:$-24 sm:$0x7] %vm3_vm0, %v436_v48  }
  0xdf   :  { %615 = vst.msk [vmem:[%s1267_s1 + $0x45] ss:$-24 sm:$0x7] %vm3_vm0, %v423_v55  }
  0xe0   :  { %616 = vst.msk [vmem:[%s1267_s1 - $0x7b] ss:$72 sm:$0x18] %vm3_vm0, %v423_v55  }
  0xe1   :  { %617 = vst.msk [vmem:[%s1267_s1 + $0x105] ss:$-24 sm:$0x60] %vm3_vm0, %v423_v55  }
  0xe2   :  { %618 = vst.msk [vmem:[%s1267_s1 + $0xb6] sm:$0x80] %vm3_vm0, %v423_v55  }
  0xe3   :  { %627 = vst.msk [vmem:[%s1267_s1 + $0x47] ss:$-24 sm:$0x7] %vm3_vm0, %v461_v51  }
  0xe4   :  { %v442_v56 = vpop.permute.xlu0 %441   ;;  %628 = vst.msk [vmem:[%s1267_s1 - $0x79] ss:$72 sm:$0x18] %vm3_vm0, %v461_v51   ;;  %v455_v57 = vpop.permute.xlu1 %454  }
  0xe5   :  { %621 = vst.msk [vmem:[%s1267_s1 + $0x46] ss:$-24 sm:$0x7] %vm3_vm0, %v442_v56  }
  0xe6   :  { %622 = vst.msk [vmem:[%s1267_s1 - $0x7a] ss:$72 sm:$0x18] %vm3_vm0, %v442_v56  }
  0xe7   :  { %623 = vst.msk [vmem:[%s1267_s1 + $0x106] ss:$-24 sm:$0x60] %vm3_vm0, %v442_v56  }
  0xe8   :  { %624 = vst.msk [vmem:[%s1267_s1 + $0xb7] sm:$0x80] %vm3_vm0, %v442_v56  }
  0xe9   :  { %629 = vst.msk [vmem:[%s1267_s1 + $0x107] ss:$-24 sm:$0x60] %vm3_vm0, %v461_v51  }
  0xea   :  { %630 = vst.msk [vmem:[%s1267_s1 + $0xb8] sm:$0x80] %vm3_vm0, %v461_v51  }
  0xeb   :  { %626 = vst.msk [vmem:[%s1267_s1 + $0x106] ss:$-24 sm:$0x7] %vm3_vm0, %v455_v57  }
  0xec   :  { %v474_v59 = vpop.permute.xlu0 %473  }
  0xed   :  { %632 = vst.msk [vmem:[%s1267_s1 + $0x107] ss:$-24 sm:$0x7] %vm3_vm0, %v474_v59  }

// kernel: double_conv.1
= control target key start
LH: loop header
LB: loop body
LE: loop exit
PB: predicated region body
PF: predicated region fallthrough
CT: control target
= control target key end

     0   :  { %s7557_s27 = smov 0   ;;  %s7559_s28 = smov 0   ;;  %s10184_s0 = inlined_call_operand.vmem [shape: bf16[1056,128], index: 0, kind: input, shape index: {}]   ;;  %s10185_s1 = inlined_call_operand.vmem [shape: bf16[9,128,128], index: 1, kind: input, shape index: {}]   ;;  %s10186_s2 = inlined_call_operand.vmem [shape: f32[1,128], index: 2, kind: input, shape index: {}]   ;;  %s10187_s3 = inlined_call_operand.vmem [shape: f32[1,128], index: 3, kind: input, shape index: {}]   ;;  %s10188_s4 = inlined_call_operand.vmem [shape: bf16[9,128,128], index: 4, kind: input, shape index: {}]   ;;  %s10189_s5 = inlined_call_operand.vmem [shape: f32[1,128], index: 5, kind: input, shape index: {}]   ;;  %s10190_s6 = inlined_call_operand.vmem [shape: f32[1,128], index: 6, kind: input, shape index: {}]   ;;  %s10191_s7 = inlined_call_operand.vmem [shape: f32[264,1], index: 7, kind: input, shape index: {}]   ;;  %s10192_s8 = inlined_call_operand.vmem [shape: bf16[768,128], index: 8, kind: output, shape index: {}]  }
   0x1   :  { %s7561_s29 = smov 0   ;;  %s7563_s30 = smov 0  }
   0x2   :  { %s7565_s9 = smov 0  }
   0x3 LB: > { %s27_s10 = sadd.s32 1, %s7501_s29  ;;  %s30_s11 = sadd.s32 1, %s7505_s30  ;;  %s7509_s9 = sphi %s7565_s9, %s18_s9   ;;  %s7505_s30 = sphi %s7563_s30, %s10370_s30   ;;  %s7501_s29 = sphi %s7561_s29, %s10369_s29   ;;  %s7497_s28 = sphi %s7559_s28, %s10368_s28   ;;  %s7493_s27 = sphi %s7557_s27, %s10367_s27  }
   0x4   : > { %p28_p0 = scmp.ge.s32.totalorder %s27_s10, 2  ;;  %p5917_p1 = scmp.ge.s32.totalorder %s7509_s9, 1 }
   0x5   : > { %p244_p2 = scmp.lt.s32.totalorder %s7509_s9, 5 }
   0x6   : > { %s10372_s10 = smov (%p28_p0, %s27_s10), 0  ;;  %s10374_s11 = smov (!%p28_p0, %s30_s11), %s7505_s30 }
   0x7   : > { %p245_p3 = pnand %p5917_p1, %p244_p2  ;;  %p32_p4 = scmp.ge.s32.totalorder %s10374_s11, 2 }
   0x9   : > { %s10376_s11 = smov (%p32_p4, %s10374_s11), 0  ;;  %248 = sbr.rel (%p245_p3) target bundleno = 1551 (0x60f), region = 48 }
   0xe   : > { %s5918_s12 = sshll.u32 %s7497_s28, 1  ;;  %p5920_p6 = scmp.ne.s32.totalorder %s7493_s27, 0 }
   0xf   : > { %s274_s13 = sadd.s32 %s7493_s27, %s5918_s12  ;;  %s287_s19 = smul.u32 (!%p5920_p6), 528, %s7497_s28 }
  0x10   : > { %s275_s14 = smul.u32 24, %s274_s13 }
  0x11   : > { %s288_s20 = sshra.s32 (!%p5920_p6), %s287_s19, 3 }
  0x12   : > { %p276_p5 = scmp.lt.s32.totalorder %s275_s14, 95  ;;  %286 = sbr.rel (%p5920_p6) target bundleno = 46 (0x2e), region = 52 }
  0x13   : > { %s5921_s21 = sshll.u32 (!%p5920_p6), %s288_s20, 2 }
  0x14   : > { %s10378_s14 = smov (!%p276_p5, %s275_s14), 95  ;;  %s7603_s24 = scalar_lea.vmem (!%p5920_p6), %s10184_s0, %s5921_s21 }
  0x15   : > { %s5919_s15 = sshll.u32 %s10378_s14, 2 }
  0x16   : > { %s7596_s18 = scalar_lea.vmem %s10192_s8, %s5919_s15 }
  0x17   : > { %v302_v0 = vld [vmem:[%s7603_s24] sm:$0xff]  ;;  %v304_v1 = vld [vmem:[%s7603_s24 + $0x8] sm:$0xff]  ;;  %v306_v2 = vld [vmem:[%s7603_s24 + $0x10] sm:$0xff] }
  0x18   : > { %303 = vst [vmem:[#allocation2] sm:$0xff] %v302_v0  ;;  %v308_v3 = vld [vmem:[%s7603_s24 + $0x18] sm:$0xff]  ;;  %v310_v4 = vld [vmem:[%s7603_s24 + $0x20] sm:$0xff]  ;;  %v312_v5 = vld [vmem:[%s7603_s24 + $0x28] sm:$0xff] }
  0x19   : > { %305 = vst [vmem:[#allocation2 + $0x8] sm:$0xff] %v304_v1  ;;  %v314_v6 = vld [vmem:[%s7603_s24 + $0x30] sm:$0xff]  ;;  %v316_v7 = vld [vmem:[%s7603_s24 + $0x38] sm:$0xff]  ;;  %v318_v8 = vld [vmem:[%s7603_s24 + $0x40] sm:$0xff] }
  0x1a   : > { %307 = vst [vmem:[#allocation2 + $0x10] sm:$0xff] %v306_v2  ;;  %v320_v9 = vld [vmem:[%s7603_s24 + $0x48] sm:$0xff]  ;;  %v322_v10 = vld [vmem:[%s7603_s24 + $0x50] sm:$0xff]  ;;  %v324_v11 = vld [vmem:[%s7603_s24 + $0x58] sm:$0xff] }
  0x1b   : > { %309 = vst [vmem:[#allocation2 + $0x18] sm:$0xff] %v308_v3  ;;  %v326_v12 = vld [vmem:[%s7603_s24 + $0x60] sm:$0xff]  ;;  %v328_v13 = vld [vmem:[%s7603_s24 + $0x68] sm:$0xff]  ;;  %v330_v14 = vld [vmem:[%s7603_s24 + $0x70] sm:$0xff] }
  0x1c   : > { %311 = vst [vmem:[#allocation2 + $0x20] sm:$0xff] %v310_v4  ;;  %v332_v15 = vld [vmem:[%s7603_s24 + $0x78] sm:$0xff]  ;;  %v334_v16 = vld [vmem:[%s7603_s24 + $0x80] sm:$0xff]  ;;  %v336_v17 = vld [vmem:[%s7603_s24 + $0x88] sm:$0xff] }
  0x1d   : > { %313 = vst [vmem:[#allocation2 + $0x28] sm:$0xff] %v312_v5  ;;  %v338_v18 = vld [vmem:[%s7603_s24 + $0x90] sm:$0xff]  ;;  %v340_v19 = vld [vmem:[%s7603_s24 + $0x98] sm:$0xff]  ;;  %v342_v20 = vld [vmem:[%s7603_s24 + $0xa0] sm:$0xff] }
  0x1e   : > { %315 = vst [vmem:[#allocation2 + $0x30] sm:$0xff] %v314_v6 }
  0x1f   : > { %317 = vst [vmem:[#allocation2 + $0x38] sm:$0xff] %v316_v7 }
  0x20   : > { %319 = vst [vmem:[#allocation2 + $0x40] sm:$0xff] %v318_v8 }
  0x21   : > { %321 = vst [vmem:[#allocation2 + $0x48] sm:$0xff] %v320_v9 }
  0x22   : > { %323 = vst [vmem:[#allocation2 + $0x50] sm:$0xff] %v322_v10 }
  0x23   : > { %325 = vst [vmem:[#allocation2 + $0x58] sm:$0xff] %v324_v11 }
  0x24   : > { %327 = vst [vmem:[#allocation2 + $0x60] sm:$0xff] %v326_v12 }
  0x25   : > { %329 = vst [vmem:[#allocation2 + $0x68] sm:$0xff] %v328_v13 }
  0x26   : > { %331 = vst [vmem:[#allocation2 + $0x70] sm:$0xff] %v330_v14 }
  0x27   : > { %333 = vst [vmem:[#allocation2 + $0x78] sm:$0xff] %v332_v15 }
  0x28   : > { %335 = vst [vmem:[#allocation2 + $0x80] sm:$0xff] %v334_v16 }
  0x29   : > { %337 = vst [vmem:[#allocation2 + $0x88] sm:$0xff] %v336_v17 }
  0x2a   : > { %339 = vst [vmem:[#allocation2 + $0x90] sm:$0xff] %v338_v18 }
  0x2b   : > { %341 = vst [vmem:[#allocation2 + $0x98] sm:$0xff] %v340_v19 }
  0x2c   : > { %343 = vst [vmem:[#allocation2 + $0xa0] sm:$0xff] %v342_v20 }
  0x2d   : > { %349 = vsyncadd [#allocation3], 2688 }
  0x2e PF: > { %s350_s25 = sadd.s32 1, %s7493_s27 }
  0x2f   : > { %p5922_p7 = scmp.ge.s32.totalorder %s350_s25, 2 }
  0x30   : > { %p355_p8 = scmp.lt.s32.totalorder (!%p5922_p7), %s350_s25, 0  ;;  %s356_s26 = ssub.s32 (!%p5922_p7), 0, %s350_s25 }
  0x31   : > { %354 = sbr.rel (%p5922_p7) target bundleno = 85 (0x55), region = 75  ;;  %s5923_s12 = smin.u32 (!%p5922_p7), %s356_s26, %s350_s25 }
  0x32   : > { %p367_p9 = scmp.lt.s32.totalorder (!%p5922_p7), %s350_s25, 1  ;;  %s358_s13 = sand.u32 (!%p5922_p7), 1, %s5923_s12  }
  0x33   : > { %s359_s14 = ssub.s32 (!%p5922_p7), 0, %s358_s13  ;;  %s369_s15 = smul.u32 (!%p5922_p7), 528, %s7497_s28 }
  0x36   : > { %s10380_s14 = smov (!%p355_p8, %s359_s14), %s358_s13  ;;  %s10382_s25 = smov (!%p367_p9, %s350_s25), 1 }
  0x37   : > { %p5925_p10 = scmp.lt.s32.totalorder %s10380_s14, 0  ;;  %s365_s16 = sadd.s32 2, %s10380_s14 }
  0x38   : > { %s370_s17 = smul.u32 192, %s10382_s25 }
  0x39   : > { %s10384_s16 = smov (!%p5925_p10, %s365_s16), %s10380_s14 }
  0x3a   : > { %s371_s19 = sadd.s32 %s370_s17, %s369_s15  ;;  %s7085_s21 = smul.u32 168, %s10384_s16 }
  0x3b   : > { %s372_s20 = sshra.s32 %s371_s19, 3  ;;  %s379_s25 = scalar_lea.sflag [#allocation3], %s10384_s16 }
  0x3c   : > { %s5926_s22 = sshll.u32 %s372_s20, 2  ;;  %s7639_s28 = scalar_lea.vmem [#allocation2], %s7085_s21 }
  0x3d   : > { %s7634_s26 = scalar_lea.vmem %s10184_s0, %s5926_s22 }
  0x3e   : > { %v390_v21 = vld [vmem:[%s7634_s26] sm:$0xff]  ;;  %v392_v22 = vld [vmem:[%s7634_s26 + $0x8] sm:$0xff]  ;;  %v394_v23 = vld [vmem:[%s7634_s26 + $0x10] sm:$0xff] }
  0x3f   : > { %391 = vst [vmem:[%s7639_s28] sm:$0xff] %v390_v21  ;;  %v396_v24 = vld [vmem:[%s7634_s26 + $0x18] sm:$0xff]  ;;  %v398_v25 = vld [vmem:[%s7634_s26 + $0x20] sm:$0xff]  ;;  %v400_v26 = vld [vmem:[%s7634_s26 + $0x28] sm:$0xff] }
  0x40   : > { %393 = vst [vmem:[%s7639_s28 + $0x8] sm:$0xff] %v392_v22  ;;  %v402_v27 = vld [vmem:[%s7634_s26 + $0x30] sm:$0xff]  ;;  %v404_v28 = vld [vmem:[%s7634_s26 + $0x38] sm:$0xff]  ;;  %v406_v29 = vld [vmem:[%s7634_s26 + $0x40] sm:$0xff] }
  0x41   : > { %395 = vst [vmem:[%s7639_s28 + $0x10] sm:$0xff] %v394_v23  ;;  %v408_v30 = vld [vmem:[%s7634_s26 + $0x48] sm:$0xff]  ;;  %v410_v31 = vld [vmem:[%s7634_s26 + $0x50] sm:$0xff]  ;;  %v412_v32 = vld [vmem:[%s7634_s26 + $0x58] sm:$0xff] }
  0x42   : > { %397 = vst [vmem:[%s7639_s28 + $0x18] sm:$0xff] %v396_v24  ;;  %v414_v33 = vld [vmem:[%s7634_s26 + $0x60] sm:$0xff]  ;;  %v416_v34 = vld [vmem:[%s7634_s26 + $0x68] sm:$0xff]  ;;  %v418_v35 = vld [vmem:[%s7634_s26 + $0x70] sm:$0xff] }
  0x43   : > { %399 = vst [vmem:[%s7639_s28 + $0x20] sm:$0xff] %v398_v25  ;;  %v420_v36 = vld [vmem:[%s7634_s26 + $0x78] sm:$0xff]  ;;  %v422_v37 = vld [vmem:[%s7634_s26 + $0x80] sm:$0xff]  ;;  %v424_v38 = vld [vmem:[%s7634_s26 + $0x88] sm:$0xff] }
  0x44   : > { %401 = vst [vmem:[%s7639_s28 + $0x28] sm:$0xff] %v400_v26  ;;  %v426_v39 = vld [vmem:[%s7634_s26 + $0x90] sm:$0xff]  ;;  %v428_v40 = vld [vmem:[%s7634_s26 + $0x98] sm:$0xff]  ;;  %v430_v41 = vld [vmem:[%s7634_s26 + $0xa0] sm:$0xff] }
  0x45   : > { %403 = vst [vmem:[%s7639_s28 + $0x30] sm:$0xff] %v402_v27 }
  0x46   : > { %405 = vst [vmem:[%s7639_s28 + $0x38] sm:$0xff] %v404_v28 }
  0x47   : > { %407 = vst [vmem:[%s7639_s28 + $0x40] sm:$0xff] %v406_v29 }
  0x48   : > { %409 = vst [vmem:[%s7639_s28 + $0x48] sm:$0xff] %v408_v30 }
  0x49   : > { %411 = vst [vmem:[%s7639_s28 + $0x50] sm:$0xff] %v410_v31 }
  0x4a   : > { %413 = vst [vmem:[%s7639_s28 + $0x58] sm:$0xff] %v412_v32 }
  0x4b   : > { %415 = vst [vmem:[%s7639_s28 + $0x60] sm:$0xff] %v414_v33 }
  0x4c   : > { %417 = vst [vmem:[%s7639_s28 + $0x68] sm:$0xff] %v416_v34 }
  0x4d   : > { %419 = vst [vmem:[%s7639_s28 + $0x70] sm:$0xff] %v418_v35 }
  0x4e   : > { %421 = vst [vmem:[%s7639_s28 + $0x78] sm:$0xff] %v420_v36 }
  0x4f   : > { %423 = vst [vmem:[%s7639_s28 + $0x80] sm:$0xff] %v422_v37 }
  0x50   : > { %425 = vst [vmem:[%s7639_s28 + $0x88] sm:$0xff] %v424_v38 }
  0x51   : > { %427 = vst [vmem:[%s7639_s28 + $0x90] sm:$0xff] %v426_v39 }
  0x52   : > { %429 = vst [vmem:[%s7639_s28 + $0x98] sm:$0xff] %v428_v40 }
  0x53   : > { %431 = vst [vmem:[%s7639_s28 + $0xa0] sm:$0xff] %v430_v41 }
  0x54   : > { %437 = vsyncadd %s379_s25, 2688 }
  0x55 PF: > { %p438_p11 = scmp.lt.s32.totalorder %s7493_s27, 0  ;;  %s439_s12 = ssub.s32 0, %s7493_s27 }
  0x56   : > { %s5928_s13 = smin.u32 %s7493_s27, %s439_s12 }
  0x57   : > { %s441_s14 = sand.u32 1, %s5928_s13  }
  0x58   : > { %s442_s15 = ssub.s32 0, %s441_s14 }
  0x59   : > { %s10386_s15 = smov (!%p438_p11, %s442_s15), %s441_s14 }
  0x5a   : > { %p5930_p12 = scmp.lt.s32.totalorder %s10386_s15, 0  ;;  %s448_s17 = sadd.s32 2, %s10386_s15 }
  0x5c   : > { %s10388_s17 = smov (!%p5930_p12, %s448_s17), %s10386_s15 }
  0x5d   : > { %s7086_s19 = smul.u32 168, %s10388_s17  ;;  %s458_s21 = scalar_lea.sflag [#allocation3], %s10388_s17 }
  0x5f   : > { %s7684_s20 = scalar_lea.vmem [#allocation2], %s7086_s19 }
  0x60   : > { %7486 = dma.done.wait %s458_s21, 2688 }
  0x61   : > { %7487 = vsyncadd %s458_s21, 4294964608  ;;  %v7117_v42 = vld [vmem:[%s10185_s1 + $0x78] sm:$0xff]  ;;  %v7116_v45 = vld [vmem:[%s10185_s1 + $0x70] sm:$0xff]  ;;  %vm615_vm0 = vsmask.f32 7424  ;;  %vm1085_vm1 = vcmask 1046528  }
  0x62   : > { %v7109_v43 = vld [vmem:[%s10185_s1 + $0x38] sm:$0xff]  ;;  %816 = vmatpush.bf16.msra.mxu0 %v7117_v42  ;;  %v7108_v46 = vld [vmem:[%s10185_s1 + $0x30] sm:$0xff]  ;;  %v7115_v48 = vld [vmem:[%s10185_s1 + $0x68] sm:$0xff]  ;;  %s6664_s15 = sshll.u32 %s7493_s27, 3 }
  0x63   : > { %v7695_v44 = vld [vmem:[%s10185_s1 + $0xb8] sm:$0xff]  ;;  %973 = vmatpush.bf16.msra.mxu1 %v7109_v43  ;;  %7396 = vmatpush.bf16.msra.mxu3 %v7109_v43  ;;  %v7707_v47 = vld [vmem:[%s10185_s1 + $0xb0] sm:$0xff]  ;;  %v7107_v49 = vld [vmem:[%s10185_s1 + $0x28] sm:$0xff]  ;;  %s3478_s17 = ssub.s32 1, %s6664_s15  ;;  %s3480_s19 = ssub.s32 17, %s6664_s15 }
  0x64   : > { %1184 = vmatpush.bf16.msra.mxu2 %v7695_v44  ;;  %v7719_v50 = vld [vmem:[%s10185_s1 + $0xa8] sm:$0xff]  ;;  %v7114_v51 = vld [vmem:[%s10185_s1 + $0x60] sm:$0xff]  ;;  %v7113_v54 = vld [vmem:[%s10185_s1 + $0x58] sm:$0xff]  ;;  %s3479_s27 = smul.u32 24, %s3478_s17 }
  0x65   : > { %v7106_v52 = vld [vmem:[%s10185_s1 + $0x20] sm:$0xff]  ;;  %v7105_v55 = vld [vmem:[%s10185_s1 + $0x18] sm:$0xff]  ;;  %v7112_v58 = vld [vmem:[%s10185_s1 + $0x50] sm:$0xff]  ;;  %s3481_s21 = smul.u32 24, %s3480_s19 }
  0x66   : > { %817 = vmatpush.bf16.msra.mxu0 %v7116_v45  ;;  %v7731_v53 = vld [vmem:[%s10185_s1 + $0xa0] sm:$0xff]  ;;  %v7743_v56 = vld [vmem:[%s10185_s1 + $0x98] sm:$0xff]  ;;  %v7104_v59 = vld [vmem:[%s10185_s1 + $0x10] sm:$0xff] }
  0x67   : > { %974 = vmatpush.bf16.msra.mxu1 %v7108_v46  ;;  %7397 = vmatpush.bf16.msra.mxu3 %v7108_v46  ;;  %v7311_v57 = vld [vmem:[%s7684_s20] sm:$0xff]   ;;  %v7087_v60 = vld [vmem:[%s7684_s20 + $0x8] sm:$0xff]  ;;  %v7173_v15 = vld [vmem:[%s10185_s1 + $0x138] sm:$0xff] }
  0x68   : > { %1185 = vmatpush.bf16.msra.mxu2 %v7707_v47  ;;  %v619_v61 = vshll.u32 %v7311_v57, 16  ;;  %v7120_v62 = vld [vmem:[%s10185_s1 + $0x90] sm:$0xff]  ;;  %v7378_v63 = vld [vmem:[%s7684_s20] sm:$0xf0]  ;;  %v7379_v0 = vld [vmem:[%s7684_s20] sm:$0xe] }
  0x69   : > { %v7111_v1 = vld [vmem:[%s10185_s1 + $0x48] sm:$0xff]  ;;  %v617_v3 = vshrl.u32 %v7311_v57, 16  ;;  %v624_v5 = vshll.u32 %v7087_v60, 16  ;;  %v7380_v7 = vor.u32 %v7379_v0, %v7378_v63  ;;  %v7110_v8 = vld [vmem:[%s10185_s1 + $0x40] sm:$0xff]  ;;  %v1087_v14 = vrot.slane %v7087_v60, 1  ;;  %v7088_v19 = vld [vmem:[%s7684_s20 + $0x10] sm:$0xff] }
  0x6a   : > { %818 = vmatpush.bf16.msra.mxu0 %v7115_v48  ;;  %v7103_v2 = vld [vmem:[%s10185_s1 + $0x8] sm:$0xff]  ;;  %v621_v4 = vrot.slane %v619_v61, 1  ;;  %v7102_v9 = vld [vmem:[%s10185_s1] sm:$0xff]  ;;  %v7172_v20 = vld [vmem:[%s10185_s1 + $0x130] sm:$0xff]  ;;  %v628_v21 = vshrl.u32 %v7087_v60, 16  ;;  %v632_v22 = vshll.u32 %v7088_v19, 16 }
  0x6b   : > { %975 = vmatpush.bf16.msra.mxu1 %v7107_v49  ;;  %7398 = vmatpush.bf16.msra.mxu3 %v7107_v49  ;;  %v7119_v6 = vld [vmem:[%s10185_s1 + $0x88] sm:$0xff]  ;;  %v626_v11 = vrot.slane %v624_v5, 1  ;;  %v7118_v12 = vld [vmem:[%s10185_s1 + $0x80] sm:$0xff]  ;;  %v1086_v13 = vrot.slane %v7380_v7, 1  ;;  %v1089_v25 = vrot.slane %v7088_v19, 1  ;;  %v7796_v27 = vld [vmem:[%s7684_s20 + $0x70] sm:$0xff] }
  0x6c   : > { %1186 = vmatpush.bf16.msra.mxu2 %v7719_v50  ;;  %v622_v10 = vor.u32 %v621_v4, %v617_v3  ;;  %v7782_v17 = vld [vmem:[%s7684_s20 + $0x68] sm:$0xff]  ;;  %v634_v24 = vrot.slane %v632_v22, 1  ;;  %v7089_v29 = vld [vmem:[%s7684_s20 + $0x18] sm:$0xff]  ;;  %v636_v30 = vshrl.u32 %v7088_v19, 16  ;;  %v7090_v38 = vld [vmem:[%s7684_s20 + $0x20] sm:$0xff] }
  0x6d   : > { %v1088_v18 = vsel %vm1085_vm1, %v1086_v13, %v1087_v14  ;;  %v630_v23 = vor.u32 %v628_v21, %v626_v11  ;;  %v1090_v28 = vsel %vm1085_vm1, %v1087_v14, %v1089_v25  ;;  %v640_v31 = vshll.u32 %v7089_v29, 16  ;;  %v7804_v36 = vld [vmem:[%s7684_s20 + $0x78] sm:$0xff]  ;;  %v7171_v39 = vld [vmem:[%s10185_s1 + $0x128] sm:$0xff]  ;;  %v7148_v0 = vld [vmem:[%s10185_s1 + $0xf0] sm:$0xff] }
  0x6e   : > { %819 = vmatpush.bf16.msra.mxu0 %v7114_v51  ;;  %v627_v16 = vsel %vm615_vm0, %v622_v10, %v626_v11  ;;  %v638_v32 = vor.u32 %v636_v30, %v634_v24  ;;  %v1091_v34 = vrot.slane %v7089_v29, 1  ;;  %v644_v40 = vshrl.u32 %v7089_v29, 16  ;;  %v495_v42 = vld [vmem:[%s7684_s20 + $0x80] sm:$0xf]  ;;  %v7149_v61 = vld [vmem:[%s10185_s1 + $0xf8] sm:$0xff] }
  0x6f   : > { %976 = vmatpush.bf16.msra.mxu1 %v7106_v52  ;;  %7399 = vmatpush.bf16.msra.mxu3 %v7106_v52  ;;  %v635_v26 = vsel %vm615_vm0, %v630_v23, %v634_v24  ;;  %v642_v33 = vrot.slane %v640_v31, 1  ;;  %v648_v41 = vshll.u32 %v7090_v38, 16  ;;  %v596_v45 = vunpack.c.l.b16 %v495_v42  ;;  %v7170_v63 = vld [vmem:[%s10185_s1 + $0x120] sm:$0xff]  ;;  %v7147_v3 = vld [vmem:[%s10185_s1 + $0xe8] sm:$0xff]  ;;  %v7145_v13 = vld [vmem:[%s10185_s1 + $0xd8] sm:$0xff] }
  0x70   : > { %1187 = vmatpush.bf16.msra.mxu2 %v7731_v53  ;;  %v1092_v37 = vsel %vm1085_vm1, %v1089_v25, %v1091_v34  ;;  %v1093_v46 = vrot.slane %v7090_v38, 1  ;;  %v652_v51 = vshrl.u32 %v7090_v38, 16  ;;  %v1115_v7 = vrot.slane %v7804_v36, 1  ;;  %v7093_v14 = vld [vmem:[%s7684_s20 + $0x38] sm:$0xff]  ;;  %v7143_v21 = vld [vmem:[%s10185_s1 + $0xc8] sm:$0xff] }
  0x71   : > { %v643_v35 = vsel %vm615_vm0, %v638_v32, %v642_v33  ;;  %v646_v43 = vor.u32 %v644_v40, %v642_v33  ;;  %v907_v48 = vpack.c.b16 %v596_v45, %v596_v45  ;;  %v1099_v24 = vrot.slane %v7093_v14, 1  ;;  %v7094_v31 = vld [vmem:[%s7684_s20 + $0x40] sm:$0xff] }
  0x72   : > { %820 = vmatpush.bf16.msra.mxu0 %v7113_v54  ;;  %v1094_v49 = vsel %vm1085_vm1, %v1091_v34, %v1093_v46  ;;  %v676_v32 = vshrl.u32 %v7093_v14, 16  ;;  %v680_v33 = vshll.u32 %v7094_v31, 16  ;;  %v7169_v34 = vld [vmem:[%s10185_s1 + $0x118] sm:$0xff]  ;;  %v684_v42 = vshrl.u32 %v7094_v31, 16 }
  0x73   : > { %977 = vmatpush.bf16.msra.mxu1 %v7105_v55  ;;  %7400 = vmatpush.bf16.msra.mxu3 %v7105_v55 }
  0x74   : > { %1188 = vmatpush.bf16.msra.mxu2 %v7743_v56 }
  0x76   : > { %821 = vmatpush.bf16.msra.mxu0 %v7112_v58 }
  0x77   : > { %978 = vmatpush.bf16.msra.mxu1 %v7104_v59  ;;  %7401 = vmatpush.bf16.msra.mxu3 %v7104_v59 }
  0x78   : > { %1189 = vmatpush.bf16.msra.mxu2 %v7120_v62 }
  0x7a   : > { %822 = vmatpush.bf16.msra.mxu0 %v7111_v1 }
  0x7b   : > { %979 = vmatpush.bf16.msra.mxu1 %v7103_v2  ;;  %7402 = vmatpush.bf16.msra.mxu3 %v7103_v2 }
  0x7c   : > { %1190 = vmatpush.bf16.msra.mxu2 %v7119_v6 }
  0x7e   : > { %823 = vmatpush.bf16.msra.mxu0 %v7110_v8  ;;  %v7146_v8 = vld [vmem:[%s10185_s1 + $0xe0] sm:$0xff] }
  0x7f   : > { %980 = vmatpush.bf16.msra.mxu1 %v7102_v9  ;;  %7403 = vmatpush.bf16.msra.mxu3 %v7102_v9 }
  0x80   : > { %1191 = vmatpush.bf16.msra.mxu2 %v7118_v12 }
  0x81   : > { %824 = vmatmul.bf16.vlgmr.msra.gmra.mxu0 %v627_v16  ;;  %v7144_v16 = vld [vmem:[%s10185_s1 + $0xd0] sm:$0xff] }
  0x82   : > { %1962 = vmatpush.bf16.msrb.mxu0 %v7173_v15  ;;  %981 = vmatmul.bf16.vlgmr.msra.gmra.mxu1 %v7311_v57  ;;  %v1113_v57 = vrot.slane %v7796_v27, 1 }
  0x83   : > { %7404 = vmatpush.bf16.msrb.mxu3 %v7695_v44  ;;  %1192 = vmatmul.bf16.vlgmr.msra.gmra.mxu2 %v1088_v18  ;;  %v650_v44 = vrot.slane %v648_v41, 1  ;;  %v7095_v41 = vld [vmem:[%s7684_s20 + $0x48] sm:$0xff] }
  0x84   : > { %1046 = vmatmul.bf16.vlgmr.msra.gmra.mxu3 %v7782_v17  ;;  %v1116_v11 = vsel %vm1085_vm1, %v1113_v57, %v1115_v7 }
  0x86   : > { %1963 = vmatpush.bf16.msrb.mxu0 %v7172_v20 }
  0x87   : > { %7405 = vmatpush.bf16.msrb.mxu3 %v7707_v47  ;;  %v651_v47 = vsel %vm615_vm0, %v646_v43, %v650_v44  ;;  %v688_v43 = vshll.u32 %v7095_v41, 16 }
  0x8a   : > { %1964 = vmatpush.bf16.msrb.mxu0 %v7171_v39 }
  0x8b   : > { %7406 = vmatpush.bf16.msrb.mxu3 %v7719_v50  ;;  %v7091_v50 = vld [vmem:[%s7684_s20 + $0x28] sm:$0xff] }
  0x8c   : > { %v656_v52 = vshll.u32 %v7091_v50, 16  ;;  %v1095_v55 = vrot.slane %v7091_v50, 1  ;;  %v660_v1 = vshrl.u32 %v7091_v50, 16 }
  0x8e   : > { %v658_v54 = vrot.slane %v656_v52, 1  ;;  %v1096_v59 = vsel %vm1085_vm1, %v1093_v46, %v1095_v55  ;;  %1965 = vmatpush.bf16.msrb.mxu0 %v7170_v63  ;;  %v1103_v46 = vrot.slane %v7095_v41, 1  ;;  %v7168_v63 = vld [vmem:[%s10185_s1 + $0x110] sm:$0xff] }
  0x8f   : > { %7407 = vmatpush.bf16.msrb.mxu3 %v7731_v53  ;;  %v654_v53 = vor.u32 %v652_v51, %v650_v44 }
  0x90   : > { %v662_v4 = vor.u32 %v660_v1, %v658_v54 }
  0x91   : > { %829 = vmatmul.bf16.gmra.mxu0 %v635_v26  ;;  %v659_v58 = vsel %vm615_vm0, %v654_v53, %v658_v54  ;;  %v7142_v26 = vld [vmem:[%s10185_s1 + $0xc0] sm:$0xff]  ;;  %v7096_v53 = vld [vmem:[%s7684_s20 + $0x50] sm:$0xff] }
  0x92   : > { %986 = vmatmul.bf16.gmra.mxu1 %v7087_v60  ;;  %1966 = vmatpush.bf16.msrb.mxu0 %v7169_v34  ;;  %v7098_v34 = vld [vmem:[%s7684_s20 + $0x60] sm:$0xff] }
  0x93   : > { %7408 = vmatpush.bf16.msrb.mxu3 %v7743_v56  ;;  %1197 = vmatmul.bf16.gmra.mxu2 %v1090_v28  ;;  %v1111_v56 = vrot.slane %v7782_v17, 1 }
  0x94   : > { %1051 = vmatmul.bf16.gmra.mxu3 %v7796_v27 }
  0x95   : > { %v1114_v60 = vsel %vm1085_vm1, %v1111_v56, %v1113_v57 }
  0x96   : > { %1967 = vmatpush.bf16.msrb.mxu0 %v7168_v63  ;;  %v716_v63 = vshrl.u32 %v7098_v34, 16 }
  0x97   : > { %7409 = vmatpush.bf16.msrb.mxu3 %v7120_v62  ;;  %v7092_v62 = vld [vmem:[%s7684_s20 + $0x30] sm:$0xff] }
  0x98   : > { %v664_v2 = vshll.u32 %v7092_v62, 16  ;;  %v668_v18 = vshrl.u32 %v7092_v62, 16 }
  0x9a   : > { %v666_v5 = vrot.slane %v664_v2, 1  ;;  %v1105_v2 = vrot.slane %v7096_v53, 1 }
  0x9b   : > { %7410 = vmatpush.bf16.msrb.mxu3 %v7119_v6  ;;  %v1097_v6 = vrot.slane %v7092_v62, 1 }
  0x9c   : > { %v667_v9 = vsel %vm615_vm0, %v662_v4, %v666_v5  ;;  %v670_v22 = vor.u32 %v668_v18, %v666_v5 }
  0x9d   : > { %v1098_v10 = vsel %vm1085_vm1, %v1095_v55, %v1097_v6 }
  0x9f   : > { %7411 = vmatpush.bf16.msrb.mxu3 %v7118_v12  ;;  %v512_v12 = vld [vmem:[%s7684_s20 + $0x84] sm:$0x1] }
  0xa0   : > { %v597_v15 = vunpack.c.l.b16 %v512_v12  ;;  %v7097_v12 = vld [vmem:[%s7684_s20 + $0x58] sm:$0xff] }
  0xa1   : > { %834 = vmatmul.bf16.gmra.mxu0 %v643_v35 }
  0xa2   : > { %991 = vmatmul.bf16.gmra.mxu1 %v7088_v19  ;;  %v672_v19 = vshll.u32 %v7093_v14, 16  ;;  %v7851_v20 = vpack.c.b16 %v597_v15, %v596_v45  ;;  %v690_v45 = vrot.slane %v688_v43, 1 }
  0xa3   : > { %1202 = vmatmul.bf16.gmra.mxu2 %v1092_v37  ;;  %1504 = vmatpush.bf16.msra.mxu3 %v7149_v61  ;;  %v682_v37 = vrot.slane %v680_v33, 1  ;;  %v696_v61 = vshll.u32 %v7096_v53, 16 }
  0xa4   : > { %1056 = vmatmul.bf16.gmra.mxu3 %v7804_v36  ;;  %v674_v23 = vrot.slane %v672_v19, 1  ;;  %v1117_v25 = vrot.slane %v7851_v20, 1  ;;  %v700_v19 = vshrl.u32 %v7096_v53, 16 }
  0xa5   : > { %v686_v44 = vor.u32 %v684_v42, %v682_v37  ;;  %v698_v1 = vrot.slane %v696_v61, 1  ;;  %v712_v42 = vshll.u32 %v7098_v34, 16 }
  0xa6   : > { %v675_v28 = vsel %vm615_vm0, %v670_v22, %v674_v23  ;;  %v1118_v30 = vsel %vm1085_vm1, %v1115_v7, %v1117_v25  ;;  %v678_v35 = vor.u32 %v676_v32, %v674_v23 }
  0xa7   : > { %1505 = vmatpush.bf16.msra.mxu3 %v7148_v0  ;;  %v702_v22 = vor.u32 %v700_v19, %v698_v1 }
  0xa8   : > { %v683_v39 = vsel %vm615_vm0, %v678_v35, %v682_v37 }
  0xab   : > { %1506 = vmatpush.bf16.msra.mxu3 %v7147_v3 }
  0xaf   : > { %1507 = vmatpush.bf16.msra.mxu3 %v7146_v8 }
  0xb1   : > { %839 = vmatmul.bf16.gmra.mxu0 %v651_v47 }
  0xb2   : > { %996 = vmatmul.bf16.gmra.mxu1 %v7089_v29  ;;  %v1100_v29 = vsel %vm1085_vm1, %v1097_v6, %v1099_v24 }
  0xb3   : > { %1207 = vmatmul.bf16.gmra.mxu2 %v1094_v49  ;;  %1508 = vmatpush.bf16.msra.mxu3 %v7145_v13  ;;  %v691_v49 = vsel %vm615_vm0, %v686_v44, %v690_v45  ;;  %v714_v44 = vrot.slane %v712_v42, 1 }
  0xb4   : > { %1060 = vmatmul.bf16.gmra.mxu3 %v907_v48 }
  0xb7   : > { %1509 = vmatpush.bf16.msra.mxu3 %v7144_v16 }
  0xbb   : > { %1510 = vmatpush.bf16.msra.mxu3 %v7143_v21  ;;  %v704_v21 = vshll.u32 %v7097_v12, 16 }
  0xbd   : > { %v706_v23 = vrot.slane %v704_v21, 1 }
  0xbf   : > { %1511 = vmatpush.bf16.msra.mxu3 %v7142_v26 }
  0xc1   : > { %844 = vmatmul.bf16.gmra.mxu0 %v659_v58 }
  0xc2   : > { %1001 = vmatmul.bf16.gmra.mxu1 %v7090_v38  ;;  %v1101_v38 = vrot.slane %v7094_v31, 1 }
  0xc3   : > { %1212 = vmatmul.bf16.gmra.mxu2 %v1096_v59 }
  0xc4   : > { %1257 = vmatmul.bf16.vlgmr.msrb.gmra.mxu3 %v1114_v60  ;;  %v1102_v40 = vsel %vm1085_vm1, %v1099_v24, %v1101_v38  ;;  %v1104_v52 = vsel %vm1085_vm1, %v1101_v38, %v1103_v46  ;;  %v692_v60 = vshrl.u32 %v7095_v41, 16  ;;  %v1107_v24 = vrot.slane %v7097_v12, 1 }
  0xc6   : > { %v694_v0 = vor.u32 %v692_v60, %v690_v45  ;;  %v1108_v33 = vsel %vm1085_vm1, %v1105_v2, %v1107_v24  ;;  %v1109_v45 = vrot.slane %v7098_v34, 1 }
  0xc8   : > { %v699_v8 = vsel %vm615_vm0, %v694_v0, %v698_v1  ;;  %v720_v0 = vshll.u32 %v7782_v17, 16  ;;  %v718_v1 = vor.u32 %v716_v63, %v714_v44  ;;  %v7179_v63 = vld [vmem:[%s10185_s1 + $0x168] sm:$0xff] }
  0xd1   : > { %849 = vmatmul.bf16.gmra.mxu0 %v667_v9  ;;  %v7127_v9 = vld [vmem:[%s7684_s20 + $0x14] sm:$0xff] }
  0xd2   : > { %1006 = vmatmul.bf16.gmra.mxu1 %v7091_v50  ;;  %v7126_v50 = vld [vmem:[%s7684_s20 + $0xc] sm:$0xff] }
  0xd3   : > { %1217 = vmatmul.bf16.gmra.mxu2 %v1098_v10 }
  0xd4   : > { %1262 = vmatmul.bf16.gmra.mxu3 %v1116_v11  ;;  %v1106_v11 = vsel %vm1085_vm1, %v1103_v46, %v1105_v2  ;;  %v722_v2 = vrot.slane %v720_v0, 1 }
  0xe1   : > { %854 = vmatmul.bf16.gmra.mxu0 %v675_v28 }
  0xe2   : > { %1011 = vmatmul.bf16.gmra.mxu1 %v7092_v62 }
  0xe3   : > { %1222 = vmatmul.bf16.gmra.mxu2 %v1100_v29 }
  0xe4   : > { %1267 = vmatmul.bf16.gmra.mxu3 %v1118_v30  ;;  %v707_v30 = vsel %vm615_vm0, %v702_v22, %v706_v23 }
  0xf1   : > { %859 = vmatmul.bf16.gmra.mxu0 %v683_v39 }
  0xf2   : > { %1016 = vmatmul.bf16.gmra.mxu1 %v7093_v14 }
  0xf3   : > { %1227 = vmatmul.bf16.gmra.mxu2 %v1102_v40 }
  0xf4   : > { %1271 = vmatmul.bf16.gmra.mxu3 %v1117_v25 }
  0xfe   : > { %v825_v47 = vpop.f32.mrf.mxu0 }
  0xff   : > { %v982_v48 = vpop.f32.mrf.mxu1 }
 0x100   : > { %v983_v51 = vadd.f32 %v982_v48, %v825_v47 }
 0x101   : > { %864 = vmatmul.bf16.gmra.mxu0 %v691_v49 }
 0x102   : > { %1021 = vmatmul.bf16.gmra.mxu1 %v7094_v31  ;;  %v7128_v31 = vld [vmem:[%s7684_s20 + $0x1c] sm:$0xff] }
 0x103   : > { %1232 = vmatmul.bf16.gmra.mxu2 %v1104_v52  ;;  %v7167_v52 = vld [vmem:[%s10185_s1 + $0x108] sm:$0xff] }
 0x104   : > { %1512 = vmatmul.bf16.vlgmr.msra.gmra.mxu3 %v7126_v50  ;;  %1968 = vmatpush.bf16.msrb.mxu0 %v7167_v52  ;;  %v736_v52 = vshll.u32 %v7804_v36, 16 }
 0x106   : > { %v1193_v55 = vpop.f32.mrf.mxu2  ;;  %v827_v58 = vpop.f32.mrf.mxu0 }
 0x107   : > { %v7874_v54 = vpop.f32.mrf.mxu3  ;;  %v7876_v57 = vadd.f32 %v1193_v55, %v983_v51  ;;  %v984_v59 = vpop.f32.mrf.mxu1  ;;  %v7129_v51 = vld [vmem:[%s7684_s20 + $0x24] sm:$0xff]  ;;  %v1110_v55 = vsel %vm1085_vm1, %v1107_v24, %v1109_v45  ;;  %v724_v24 = vshrl.u32 %v7782_v17, 16  ;;  %v7181_v17 = vld [vmem:[%s10185_s1 + $0x178] sm:$0xff] }
 0x108   : > { %v985_v62 = vadd.f32 %v984_v59, %v827_v58  ;;  %2203 = vmatpush.bf16.msrb.mxu1 %v7181_v17  ;;  %v7229_v17 = vld [vmem:[%s10185_s1 + $0x1f8] sm:$0xff] }
 0x109   : > { %2981 = vmatpush.bf16.msrb.mxu3 %v7229_v17  ;;  %v748_v17 = vshrl.u32 %v7851_v20, 16 }
 0x10e   : > { %v1195_v4 = vpop.f32.mrf.mxu2  ;;  %v830_v6 = vpop.f32.mrf.mxu0 }
 0x10f   : > { %v7881_v3 = vpop.f32.mrf.mxu3  ;;  %v7883_v5 = vadd.f32 %v1195_v4, %v985_v62  ;;  %v987_v7 = vpop.f32.mrf.mxu1 }
 0x110   : > { %v988_v10 = vadd.f32 %v987_v7, %v830_v6 }
 0x111   : > { %869 = vmatmul.bf16.gmra.mxu0 %v699_v8 }
 0x112   : > { %1026 = vmatmul.bf16.gmra.mxu1 %v7095_v41  ;;  %v708_v41 = vshrl.u32 %v7097_v12, 16 }
 0x113   : > { %1237 = vmatmul.bf16.gmra.mxu2 %v1106_v11 }
 0x114   : > { %1517 = vmatmul.bf16.gmra.mxu3 %v7127_v9  ;;  %v710_v43 = vor.u32 %v708_v41, %v706_v23  ;;  %v723_v9 = vsel %vm615_vm0, %v718_v1, %v722_v2  ;;  %v7131_v41 = vld [vmem:[%s7684_s20 + $0x34] sm:$0xff] }
 0x116   : > { %v1198_v14 = vpop.f32.mrf.mxu2  ;;  %v7893_v16 = vpop.f32.mrf.mxu0  ;;  %v715_v50 = vsel %vm615_vm0, %v710_v43, %v714_v44  ;;  %v7166_v43 = vld [vmem:[%s10185_s1 + $0x100] sm:$0xff]  ;;  %v7204_v44 = vld [vmem:[%s10185_s1 + $0x1b0] sm:$0xff] }
 0x117   : > { %v7889_v13 = vpop.f32.mrf.mxu3  ;;  %v7891_v15 = vadd.f32 %v1198_v14, %v988_v10  ;;  %v7895_v18 = vpop.f32.mrf.mxu1  ;;  %v7130_v10 = vld [vmem:[%s7684_s20 + $0x2c] sm:$0xff]  ;;  %1969 = vmatpush.bf16.msrb.mxu0 %v7166_v43 }
 0x118   : > { %10218 = vst [vmem:[#allocation7_spill] sm:$0xff] %v7889_v13  ;;  %v1626_v43 = vld [vmem:[%s7684_s20 + $0xc] sm:$0xff]   ;;  %v7187_v13 = vld [vmem:[%s7684_s20 + $0x40] sm:$0xff] }
 0x11e   : > { %v7899_v26 = vpop.f32.mrf.mxu2  ;;  %v835_v28 = vpop.f32.mrf.mxu0 }
 0x11f   : > { %v7897_v25 = vpop.f32.mrf.mxu3  ;;  %v992_v29 = vpop.f32.mrf.mxu1 }
 0x120   : > { %10219 = vst [vmem:[#allocation8_spill] sm:$0xff] %v7897_v25  ;;  %v993_v32 = vadd.f32 %v992_v29, %v835_v28  ;;  %v728_v28 = vshll.u32 %v7796_v27, 16  ;;  %v726_v29 = vor.u32 %v724_v24, %v722_v2  ;;  %v7186_v25 = vld [vmem:[%s7684_s20 + $0x38] sm:$0xff] }
 0x121   : > { %874 = vmatmul.bf16.gmra.mxu0 %v707_v30 }
 0x122   : > { %1031 = vmatmul.bf16.gmra.mxu1 %v7096_v53  ;;  %v730_v30 = vrot.slane %v728_v28, 1 }
 0x123   : > { %1242 = vmatmul.bf16.gmra.mxu2 %v1108_v33 }
 0x124   : > { %1522 = vmatmul.bf16.gmra.mxu3 %v7128_v31 }
 0x126   : > { %v1203_v37 = vpop.f32.mrf.mxu2  ;;  %v7909_v39 = vpop.f32.mrf.mxu0 }
 0x127   : > { %v7905_v35 = vpop.f32.mrf.mxu3  ;;  %v7907_v38 = vadd.f32 %v1203_v37, %v993_v32  ;;  %v7911_v40 = vpop.f32.mrf.mxu1  ;;  %v731_v37 = vsel %vm615_vm0, %v726_v29, %v730_v30 }
 0x128   : > { %10220 = vst [vmem:[#allocation9_spill] sm:$0xff] %v7905_v35 }
 0x12e   : > { %v7913_v47 = vpop.f32.mrf.mxu2  ;;  %v840_v48 = vpop.f32.mrf.mxu0 }
 0x12f   : > { %v1059_v46 = vpop.f32.mrf.mxu3  ;;  %v997_v49 = vpop.f32.mrf.mxu1 }
 0x130   : > { %v998_v53 = vadd.f32 %v997_v49, %v840_v48 }
 0x131   : > { %879 = vmatmul.bf16.gmra.mxu0 %v715_v50 }
 0x132   : > { %1036 = vmatmul.bf16.gmra.mxu1 %v7097_v12  ;;  %v1112_v12 = vsel %vm1085_vm1, %v1109_v45, %v1111_v56  ;;  %v7205_v56 = vld [vmem:[%s10185_s1 + $0x1b8] sm:$0xff] }
 0x133   : > { %1247 = vmatmul.bf16.gmra.mxu2 %v1110_v55  ;;  %v7203_v55 = vld [vmem:[%s10185_s1 + $0x1a8] sm:$0xff] }
 0x134   : > { %1527 = vmatmul.bf16.gmra.mxu3 %v7129_v51  ;;  %2523 = vmatpush.bf16.msrb.mxu2 %v7205_v56  ;;  %v732_v51 = vshrl.u32 %v7796_v27, 16  ;;  %v7202_v27 = vld [vmem:[%s10185_s1 + $0x1a0] sm:$0xff] }
 0x136   : > { %v1208_v59 = vpop.f32.mrf.mxu2  ;;  %v7923_v61 = vpop.f32.mrf.mxu0 }
 0x137   : > { %v1061_v58 = vpop.f32.mrf.mxu3  ;;  %v7921_v60 = vadd.f32 %v1208_v59, %v998_v53  ;;  %v7925_v62 = vpop.f32.mrf.mxu1  ;;  %v7180_v53 = vld [vmem:[%s10185_s1 + $0x170] sm:$0xff]  ;;  %v738_v59 = vrot.slane %v736_v52, 1 }
 0x138   : > { %2524 = vmatpush.bf16.msrb.mxu2 %v7204_v44  ;;  %2204 = vmatpush.bf16.msrb.mxu1 %v7180_v53  ;;  %v734_v58 = vor.u32 %v732_v51, %v730_v30  ;;  %v7488_v44 = vld [vmem:[%s7684_s20 + $0xc] sm:$0xf0]  ;;  %v7198_v51 = vld [vmem:[%s10185_s1 + $0x180] sm:$0xff]  ;;  %v7489_v52 = vld [vmem:[%s7684_s20 + $0xc] sm:$0xe] }
 0x13c   : > { %2525 = vmatpush.bf16.msrb.mxu2 %v7203_v55  ;;  %2205 = vmatpush.bf16.msrb.mxu1 %v7179_v63 }
 0x13e   : > { %v7928_v6 = vpop.f32.mrf.mxu2  ;;  %v845_v7 = vpop.f32.mrf.mxu0 }
 0x13f   : > { %v1062_v4 = vpop.f32.mrf.mxu3  ;;  %v1002_v8 = vpop.f32.mrf.mxu1 }
 0x140   : > { %v1003_v11 = vadd.f32 %v1002_v8, %v845_v7  ;;  %2526 = vmatpush.bf16.msrb.mxu2 %v7202_v27  ;;  %v739_v7 = vsel %vm615_vm0, %v734_v58, %v738_v59  ;;  %v7132_v8 = vld [vmem:[%s7684_s20 + $0x3c] sm:$0xff]  ;;  %v7133_v27 = vld [vmem:[%s7684_s20 + $0x44] sm:$0xff] }
 0x141   : > { %884 = vmatmul.bf16.gmra.mxu0 %v723_v9 }
 0x142   : > { %1041 = vmatmul.bf16.gmra.mxu1 %v7098_v34 }
 0x143   : > { %1252 = vmatmul.bf16.gmra.mxu2 %v1112_v12  ;;  %v7177_v12 = vld [vmem:[%s10185_s1 + $0x158] sm:$0xff] }
 0x144   : > { %1532 = vmatmul.bf16.gmra.mxu3 %v7130_v10  ;;  %v7178_v10 = vld [vmem:[%s10185_s1 + $0x160] sm:$0xff] }
 0x145   : > { %2206 = vmatpush.bf16.msrb.mxu1 %v7178_v10 }
 0x146   : > { %v1213_v14 = vpop.f32.mrf.mxu2  ;;  %v7939_v22 = vpop.f32.mrf.mxu0 }
 0x147   : > { %v7935_v19 = vpop.f32.mrf.mxu3  ;;  %v7937_v21 = vadd.f32 %v1213_v14, %v1003_v11  ;;  %v7941_v23 = vpop.f32.mrf.mxu1  ;;  %v7201_v11 = vld [vmem:[%s10185_s1 + $0x198] sm:$0xff]  ;;  %v7200_v14 = vld [vmem:[%s10185_s1 + $0x190] sm:$0xff] }
 0x148   : > { %2527 = vmatpush.bf16.msrb.mxu2 %v7201_v11 }
 0x149   : > { %2207 = vmatpush.bf16.msrb.mxu1 %v7177_v12  ;;  %v7237_v12 = vld [vmem:[%s10185_s1 + $0x238] sm:$0xff] }
 0x14a   : > { %3222 = vmatpush.bf16.msra.mxu0 %v7237_v12 }
 0x14c   : > { %2528 = vmatpush.bf16.msrb.mxu2 %v7200_v14 }
 0x14e   : > { %v7948_v31 = vpop.f32.mrf.mxu2  ;;  %v850_v33 = vpop.f32.mrf.mxu0 }
 0x14f   : > { %v7950_v32 = vpop.f32.mrf.mxu3  ;;  %v1007_v34 = vpop.f32.mrf.mxu1 }
 0x150   : > { %10221 = vst [vmem:[#allocation10_spill] sm:$0xff] %v7950_v32  ;;  %v1008_v42 = vadd.f32 %v1007_v34, %v850_v33  ;;  %v740_v33 = vshrl.u32 %v7804_v36, 16  ;;  %v744_v34 = vshll.u32 %v7851_v20, 16 }
 0x151   : > { %889 = vmatmul.bf16.gmra.mxu0 %v731_v37  ;;  %v7176_v37 = vld [vmem:[%s10185_s1 + $0x150] sm:$0xff] }
 0x152   : > { %2208 = vmatpush.bf16.msrb.mxu1 %v7176_v37  ;;  %v746_v36 = vrot.slane %v744_v34, 1 }
 0x154   : > { %1537 = vmatmul.bf16.gmra.mxu3 %v7131_v41  ;;  %v7199_v41 = vld [vmem:[%s10185_s1 + $0x188] sm:$0xff] }
 0x155   : > { %2529 = vmatpush.bf16.msrb.mxu2 %v7199_v41 }
 0x156   : > { %v1218_v45 = vpop.f32.mrf.mxu2  ;;  %v7967_v49 = vpop.f32.mrf.mxu0 }
 0x157   : > { %v7963_v46 = vpop.f32.mrf.mxu3  ;;  %v7965_v48 = vadd.f32 %v1218_v45, %v1008_v42  ;;  %v7969_v50 = vpop.f32.mrf.mxu1  ;;  %v742_v42 = vor.u32 %v740_v33, %v738_v59  ;;  %v7175_v45 = vld [vmem:[%s10185_s1 + $0x148] sm:$0xff] }
 0x158   : > { %10222 = vst [vmem:[#allocation11_spill] sm:$0xff] %v7963_v46  ;;  %2209 = vmatpush.bf16.msrb.mxu1 %v7175_v45  ;;  %v750_v45 = vor.u32 %v748_v17, %v746_v36 }
 0x159   : > { %v747_v63 = vsel %vm615_vm0, %v742_v42, %v746_v36  ;;  %2530 = vmatpush.bf16.msrb.mxu2 %v7198_v51 }
 0x15e   : > { %v7985_v0 = vpop.f32.mrf.mxu2  ;;  %v855_v2 = vpop.f32.mrf.mxu0 }
 0x15f   : > { %v7987_v1 = vpop.f32.mrf.mxu3  ;;  %v1012_v4 = vpop.f32.mrf.mxu1 }
 0x160   : > { %10223 = vst [vmem:[#allocation12_spill] sm:$0xff] %v7987_v1  ;;  %v1013_v9 = vadd.f32 %v1012_v4, %v855_v2  ;;  %v7182_v2 = vld [vmem:[%s7684_s20 + $0x18] sm:$0xff]  ;;  %v8114_v1 = vld [vmem:[%s7684_s20 + $0x2c] sm:$0xff] }
 0x161   : > { %894 = vmatmul.bf16.gmra.mxu0 %v739_v7  ;;  %v7174_v7 = vld [vmem:[%s10185_s1 + $0x140] sm:$0xff]  ;;  %2531 = vmatmul.bf16.vlgmr.msrb.gmra.mxu2 %v7182_v2  ;;  %v1765_v2 = vshll.u32 %v1626_v43, 16 }
 0x162   : > { %2210 = vmatpush.bf16.msrb.mxu1 %v7174_v7 }
 0x164   : > { %1542 = vmatmul.bf16.gmra.mxu3 %v7132_v8  ;;  %v8040_v8 = vld [vmem:[%s7684_s20 + $0x14] sm:$0xff] }
 0x165   : > { %v2106_v11 = vrot.slane %v8040_v8, 1 }
 0x166   : > { %v1223_v24 = vpop.f32.mrf.mxu2  ;;  %v8007_v29 = vpop.f32.mrf.mxu0 }
 0x167   : > { %v8003_v28 = vpop.f32.mrf.mxu3  ;;  %v8005_v56 = vadd.f32 %v1223_v24, %v1013_v9  ;;  %v8009_v30 = vpop.f32.mrf.mxu1  ;;  %v7490_v9 = vor.u32 %v7489_v52, %v7488_v44 }
 0x168   : > { %10224 = vst [vmem:[#allocation13_spill] sm:$0xff] %v8003_v28 }
 0x169   : > { %v2105_v10 = vrot.slane %v7490_v9, 1  ;;  %v1763_v9 = vshrl.u32 %v1626_v43, 16  ;;  %v7228_v43 = vld [vmem:[%s10185_s1 + $0x1f0] sm:$0xff] }
 0x16a   : > { %2982 = vmatpush.bf16.msrb.mxu3 %v7228_v43 }
 0x16b   : > { %v2107_v14 = vsel %vm1085_vm1, %v2105_v10, %v2106_v11 }
 0x16c   : > { %2211 = vmatmul.bf16.vlgmr.msrb.gmra.mxu1 %v2107_v14 }
 0x16e   : > { %v8031_v53 = vpop.f32.mrf.mxu2  ;;  %v860_v58 = vpop.f32.mrf.mxu0 }
 0x16f   : > { %v1270_v55 = vpop.f32.mrf.mxu3  ;;  %v1017_v59 = vpop.f32.mrf.mxu1 }
 0x170   : > { %v1018_v4 = vadd.f32 %v1017_v59, %v860_v58  ;;  %v7134_v55 = vld [vmem:[%s7684_s20 + $0x4c] sm:$0xff]  ;;  %v7183_v58 = vld [vmem:[%s7684_s20 + $0x20] sm:$0xff] }
 0x171   : > { %899 = vmatmul.bf16.gmra.mxu0 %v747_v63  ;;  %v8059_v63 = vld [vmem:[%s7684_s20 + $0x1c] sm:$0xff]  ;;  %2536 = vmatmul.bf16.gmra.mxu2 %v7183_v58 }
 0x174   : > { %1547 = vmatmul.bf16.gmra.mxu3 %v7133_v27  ;;  %v2108_v27 = vrot.slane %v8059_v63, 1 }
 0x176   : > { %v1228_v24 = vpop.f32.mrf.mxu2  ;;  %v8049_v37 = vpop.f32.mrf.mxu0 }
 0x177   : > { %v1272_v33 = vpop.f32.mrf.mxu3  ;;  %v8047_v34 = vadd.f32 %v1228_v24, %v1018_v4  ;;  %v8051_v41 = vpop.f32.mrf.mxu1  ;;  %v2109_v4 = vsel %vm1085_vm1, %v2106_v11, %v2108_v27  ;;  %v1767_v24 = vrot.slane %v1765_v2, 1 }
 0x178   : > { %v1770_v33 = vshll.u32 %v8040_v8, 16 }
 0x179   : > { %v1768_v11 = vor.u32 %v1767_v24, %v1763_v9 }
 0x17a   : > { %v1772_v17 = vrot.slane %v1770_v33, 1 }
 0x17c   : > { %2216 = vmatmul.bf16.gmra.mxu1 %v2109_v4  ;;  %v1773_v58 = vsel %vm615_vm0, %v1768_v11, %v1772_v17  ;;  %v8085_v4 = vld [vmem:[%s7684_s20 + $0x24] sm:$0xff] }
 0x17e   : > { %v8054_v42 = vpop.f32.mrf.mxu2  ;;  %v865_v51 = vpop.f32.mrf.mxu0 }
 0x17f   : > { %v1273_v44 = vpop.f32.mrf.mxu3  ;;  %v1022_v52 = vpop.f32.mrf.mxu1 }
 0x180   : > { %v1023_v59 = vadd.f32 %v1022_v52, %v865_v51 }
 0x181   : > { %903 = vmatmul.bf16.gmra.mxu0 %v750_v45 }
 0x184   : > { %1552 = vmatmul.bf16.gmra.mxu3 %v7134_v55  ;;  %v7135_v55 = vld [vmem:[%s7684_s20 + $0x54] sm:$0xff] }
 0x186   : > { %v1233_v20 = vpop.f32.mrf.mxu2  ;;  %v8068_v12 = vpop.f32.mrf.mxu0 }
 0x187   : > { %v1513_v7 = vpop.f32.mrf.mxu3  ;;  %v8063_v36 = vadd.f32 %v1233_v20, %v1023_v59  ;;  %v8070_v14 = vpop.f32.mrf.mxu1  ;;  %v7184_v59 = vld [vmem:[%s7684_s20 + $0x28] sm:$0xff]  ;;  %v2110_v20 = vrot.slane %v8085_v4, 1 }
 0x188   : > { %v8066_v10 = vadd.f32 %v1513_v7, %v7876_v57  ;;  %2541 = vmatmul.bf16.gmra.mxu2 %v7184_v59  ;;  %v7236_v7 = vld [vmem:[%s10185_s1 + $0x230] sm:$0xff] }
 0x189   : > { %3223 = vmatpush.bf16.msra.mxu0 %v7236_v7 }
 0x18e   : > { %v8076_v44 = vpop.f32.mrf.mxu2  ;;  %v870_v51 = vpop.f32.mrf.mxu0 }
 0x18f   : > { %v1515_v57 = vpop.f32.mrf.mxu3  ;;  %v1027_v52 = vpop.f32.mrf.mxu1 }
 0x190   : > { %v8079_v45 = vadd.f32 %v1515_v57, %v7883_v5  ;;  %v1028_v2 = vadd.f32 %v1027_v52, %v870_v51  ;;  %v2111_v5 = vsel %vm1085_vm1, %v2108_v27, %v2110_v20  ;;  %v1774_v51 = vshrl.u32 %v8040_v8, 16  ;;  %v7185_v8 = vld [vmem:[%s7684_s20 + $0x30] sm:$0xff] }
 0x191   : > { %1970 = vmatmul.bf16.vlgmr.msrb.gmra.mxu0 %v1773_v58  ;;  %2221 = vmatmul.bf16.gmra.mxu1 %v2111_v5  ;;  %v1778_v27 = vshll.u32 %v8059_v63, 16  ;;  %v990_v52 = vadd.f32 %v7895_v18, %v7893_v16  ;;  %v2112_v16 = vrot.slane %v8114_v1, 1 }
 0x193   : > { %v1780_v58 = vrot.slane %v1778_v27, 1  ;;  %v1278_v59 = vadd.f32 %v7899_v26, %v990_v52  ;;  %v2113_v18 = vsel %vm1085_vm1, %v2110_v20, %v2112_v16  ;;  %v995_v20 = vadd.f32 %v7911_v40, %v7909_v39  ;;  %v8143_v40 = vld [vmem:[%s7684_s20 + $0x34] sm:$0xff] }
 0x194   : > { %1557 = vmatmul.bf16.gmra.mxu3 %v7135_v55  ;;  %v1776_v55 = vor.u32 %v1774_v51, %v1772_v17 }
 0x196   : > { %v1238_v9 = vpop.f32.mrf.mxu2  ;;  %v8097_v11 = vpop.f32.mrf.mxu0  ;;  %v1781_v28 = vsel %vm615_vm0, %v1776_v55, %v1780_v58 }
 0x197   : > { %v1518_v24 = vpop.f32.mrf.mxu3  ;;  %v8092_v33 = vadd.f32 %v1238_v9, %v1028_v2  ;;  %v8099_v57 = vpop.f32.mrf.mxu1 }
 0x198   : > { %v8095_v43 = vadd.f32 %v1518_v24, %v7891_v15  ;;  %v7136_v24 = vld [vmem:[%s7684_s20 + $0x5c] sm:$0xff]  ;;  %2546 = vmatmul.bf16.gmra.mxu2 %v7185_v8 }
 0x19e   : > { %v8106_v2 = vpop.f32.mrf.mxu2  ;;  %v875_v5 = vpop.f32.mrf.mxu0 }
 0x19f   : > { %v1520_v15 = vpop.f32.mrf.mxu3  ;;  %v1032_v9 = vpop.f32.mrf.mxu1 }
 0x1a0   : > { %v8108_v7 = vadd.f32 %v1520_v15, %v1278_v59  ;;  %v1033_v35 = vadd.f32 %v1032_v9, %v875_v5  ;;  %v1786_v59 = vshll.u32 %v8085_v4, 16 }
 0x1a1   : > { %1975 = vmatmul.bf16.gmra.mxu0 %v1781_v28  ;;  %2226 = vmatmul.bf16.gmra.mxu1 %v2113_v18  ;;  %v1782_v28 = vshrl.u32 %v8059_v63, 16 }
 0x1a2   : > { %v1788_v5 = vrot.slane %v1786_v59, 1 }
 0x1a3   : > { %v1784_v15 = vor.u32 %v1782_v28, %v1780_v58 }
 0x1a4   : > { %1562 = vmatmul.bf16.gmra.mxu3 %v7136_v24 }
 0x1a5   : > { %v1789_v63 = vsel %vm615_vm0, %v1784_v15, %v1788_v5 }
 0x1a6   : > { %v1243_v26 = vpop.f32.mrf.mxu2  ;;  %v8123_v52 = vpop.f32.mrf.mxu0 }
 0x1a7   : > { %v1523_v17 = vpop.f32.mrf.mxu3  ;;  %v8118_v51 = vadd.f32 %v1243_v26, %v1033_v35  ;;  %v8125_v55 = vpop.f32.mrf.mxu1  ;;  %v1280_v35 = vadd.f32 %v7913_v47, %v995_v20  ;;  %v7137_v26 = vld [vmem:[%s7684_s20 + $0x64] sm:$0xff]  ;;  %v2114_v47 = vrot.slane %v8143_v40, 1 }
 0x1a8   : > { %v8121_v27 = vadd.f32 %v1523_v17, %v7907_v38  ;;  %v7227_v17 = vld [vmem:[%s10185_s1 + $0x1e8] sm:$0xff]  ;;  %2551 = vmatmul.bf16.gmra.mxu2 %v7186_v25  ;;  %v1790_v25 = vshrl.u32 %v8085_v4, 16 }
 0x1a9   : > { %2983 = vmatpush.bf16.msrb.mxu3 %v7227_v17  ;;  %v2115_v58 = vsel %vm1085_vm1, %v2112_v16, %v2114_v47  ;;  %v7235_v16 = vld [vmem:[%s10185_s1 + $0x228] sm:$0xff] }
 0x1aa   : > { %3224 = vmatpush.bf16.msra.mxu0 %v7235_v16  ;;  %v8172_v16 = vld [vmem:[%s7684_s20 + $0x3c] sm:$0xff] }
 0x1ae   : > { %v8132_v9 = vpop.f32.mrf.mxu2  ;;  %v880_v8 = vpop.f32.mrf.mxu0 }
 0x1af   : > { %v1525_v38 = vpop.f32.mrf.mxu3  ;;  %v1037_v18 = vpop.f32.mrf.mxu1 }
 0x1b0   : > { %v8134_v24 = vadd.f32 %v1525_v38, %v1280_v35  ;;  %v1038_v39 = vadd.f32 %v1037_v18, %v880_v8  ;;  %v1794_v8 = vshll.u32 %v8114_v1, 16  ;;  %v1792_v18 = vor.u32 %v1790_v25, %v1788_v5 }
 0x1b1   : > { %1980 = vmatmul.bf16.gmra.mxu0 %v1789_v63  ;;  %2231 = vmatmul.bf16.gmra.mxu1 %v2115_v58 }
 0x1b4   : > { %1567 = vmatmul.bf16.gmra.mxu3 %v7137_v26  ;;  %v1796_v26 = vrot.slane %v1794_v8, 1 }
 0x1b6   : > { %v1248_v28 = vpop.f32.mrf.mxu2  ;;  %v8152_v35 = vpop.f32.mrf.mxu0  ;;  %v1797_v46 = vsel %vm615_vm0, %v1792_v18, %v1796_v26 }
 0x1b7   : > { %v1528_v59 = vpop.f32.mrf.mxu3  ;;  %v8147_v20 = vadd.f32 %v1248_v28, %v1038_v39  ;;  %v8154_v38 = vpop.f32.mrf.mxu1 }
 0x1b8   : > { %v8150_v15 = vadd.f32 %v1528_v59, %v7921_v60  ;;  %v1000_v60 = vadd.f32 %v7925_v62, %v7923_v61  ;;  %v7138_v59 = vld [vmem:[%s7684_s20 + $0x6c] sm:$0xff]  ;;  %2556 = vmatmul.bf16.gmra.mxu2 %v7187_v13  ;;  %v2116_v61 = vrot.slane %v8172_v16, 1  ;;  %v1798_v13 = vshrl.u32 %v8114_v1, 16  ;;  %v7226_v1 = vld [vmem:[%s10185_s1 + $0x1e0] sm:$0xff] }
 0x1b9   : > { %2984 = vmatpush.bf16.msrb.mxu3 %v7226_v1  ;;  %v7189_v1 = vld [vmem:[%s7684_s20 + $0x50] sm:$0xff] }
 0x1ba   : > { %v1282_v63 = vadd.f32 %v7928_v6, %v1000_v60  ;;  %v2117_v62 = vsel %vm1085_vm1, %v2114_v47, %v2116_v61  ;;  %v1005_v47 = vadd.f32 %v7941_v23, %v7939_v22  ;;  %v1800_v18 = vor.u32 %v1798_v13, %v1796_v26 }
 0x1bb   : > { %v1806_v13 = vshrl.u32 %v8143_v40, 16 }
 0x1be   : > { %v8164_v17 = vpop.f32.mrf.mxu2  ;;  %v885_v4 = vpop.f32.mrf.mxu0 }
 0x1bf   : > { %v1530_v39 = vpop.f32.mrf.mxu3  ;;  %v1042_v28 = vpop.f32.mrf.mxu1 }
 0x1c0   : > { %v8166_v58 = vadd.f32 %v1530_v39, %v1282_v63  ;;  %v1043_v32 = vadd.f32 %v1042_v28, %v885_v4  ;;  %v1284_v39 = vadd.f32 %v7948_v31, %v1005_v47  ;;  %v7234_v47 = vld [vmem:[%s10185_s1 + $0x220] sm:$0xff] }
 0x1c1   : > { %1985 = vmatmul.bf16.gmra.mxu0 %v1797_v46  ;;  %2236 = vmatmul.bf16.gmra.mxu1 %v2117_v62  ;;  %v1802_v46 = vshll.u32 %v8143_v40, 16  ;;  %v7188_v62 = vld [vmem:[%s7684_s20 + $0x48] sm:$0xff]  ;;  %v7140_v40 = vld [vmem:[%s7684_s20 + $0x7c] sm:$0xff] }
 0x1c2   : > { %3225 = vmatpush.bf16.msra.mxu0 %v7234_v47  ;;  %v1814_v47 = vshrl.u32 %v8172_v16, 16 }
 0x1c3   : > { %v1804_v63 = vrot.slane %v1802_v46, 1  ;;  %v1810_v46 = vshll.u32 %v8172_v16, 16 }
 0x1c4   : > { %1572 = vmatmul.bf16.gmra.mxu3 %v7138_v59 }
 0x1c5   : > { %v1805_v59 = vsel %vm615_vm0, %v1800_v18, %v1804_v63  ;;  %v1808_v18 = vor.u32 %v1806_v13, %v1804_v63 }
 0x1c6   : > { %v1253_v6 = vpop.f32.mrf.mxu2  ;;  %v8181_v60 = vpop.f32.mrf.mxu0 }
 0x1c7   : > { %v1533_v5 = vpop.f32.mrf.mxu3  ;;  %v8176_v25 = vadd.f32 %v1253_v6, %v1043_v32  ;;  %v8199_v6 = vld [vmem:[%s7684_s20 + $0x44] sm:$0xff] }
 0x1c8   : > { %v8179_v8 = vadd.f32 %v1533_v5, %v7937_v21  ;;  %v7139_v21 = vld [vmem:[%s7684_s20 + $0x74] sm:$0xff]  ;;  %2561 = vmatmul.bf16.gmra.mxu2 %v7188_v62  ;;  %v2118_v22 = vrot.slane %v8199_v6, 1 }
 0x1ca   : > { %v2119_v23 = vsel %vm1085_vm1, %v2116_v61, %v2118_v22  ;;  %v1010_v61 = vadd.f32 %v7969_v50, %v7967_v49  ;;  %v7225_v49 = vld [vmem:[%s10185_s1 + $0x1d8] sm:$0xff] }
 0x1cb   : > { %2985 = vmatpush.bf16.msrb.mxu3 %v7225_v49 }
 0x1ce   : > { %v8190_v28 = vpop.f32.mrf.mxu0  ;;  %v8249_v16 = vpop.f32.mrf.mxu2 }
 0x1cf   : > { %v1535_v4 = vpop.f32.mrf.mxu3 }
 0x1d0   : > { %v8188_v32 = vadd.f32 %v1535_v4, %v1284_v39  ;;  %v1812_v39 = vrot.slane %v1810_v46, 1 }
 0x1d1   : > { %1990 = vmatmul.bf16.gmra.mxu0 %v1805_v59  ;;  %2241 = vmatmul.bf16.gmra.mxu1 %v2119_v23  ;;  %v8224_v23 = vld [vmem:[%s7684_s20 + $0x4c] sm:$0xff] }
 0x1d2   : > { %v1813_v62 = vsel %vm615_vm0, %v1808_v18, %v1812_v39  ;;  %v2120_v50 = vrot.slane %v8224_v23, 1  ;;  %v1015_v18 = vadd.f32 %v8009_v30, %v8007_v29  ;;  %v7190_v30 = vld [vmem:[%s7684_s20 + $0x58] sm:$0xff] }
 0x1d4   : > { %1577 = vmatmul.bf16.gmra.mxu3 %v7139_v21 }
 0x1d6   : > { %v8206_v5 = vpop.f32.mrf.mxu0 }
 0x1d7   : > { %v1538_v31 = vpop.f32.mrf.mxu3 }
 0x1d8   : > { %v8204_v26 = vadd.f32 %v1538_v31, %v7965_v48  ;;  %v1286_v48 = vadd.f32 %v7985_v0, %v1010_v61  ;;  %2566 = vmatmul.bf16.gmra.mxu2 %v7189_v1  ;;  %v2121_v0 = vsel %vm1085_vm1, %v2118_v22, %v2120_v50  ;;  %v7224_v31 = vld [vmem:[%s10185_s1 + $0x1d0] sm:$0xff]  ;;  %v1818_v61 = vshll.u32 %v8199_v6, 16  ;;  %v7223_v22 = vld [vmem:[%s10185_s1 + $0x1c8] sm:$0xff]  ;;  %v7222_v1 = vld [vmem:[%s10185_s1 + $0x1c0] sm:$0xff] }
 0x1d9   : > { %2986 = vmatpush.bf16.msrb.mxu3 %v7224_v31 }
 0x1dd   : > { %2987 = vmatpush.bf16.msrb.mxu3 %v7223_v22 }
 0x1de   : > { %v8218_v59 = vpop.f32.mrf.mxu0 }
 0x1df   : > { %v1540_v4 = vpop.f32.mrf.mxu3  ;;  %10226 = vst [vmem:[#allocation15_spill] sm:$0xff] %v8218_v59  ;;  %v7192_v59 = vld [vmem:[%s7684_s20 + $0x68] sm:$0xff] }
 0x1e0   : > { %v8216_v21 = vadd.f32 %v1540_v4, %v1286_v48  ;;  %v8246_v48 = vpop.f32.mrf.mxu1  ;;  %v1820_v4 = vrot.slane %v1818_v61, 1 }
 0x1e1   : > { %1995 = vmatmul.bf16.gmra.mxu0 %v1813_v62  ;;  %2246 = vmatmul.bf16.gmra.mxu1 %v2121_v0 }
 0x1e2   : > { %10225 = vst [vmem:[#allocation14_spill] sm:$0xff] %v8216_v21  ;;  %2988 = vmatpush.bf16.msrb.mxu3 %v7222_v1  ;;  %v1338_v1 = vld [vmem:[%s7684_s20 + $0x8c] sm:$0xf] }
 0x1e4   : > { %1582 = vmatmul.bf16.gmra.mxu3 %v7140_v40  ;;  %v1288_v40 = vadd.f32 %v8031_v53, %v1015_v18  ;;  %v8266_v61 = vpop.f32.mrf.mxu2 }
 0x1e6   : > { %v8237_v46 = vpop.f32.mrf.mxu0 }
 0x1e7   : > { %v1543_v63 = vpop.f32.mrf.mxu3  ;;  %10228 = vst [vmem:[#allocation17_spill] sm:$0xff] %v8237_v46  ;;  %v7191_v46 = vld [vmem:[%s7684_s20 + $0x60] sm:$0xff] }
 0x1e8   : > { %v8235_v13 = vadd.f32 %v1543_v63, %v8005_v56  ;;  %v1816_v56 = vor.u32 %v1814_v47, %v1812_v39  ;;  %v7141_v63 = vld [vmem:[%s7684_s20 + $0x84] sm:$0xff]  ;;  %v8262_v39 = vld [vmem:[%s7684_s20 + $0x54] sm:$0xff]  ;;  %2571 = vmatmul.bf16.gmra.mxu2 %v7190_v30 }
 0x1e9   : > { %v2122_v53 = vrot.slane %v8262_v39, 1  ;;  %v2212_v31 = vpop.f32.mrf.mxu1 }
 0x1ea   : > { %10227 = vst [vmem:[#allocation16_spill] sm:$0xff] %v8235_v13  ;;  %v1821_v29 = vsel %vm615_vm0, %v1816_v56, %v1820_v4 }
 0x1eb   : > { %v2123_v47 = vsel %vm1085_vm1, %v2120_v50, %v2122_v53  ;;  %v1020_v50 = vadd.f32 %v8051_v41, %v8049_v37  ;;  %v8289_v37 = vld [vmem:[%s7684_s20 + $0x5c] sm:$0xff] }
 0x1ec   : > { %v7381_v41 = vld [vmem:[%s7684_s20 + $0x18] sm:$0xff]  }
 0x1ee   : > { %v8256_v0 = vpop.f32.mrf.mxu0 }
 0x1ef   : > { %v1545_v62 = vpop.f32.mrf.mxu3  ;;  %10230 = vst [vmem:[#allocation19_spill] sm:$0xff] %v8256_v0 }
 0x1f0   : > { %v8254_v49 = vadd.f32 %v1545_v62, %v1288_v40  ;;  %v1822_v40 = vshrl.u32 %v8199_v6, 16  ;;  %v1826_v62 = vshll.u32 %v8224_v23, 16  ;;  %v1290_v6 = vadd.f32 %v8054_v42, %v1020_v50  ;;  %v8296_v42 = vld [vmem:[%s7684_s20 + $0x20] sm:$0xff] }
 0x1f1   : > { %2000 = vmatmul.bf16.gmra.mxu0 %v1821_v29  ;;  %2251 = vmatmul.bf16.gmra.mxu1 %v2123_v47  ;;  %v1421_v29 = vunpack.c.l.b16 %v1338_v1  ;;  %v8279_v47 = vpop.f32.mrf.mxu1 }
 0x1f2   : > { %10229 = vst [vmem:[#allocation18_spill] sm:$0xff] %v8254_v49  ;;  %v1824_v30 = vor.u32 %v1822_v40, %v1820_v4  ;;  %v2124_v4 = vrot.slane %v8289_v37, 1 }
 0x1f3   : > { %v1438_v0 = vpack.c.b16 %v1421_v29, %v1421_v29 }
 0x1f4   : > { %1587 = vmatmul.bf16.gmra.mxu3 %v7141_v63  ;;  %v7233_v63 = vld [vmem:[%s10185_s1 + $0x218] sm:$0xff]  ;;  %v2125_v1 = vsel %vm1085_vm1, %v2122_v53, %v2124_v4  ;;  %v1025_v53 = vadd.f32 %v8070_v14, %v8068_v12 }
 0x1f5   : > { %3226 = vmatpush.bf16.msra.mxu0 %v7233_v63 }
 0x1f6   : > { %v902_v56 = vpop.f32.mrf.mxu0 }
 0x1f7   : > { %v1548_v22 = vpop.f32.mrf.mxu3 }
 0x1f8   : > { %v8269_v18 = vadd.f32 %v1548_v22, %v8047_v34  ;;  %v1828_v34 = vrot.slane %v1826_v62, 1  ;;  %v8282_v22 = vpop.f32.mrf.mxu2  ;;  %2576 = vmatmul.bf16.gmra.mxu2 %v7191_v46  ;;  %v2784_v62 = vshll.u32 %v7381_v41, 16  ;;  %v1834_v46 = vshll.u32 %v8262_v39, 16 }
 0x1f9   : > { %v8293_v40 = vpop.f32.mrf.mxu1 }
 0x1fa   : > { %10231 = vst [vmem:[#allocation20_spill] sm:$0xff] %v8269_v18  ;;  %v1829_v13 = vsel %vm615_vm0, %v1824_v30, %v1828_v34  ;;  %v2786_v30 = vrot.slane %v2784_v62, 1 }
 0x1fe   : > { %v904_v49 = vpop.f32.mrf.mxu0 }
 0x1ff   : > { %v1550_v56 = vpop.f32.mrf.mxu3 }
 0x200   : > { %v8284_v18 = vadd.f32 %v1550_v56, %v1290_v6  ;;  %v8299_v49 = vpop.f32.mrf.mxu2  ;;  %v2789_v6 = vshll.u32 %v8296_v42, 16 }
 0x201   : > { %2005 = vmatmul.bf16.gmra.mxu0 %v1829_v13  ;;  %2256 = vmatmul.bf16.gmra.mxu1 %v2125_v1  ;;  %v1830_v13 = vshrl.u32 %v8224_v23, 16  ;;  %v8309_v1 = vpop.f32.mrf.mxu1 }
 0x202   : > { %10232 = vst [vmem:[#allocation21_spill] sm:$0xff] %v8284_v18  ;;  %v1836_v18 = vrot.slane %v1834_v46, 1 }
 0x203   : > { %v1832_v56 = vor.u32 %v1830_v13, %v1828_v34  ;;  %v8321_v34 = vld [vmem:[%s7684_s20 + $0x64] sm:$0xff] }
 0x204   : > { %1591 = vmatmul.bf16.gmra.mxu3 %v1438_v0  ;;  %v2782_v0 = vshrl.u32 %v7381_v41, 16 }
 0x205   : > { %v1837_v21 = vsel %vm615_vm0, %v1832_v56, %v1836_v18 }
 0x206   : > { %v905_v29 = vpop.f32.mrf.mxu0 }
 0x207   : > { %v1553_v63 = vpop.f32.mrf.mxu3  ;;  %v1292_v29 = vadd.f32 %v8076_v44, %v1025_v53  ;;  %v2126_v44 = vrot.slane %v8321_v34, 1 }
 0x208   : > { %v8302_v50 = vadd.f32 %v1553_v63, %v8063_v36  ;;  %v2787_v36 = vor.u32 %v2786_v30, %v2782_v0  ;;  %v2791_v63 = vrot.slane %v2789_v6, 1  ;;  %v8312_v23 = vpop.f32.mrf.mxu2  ;;  %2581 = vmatmul.bf16.gmra.mxu2 %v7192_v59  ;;  %v7207_v0 = vld [vmem:[%s7684_s20 + $0x28] sm:$0xff]  ;;  %v1838_v59 = vshrl.u32 %v8262_v39, 16 }
 0x209   : > { %v2127_v30 = vsel %vm1085_vm1, %v2124_v4, %v2126_v44  ;;  %v7245_v4 = vld [vmem:[%s10188_s4 + $0x38] sm:$0xff] }
 0x20a   : > { %10233 = vst [vmem:[#allocation22_spill] sm:$0xff] %v8302_v50  ;;  %v2792_v14 = vsel %vm615_vm0, %v2787_v36, %v2791_v63  ;;  %v2797_v36 = vshll.u32 %v7207_v0, 16  ;;  %4241 = vmatpush.bf16.msra.mxu2 %v7245_v4  ;;  %v7208_v4 = vld [vmem:[%s7684_s20 + $0x30] sm:$0xff] }
 0x20e   : > { %v1971_v62 = vpop.f32.mrf.mxu0  ;;  %v8324_v46 = vpop.f32.mrf.mxu1 }
 0x20f   : > { %v1555_v50 = vpop.f32.mrf.mxu3  ;;  %v2053_v12 = vadd.f32 %v1971_v62, %v8066_v10  ;;  %v1840_v62 = vor.u32 %v1838_v59, %v1836_v18 }
 0x210   : > { %v8314_v41 = vadd.f32 %v1555_v50, %v1292_v29  ;;  %v8331_v6 = vpop.f32.mrf.mxu2 }
 0x211   : > { %v2294_v13 = vadd.f32 %v2212_v31, %v2053_v12  ;;  %2010 = vmatmul.bf16.gmra.mxu0 %v1837_v21  ;;  %2261 = vmatmul.bf16.gmra.mxu1 %v2127_v30  ;;  %v1842_v31 = vshll.u32 %v8289_v37, 16 }
 0x213   : > { %v8327_v50 = vadd.f32 %v8266_v61, %v2294_v13  ;;  %v2793_v61 = vshrl.u32 %v8296_v42, 16  ;;  %v1844_v12 = vrot.slane %v1842_v31, 1  ;;  %v2799_v13 = vrot.slane %v2797_v36, 1 }
 0x214   : > { %2989 = vmatmul.bf16.vlgmr.msrb.gmra.mxu3 %v2792_v14 }
 0x216   : > { %v1973_v21 = vpop.f32.mrf.mxu0  ;;  %v8346_v39 = vpop.f32.mrf.mxu1 }
 0x217   : > { %v1558_v10 = vpop.f32.mrf.mxu3  ;;  %v2054_v56 = vadd.f32 %v1973_v21, %v8079_v45  ;;  %v2795_v45 = vor.u32 %v2793_v61, %v2791_v63  ;;  %v7253_v63 = vld [vmem:[%s10188_s4 + $0x78] sm:$0xff] }
 0x218   : > { %v8334_v53 = vadd.f32 %v1558_v10, %v8092_v33  ;;  %v1030_v33 = vadd.f32 %v8099_v57, %v8097_v11  ;;  %v8355_v10 = vpop.f32.mrf.mxu2  ;;  %v7193_v21 = vld [vmem:[%s7684_s20 + $0x70] sm:$0xff]  ;;  %4112 = vmatpush.bf16.msra.mxu1 %v7253_v63 }
 0x219   : > { %v2295_v29 = vadd.f32 %v8279_v47, %v2054_v56  ;;  %v7232_v47 = vld [vmem:[%s10185_s1 + $0x210] sm:$0xff]  ;;  %v2800_v31 = vsel %vm615_vm0, %v2795_v45, %v2799_v13  ;;  %2586 = vmatmul.bf16.gmra.mxu2 %v7193_v21 }
 0x21a   : > { %v1294_v30 = vadd.f32 %v8106_v2, %v1030_v33  ;;  %3227 = vmatpush.bf16.msra.mxu0 %v7232_v47  ;;  %v8367_v2 = vld [vmem:[%s7684_s20 + $0x6c] sm:$0xff]  ;;  %v1846_v47 = vshrl.u32 %v8289_v37, 16 }
 0x21b   : > { %v8349_v14 = vadd.f32 %v8282_v22, %v2295_v29  ;;  %v1845_v22 = vsel %vm615_vm0, %v1840_v62, %v1844_v12  ;;  %v2128_v61 = vrot.slane %v8367_v2, 1 }
 0x21c   : > { %v1848_v63 = vor.u32 %v1846_v47, %v1844_v12 }
 0x21e   : > { %v1976_v18 = vpop.f32.mrf.mxu0  ;;  %v8371_v36 = vpop.f32.mrf.mxu1 }
 0x21f   : > { %v1560_v11 = vpop.f32.mrf.mxu3  ;;  %v2055_v59 = vadd.f32 %v1976_v18, %v8095_v43  ;;  %v2129_v43 = vsel %vm1085_vm1, %v2126_v44, %v2128_v61  ;;  %v2801_v18 = vshrl.u32 %v7207_v0, 16  ;;  %v1035_v44 = vadd.f32 %v8125_v55, %v8123_v52  ;;  %v7194_v55 = vld [vmem:[%s7684_s20 + $0x78] sm:$0xff] }
 0x220   : > { %v8357_v57 = vadd.f32 %v1560_v11, %v1294_v30  ;;  %v8378_v33 = vpop.f32.mrf.mxu2  ;;  %v1850_v30 = vshll.u32 %v8321_v34, 16 }
 0x221   : > { %v2296_v56 = vadd.f32 %v8293_v40, %v2055_v59  ;;  %2015 = vmatmul.bf16.gmra.mxu0 %v1845_v22  ;;  %2266 = vmatmul.bf16.gmra.mxu1 %v2129_v43  ;;  %v2803_v37 = vor.u32 %v2801_v18, %v2799_v13 }
 0x222   : > { %v1852_v21 = vrot.slane %v1850_v30, 1  ;;  %v8414_v30 = vld [vmem:[%s7684_s20 + $0x38] sm:$0xff] }
 0x223   : > { %v8374_v29 = vadd.f32 %v8299_v49, %v2296_v56  ;;  %v2805_v49 = vshll.u32 %v7208_v4, 16 }
 0x224   : > { %2994 = vmatmul.bf16.gmra.mxu3 %v2800_v31  ;;  %v1853_v52 = vsel %vm615_vm0, %v1848_v63, %v1852_v21 }
 0x225   : > { %v2807_v31 = vrot.slane %v2805_v49, 1 }
 0x226   : > { %v1978_v40 = vpop.f32.mrf.mxu0 }
 0x227   : > { %v1563_v62 = vpop.f32.mrf.mxu3  ;;  %v2056_v11 = vadd.f32 %v1978_v40, %v8108_v7  ;;  %v1296_v7 = vadd.f32 %v8132_v9, %v1035_v44  ;;  %v1858_v44 = vshll.u32 %v8367_v2, 16 }
 0x228   : > { %v8381_v45 = vadd.f32 %v1563_v62, %v8118_v51  ;;  %v8389_v51 = vpop.f32.mrf.mxu1  ;;  %v8395_v0 = vpop.f32.mrf.mxu2  ;;  %v2808_v62 = vsel %vm615_vm0, %v2803_v37, %v2807_v31  ;;  %v2813_v37 = vshll.u32 %v8414_v30, 16 }
 0x229   : > { %v2297_v22 = vadd.f32 %v8309_v1, %v2056_v11  ;;  %2591 = vmatmul.bf16.gmra.mxu2 %v7194_v55 }
 0x22a   : > { %v2815_v55 = vrot.slane %v2813_v37, 1 }
 0x22b   : > { %v8392_v59 = vadd.f32 %v8312_v23, %v2297_v22  ;;  %v8404_v23 = vld [vmem:[%s7684_s20 + $0x74] sm:$0xff]  ;;  %v1854_v22 = vshrl.u32 %v8321_v34, 16 }
 0x22c   : > { %v2130_v9 = vrot.slane %v8404_v23, 1 }
 0x22e   : > { %v1981_v43 = vpop.f32.mrf.mxu0 }
 0x22f   : > { %v1565_v56 = vpop.f32.mrf.mxu3  ;;  %v2057_v12 = vadd.f32 %v1981_v43, %v8121_v27  ;;  %v2131_v27 = vsel %vm1085_vm1, %v2128_v61, %v2130_v9  ;;  %v1040_v61 = vadd.f32 %v8154_v38, %v8152_v35  ;;  %v1860_v43 = vrot.slane %v1858_v44, 1  ;;  %v8463_v44 = vld [vmem:[%s7684_s20 + $0x40] sm:$0xff] }
 0x230   : > { %v8397_v1 = vadd.f32 %v1565_v56, %v1296_v7  ;;  %v8408_v40 = vpop.f32.mrf.mxu1  ;;  %v8417_v11 = vpop.f32.mrf.mxu2  ;;  %v1856_v56 = vor.u32 %v1854_v22, %v1852_v21 }
 0x231   : > { %v2298_v13 = vadd.f32 %v8324_v46, %v2057_v12  ;;  %2020 = vmatmul.bf16.gmra.mxu0 %v1853_v52  ;;  %2271 = vmatmul.bf16.gmra.mxu1 %v2131_v27  ;;  %v8453_v27 = vld [vmem:[%s7684_s20 + $0x7c] sm:$0xff] }
 0x232   : > { %v1861_v12 = vsel %vm615_vm0, %v1856_v56, %v1860_v43 }
 0x233   : > { %v8411_v47 = vadd.f32 %v8331_v6, %v2298_v13  ;;  %v2809_v6 = vshrl.u32 %v7208_v4, 16 }
 0x234   : > { %2999 = vmatmul.bf16.gmra.mxu3 %v2808_v62 }
 0x235   : > { %v2811_v34 = vor.u32 %v2809_v6, %v2807_v31  ;;  %v7195_v31 = vld [vmem:[%s7684_s20 + $0x80] sm:$0xff] }
 0x236   : > { %v1983_v49 = vpop.f32.mrf.mxu0 }
 0x237   : > { %v1568_v18 = vpop.f32.mrf.mxu3  ;;  %v2058_v63 = vadd.f32 %v1983_v49, %v8134_v24  ;;  %v7244_v24 = vld [vmem:[%s10188_s4 + $0x30] sm:$0xff]  ;;  %v2816_v13 = vsel %vm615_vm0, %v2811_v34, %v2815_v55  ;;  %v2132_v49 = vrot.slane %v8453_v27, 1  ;;  %v2817_v34 = vshrl.u32 %v8414_v30, 16 }
 0x238   : > { %v8420_v46 = vadd.f32 %v1568_v18, %v8147_v20  ;;  %v8429_v20 = vpop.f32.mrf.mxu1  ;;  %v8438_v4 = vpop.f32.mrf.mxu2  ;;  %4242 = vmatpush.bf16.msra.mxu2 %v7244_v24  ;;  %v2821_v24 = vshll.u32 %v8463_v44, 16 }
 0x239   : > { %v2299_v7 = vadd.f32 %v8346_v39, %v2058_v63  ;;  %v1298_v39 = vadd.f32 %v8164_v17, %v1040_v61  ;;  %v7252_v17 = vld [vmem:[%s10188_s4 + $0x70] sm:$0xff]  ;;  %2596 = vmatmul.bf16.gmra.mxu2 %v7195_v31  ;;  %v2133_v63 = vsel %vm1085_vm1, %v2130_v9, %v2132_v49  ;;  %v1862_v61 = vshrl.u32 %v8367_v2, 16 }
 0x23a   : > { %4113 = vmatpush.bf16.msra.mxu1 %v7252_v17  ;;  %v2823_v30 = vrot.slane %v2821_v24, 1  ;;  %v8501_v17 = vld [vmem:[%s7684_s20 + $0x84] sm:$0xff] }
 0x23b   : > { %v8432_v52 = vadd.f32 %v8355_v10, %v2299_v7  ;;  %v7231_v10 = vld [vmem:[%s10185_s1 + $0x208] sm:$0xff] }
 0x23c   : > { %3228 = vmatpush.bf16.msra.mxu0 %v7231_v10 }
 0x23e   : > { %v1986_v21 = vpop.f32.mrf.mxu0 }
 0x23f   : > { %v1570_v35 = vpop.f32.mrf.mxu3  ;;  %v2059_v62 = vadd.f32 %v1986_v21, %v8150_v15 }
 0x240   : > { %v8440_v38 = vadd.f32 %v1570_v35, %v1298_v39  ;;  %v8457_v22 = vpop.f32.mrf.mxu1  ;;  %v8468_v6 = vpop.f32.mrf.mxu2  ;;  %v1045_v39 = vadd.f32 %v8246_v48, %v8181_v60 }
 0x241   : > { %v2300_v18 = vadd.f32 %v8371_v36, %v2059_v62  ;;  %2025 = vmatmul.bf16.gmra.mxu0 %v1861_v12  ;;  %2276 = vmatmul.bf16.gmra.mxu1 %v2133_v63  ;;  %v7196_v62 = vld [vmem:[%s7684_s20 + $0x88] sm:$0xff]  ;;  %v8505_v63 = vstv %s3481_s21 }
 0x242   : > { %v1300_v12 = vadd.f32 %v8249_v16, %v1045_v39  ;;  %v1048_v16 = vadd.f32 %v7874_v54, %v8190_v28  ;;  %v2134_v54 = vrot.slane %v8501_v17, 1 }
 0x243   : > { %v8460_v15 = vadd.f32 %v8378_v33, %v2300_v18  ;;  %v1866_v33 = vshll.u32 %v8404_v23, 16  ;;  %v8503_v18 = vstv %s3479_s27 }
 0x244   : > { %3004 = vmatmul.bf16.gmra.mxu3 %v2816_v13  ;;  %v2135_v24 = vsel %vm1085_vm1, %v2132_v49, %v2134_v54  ;;  %v1050_v49 = vadd.f32 %v7881_v3, %v8206_v5  ;;  %v3578_v3 = vld [vmem:[%s10191_s7 + $0x8] sm:$0xff] }
 0x245   : > { %v1868_v35 = vrot.slane %v1866_v33, 1  ;;  %v1301_v33 = vadd.f32 %v7935_v19, %v1048_v16  ;;  %v1874_v19 = vshll.u32 %v8453_v27, 16 }
 0x246   : > { %v1988_v7 = vpop.f32.mrf.mxu0 }
 0x247   : > { %v1573_v36 = vpop.f32.mrf.mxu3  ;;  %v2060_v56 = vadd.f32 %v1988_v7, %v8166_v58  ;;  %v2819_v58 = vor.u32 %v2817_v34, %v2815_v55  ;;  %v8555_v5 = vrot.slane %v1874_v19, 1 }
 0x248   : > { %v8472_v37 = vadd.f32 %v1573_v36, %v8176_v25  ;;  %v1864_v25 = vor.u32 %v1862_v61, %v1860_v43  ;;  %v8482_v21 = vpop.f32.mrf.mxu1  ;;  %v8488_v10 = vpop.f32.mrf.mxu2  ;;  %v7511_v61 = vmov 0  }
 0x249   : > { %v2301_v9 = vadd.f32 %v8389_v51, %v2060_v56  ;;  %v3445_v51 = vlaneseq  ;;  %v2824_v55 = vsel %vm615_vm0, %v2819_v58, %v2823_v30  ;;  %2601 = vmatmul.bf16.gmra.mxu2 %v7196_v62  ;;  %7453 = vset.pattern.permute.xlu0 %v7511_v61 }
 0x24a   : > { %v1869_v43 = vsel %vm615_vm0, %v1864_v25, %v1868_v35  ;;  %7454 = vset.pattern.permute.xlu1 %v7511_v61  ;;  %7455 = vset.pattern.permute.xlu2 %v7511_v61  ;;  %v6310_v61 = vld [vmem:[%s7684_s20 + $0x8c] sm:$0xf] }
 0x24b   : > { %v8485_v2 = vadd.f32 %v8395_v0, %v2301_v9  ;;  %v8494_v13 = vshrl.u32 %v3445_v51, 7  ;;  %v1870_v9 = vshrl.u32 %v8404_v23, 16  ;;  %v2825_v51 = vshrl.u32 %v8463_v44, 16 }
 0x24d   : > { %vm3483_vm2 = vcmp.ge.s32.totalorder %v8494_v13, %v8503_v18  ;;  %vm3515_vm3 = vcmp.lt.s32.totalorder %v8494_v13, %v8505_v63  ;;  %v3447_v58 = vadd.s32 8, %v8494_v13  ;;  %v3448_v23 = vadd.s32 16, %v8494_v13 }
 0x24e   : > { %v1991_v48 = vpop.f32.mrf.mxu0  ;;  %vm3546_vm4 = vmand %vm3483_vm2, %vm3515_vm3  ;;  %v3452_v19 = vadd.s32 48, %v8494_v13 }
 0x24f   : > { %v1575_v31 = vpop.f32.mrf.mxu3  ;;  %v2061_v0 = vadd.f32 %v1991_v48, %v8179_v8  ;;  %v3577_v8 = vld [vmem:[%s10191_s7] sm:$0xff]  ;;  %vm3484_vm5 = vcmp.ge.s32.totalorder %v3447_v58, %v8503_v18  ;;  %vm3516_vm6 = vcmp.lt.s32.totalorder %v3447_v58, %v8505_v63  ;;  %vm3485_vm8 = vcmp.ge.s32.totalorder %v3448_v23, %v8503_v18 }
 0x250   : > { %v8490_v60 = vadd.f32 %v1575_v31, %v1300_v12  ;;  %v8513_v7 = vpop.f32.mrf.mxu1  ;;  %v3608_v56 = vsel %vm3546_vm4, %v3577_v8, 0.0  ;;  %v8525_v34 = vpop.f32.mrf.mxu2  ;;  %vm8548_vm7 = vmand %vm3484_vm5, %vm3516_vm6  ;;  %vm3517_vm9 = vcmp.lt.s32.totalorder %v3448_v23, %v8505_v63  ;;  %v10238_v23 = vld [vmem:[#allocation7_spill] sm:$0xff]  ;;  %vm3489_vm11 = vcmp.ge.s32.totalorder %v3452_v19, %v8503_v18 }
 0x251   : > { %v2302_v36 = vadd.f32 %v8408_v40, %v2061_v0  ;;  %2030 = vmatmul.bf16.gmra.mxu0 %v1869_v43  ;;  %v8522_v40 = vld [vmem:[%s7684_s20 + $0x48] sm:$0xff]  ;;  %3641 = vperm.xlu0 %7453, %v3608_v56   ;;  %v1872_v43 = vor.u32 %v1870_v9, %v1868_v35  ;;  %v3609_v62 = vsel %vm8548_vm7, %v3578_v3, 0.0  ;;  %vm3548_vm10 = vmand %vm3485_vm8, %vm3517_vm9  ;;  %vm3521_vm12 = vcmp.lt.s32.totalorder %v3452_v19, %v8505_v63 }
 0x252   : > { %2281 = vmatmul.bf16.gmra.mxu1 %v2135_v24  ;;  %v2829_v31 = vshll.u32 %v8522_v40, 16  ;;  %v3579_v0 = vld [vmem:[%s10191_s7 + $0x10] sm:$0xff]  ;;  %v7251_v3 = vld [vmem:[%s10188_s4 + $0x68] sm:$0xff]  ;;  %vm8599_vm13 = vmand %vm3489_vm11, %vm3521_vm12 }
 0x253   : > { %v8519_v28 = vadd.f32 %v8417_v11, %v2302_v36  ;;  %v3610_v8 = vsel %vm3548_vm10, %v3579_v0, 0.0  ;;  %v1877_v9 = vsel %vm615_vm0, %v1872_v43, %v8555_v5  ;;  %4114 = vmatpush.bf16.msra.mxu1 %v7251_v3  ;;  %v3453_v3 = vadd.s32 56, %v8494_v13 }
 0x254   : > { %3009 = vmatmul.bf16.gmra.mxu3 %v2824_v55  ;;  %v8563_v35 = vrot.slane %v2829_v31, 1  ;;  %v10236_v55 = vld [vmem:[#allocation10_spill] sm:$0xff]  ;;  %3651 = vperm.xlu1 %7454, %v3610_v8   ;;  %v8617_v8 = vld [vmem:[%s7684_s20 + $0x50] sm:$0xff] }
 0x255   : > { %v1302_v16 = vadd.f32 %v10236_v55, %v1050_v49  ;;  %v10237_v49 = vld [vmem:[#allocation15_spill] sm:$0xff]  ;;  %vm3490_vm6 = vcmp.ge.s32.totalorder %v3453_v3, %v8503_v18  ;;  %vm3522_vm7 = vcmp.lt.s32.totalorder %v3453_v3, %v8505_v63 }
 0x256   : > { %v1993_v25 = vpop.f32.mrf.mxu0  ;;  %vm3553_vm8 = vmand %vm3490_vm6, %vm3522_vm7  ;;  %v10249_v3 = vld [vmem:[#allocation19_spill] sm:$0xff] }
 0x257   : > { %v1578_v11 = vpop.f32.mrf.mxu3  ;;  %v2062_v12 = vadd.f32 %v1993_v25, %v8188_v32  ;;  %v7197_v25 = vld [vmem:[%s7684_s20 + $0x90] sm:$0xff]  ;;  %v1053_v32 = vadd.f32 %v10238_v23, %v10237_v49  ;;  %v2833_v23 = vshrl.u32 %v8522_v40, 16 }
 0x258   : > { %v8533_v39 = vadd.f32 %v1578_v11, %v1301_v33  ;;  %v8557_v44 = vpop.f32.mrf.mxu1  ;;  %v8569_v36 = vpop.f32.mrf.mxu2  ;;  %v7165_v33 = vld [vmem:[%s7684_s20 + $0x8c] sm:$0x10] }
 0x259   : > { %v8546_v48 = vadd.f32 %v8429_v20, %v2062_v12  ;;  %v2827_v20 = vor.u32 %v2825_v51, %v2823_v30  ;;  %3646 = vperm.xlu0 %7453, %v3609_v62   ;;  %v7243_v30 = vld [vmem:[%s10188_s4 + $0x28] sm:$0xff]  ;;  %v7230_v51 = vld [vmem:[%s10185_s1 + $0x200] sm:$0xff]  ;;  %v8588_v31 = vor.u32 %v7165_v33, %v6310_v61  ;;  %2606 = vmatmul.bf16.gmra.mxu2 %v7197_v25  ;;  %v3580_v33 = vld [vmem:[%s10191_s7 + $0x18] sm:$0xff]  ;;  %v1878_v25 = vshrl.u32 %v8453_v27, 16 }
 0x25a   : > { %4243 = vmatpush.bf16.msra.mxu2 %v7243_v30  ;;  %3229 = vmatpush.bf16.msra.mxu0 %v7230_v51  ;;  %v10242_v51 = vld [vmem:[#allocation14_spill] sm:$0xff] }
 0x25b   : > { %v2832_v12 = vsel %vm615_vm0, %v2827_v20, %v8563_v35  ;;  %v3583_v20 = vld [vmem:[%s10191_s7 + $0x30] sm:$0xff]  ;;  %v2136_v0 = vrot.slane %v8588_v31, 1  ;;  %v1880_v62 = vor.u32 %v1878_v25, %v8555_v5  ;;  %v3584_v5 = vld [vmem:[%s10191_s7 + $0x38] sm:$0xff] }
 0x25d   : > { %v2137_v61 = vsel %vm1085_vm1, %v2134_v54, %v2136_v0  ;;  %v1882_v54 = vshll.u32 %v8501_v17, 16 }
 0x25e   : > { %v1996_v11 = vpop.f32.mrf.mxu0 }
 0x25f   : > { %v1580_v56 = vpop.f32.mrf.mxu3  ;;  %v2063_v58 = vadd.f32 %v1996_v11, %v8204_v26  ;;  %v3449_v26 = vadd.s32 24, %v8494_v13 }
 0x260   : > { %v8576_v24 = vadd.f32 %v1580_v56, %v1302_v16  ;;  %v8607_v55 = vpop.f32.mrf.mxu1  ;;  %v10241_v56 = vld [vmem:[#allocation11_spill] sm:$0xff]  ;;  %v8628_v11 = vpop.f32.mrf.mxu2 }
 0x261   : > { %v2304_v43 = vadd.f32 %v8457_v22, %v2063_v58  ;;  %2035 = vmatmul.bf16.gmra.mxu0 %v1877_v9  ;;  %v3614_v22 = vsel %vm8599_vm13, %v3583_v20, 0.0  ;;  %vm3486_vm14 = vcmp.ge.s32.totalorder %v3449_v26, %v8503_v18  ;;  %vm3518_vm15 = vcmp.lt.s32.totalorder %v3449_v26, %v8505_v63  ;;  %v10243_v26 = vld [vmem:[#allocation17_spill] sm:$0xff]  ;;  %v3586_v20 = vld [vmem:[%s10191_s7 + $0x48] sm:$0xff] }
 0x262   : > { %vm3549_vm2 = vmand %vm3486_vm14, %vm3518_vm15  ;;  %v1303_v30 = vadd.f32 %v10241_v56, %v1053_v32  ;;  %3671 = vperm.xlu0 %7453, %v3614_v22   ;;  %2286 = vmatmul.bf16.gmra.mxu1 %v2137_v61  ;;  %v2837_v32 = vshll.u32 %v8617_v8, 16  ;;  %v1884_v22 = vrot.slane %v1882_v54, 1  ;;  %v2835_v56 = vor.u32 %v2833_v23, %v8563_v35  ;;  %v10248_v23 = vld [vmem:[#allocation16_spill] sm:$0xff] }
 0x263   : > { %v8614_v16 = vadd.f32 %v8468_v6, %v2304_v43  ;;  %v3611_v6 = vsel %vm3549_vm2, %v3580_v33, 0.0  ;;  %v10244_v43 = vld [vmem:[#allocation8_spill] sm:$0xff]  ;;  %v3458_v35 = vadd.s32 96, %v8494_v13 }
 0x264   : > { %3014 = vmatmul.bf16.gmra.mxu3 %v2832_v12  ;;  %3656 = vperm.xlu1 %7454, %v3611_v6   ;;  %v3455_v12 = vadd.s32 72, %v8494_v13  ;;  %v1055_v27 = vadd.f32 %v10244_v43, %v10243_v26  ;;  %v10246_v6 = vld [vmem:[#allocation12_spill] sm:$0xff]  ;;  %v1885_v26 = vsel %vm615_vm0, %v1880_v62, %v1884_v22  ;;  %v2841_v62 = vshrl.u32 %v8617_v8, 16 }
 0x265   : > { %vm3495_vm9 = vcmp.ge.s32.totalorder %v3458_v35, %v8503_v18  ;;  %vm3527_vm10 = vcmp.lt.s32.totalorder %v3458_v35, %v8505_v63 }
 0x266   : > { %v1998_v58 = vpop.f32.mrf.mxu0  ;;  %vm3492_vm3 = vcmp.ge.s32.totalorder %v3455_v12, %v8503_v18  ;;  %vm3524_vm4 = vcmp.lt.s32.totalorder %v3455_v12, %v8505_v63  ;;  %vm8672_vm11 = vmand %vm3495_vm9, %vm3527_vm10 }
 0x267   : > { %v1583_v9 = vpop.f32.mrf.mxu3  ;;  %v8636_v49 = vadd.f32 %v1998_v58, %v10242_v51  ;;  %vm3555_vm5 = vmand %vm3492_vm3, %vm3524_vm4  ;;  %v3615_v58 = vsel %vm3553_vm8, %v3584_v5, 0.0 }
 0x268   : > { %v8631_v19 = vadd.f32 %v1583_v9, %v1303_v30  ;;  %v8649_v61 = vpop.f32.mrf.mxu1  ;;  %v3617_v33 = vsel %vm3555_vm5, %v3586_v20, 0.0  ;;  %v2839_v30 = vrot.slane %v2837_v32, 1  ;;  %v1304_v9 = vadd.f32 %v10246_v6, %v1055_v27  ;;  %v8658_v25 = vpop.f32.mrf.mxu2  ;;  %v10250_v27 = vld [vmem:[#allocation9_spill] sm:$0xff] }
 0x269   : > { %10245 = vst [vmem:[#allocation10_spill] sm:$0xff] %v8649_v61  ;;  %v1058_v20 = vadd.f32 %v10250_v27, %v10249_v3  ;;  %v1890_v27 = vshll.u32 %v8588_v31, 16 }
 0x26a   : > { %10247 = vst [vmem:[#allocation15_spill] sm:$0xff] %v8658_v25  ;;  %3686 = vperm.xlu0 %7453, %v3617_v33   ;;  %v2840_v43 = vsel %vm615_vm0, %v2835_v56, %v2839_v30  ;;  %v3456_v33 = vadd.s32 80, %v8494_v13  ;;  %v3589_v56 = vld [vmem:[%s10191_s7 + $0x60] sm:$0xff] }
 0x26c   : > { %3676 = vperm.xlu1 %7454, %v3615_v58   ;;  %vm3493_vm12 = vcmp.ge.s32.totalorder %v3456_v33, %v8503_v18  ;;  %vm3525_vm13 = vcmp.lt.s32.totalorder %v3456_v33, %v8505_v63  ;;  %v8689_v58 = vld [vmem:[%s7684_s20 + $0x58] sm:$0xff]  ;;  %v3461_v33 = vadd.s32 120, %v8494_v13 }
 0x26d   : > { %vm3556_vm14 = vmand %vm3493_vm12, %vm3525_vm13 }
 0x26e   : > { %v2001_v51 = vpop.f32.mrf.mxu0  ;;  %vm3498_vm15 = vcmp.ge.s32.totalorder %v3461_v33, %v8503_v18  ;;  %vm3530_vm2 = vcmp.lt.s32.totalorder %v3461_v33, %v8505_v63 }
 0x26f   : > { %v1585_v54 = vpop.f32.mrf.mxu3  ;;  %v2065_v32 = vadd.f32 %v2001_v51, %v10248_v23  ;;  %v10253_v51 = vld [vmem:[#allocation13_spill] sm:$0xff]  ;;  %vm3561_vm3 = vmand %vm3498_vm15, %vm3530_vm2 }
 0x270   : > { %v8660_v12 = vadd.f32 %v1585_v54, %v1304_v9  ;;  %v8679_v6 = vpop.f32.mrf.mxu1  ;;  %v3620_v9 = vsel %vm8672_vm11, %v3589_v56, 0.0  ;;  %v3587_v54 = vld [vmem:[%s10191_s7 + $0x50] sm:$0xff]  ;;  %v8695_v35 = vpop.f32.mrf.mxu2  ;;  %v2845_v56 = vshll.u32 %v8689_v58, 16 }
 0x271   : > { %v2306_v5 = vadd.f32 %v8513_v7, %v2065_v32  ;;  %2040 = vmatmul.bf16.gmra.mxu0 %v1885_v26  ;;  %v1305_v26 = vadd.f32 %v10253_v51, %v1058_v20  ;;  %v3618_v23 = vsel %vm3556_vm14, %v3587_v54, 0.0  ;;  %v8715_v54 = vrot.slane %v1890_v27, 1 }
 0x272   : > { %3701 = vperm.xlu0 %7453, %v3620_v9   ;;  %2290 = vmatmul.bf16.gmra.mxu1 %v2136_v0  ;;  %v3592_v9 = vld [vmem:[%s10191_s7 + $0x78] sm:$0xff] }
 0x273   : > { %v8686_v7 = vadd.f32 %v8525_v34, %v2306_v5  ;;  %v10254_v5 = vld [vmem:[#allocation18_spill] sm:$0xff] }
 0x274   : > { %3019 = vmatmul.bf16.gmra.mxu3 %v2840_v43  ;;  %v1886_v43 = vshrl.u32 %v8501_v17, 16  ;;  %3691 = vperm.xlu1 %7454, %v3618_v23   ;;  %v3459_v17 = vadd.s32 104, %v8494_v13  ;;  %v2843_v23 = vor.u32 %v2841_v62, %v2839_v30  ;;  %v10257_v30 = vld [vmem:[#allocation20_spill] sm:$0xff] }
 0x276   : > { %v2003_v3 = vpop.f32.mrf.mxu0  ;;  %v1888_v0 = vor.u32 %v1886_v43, %v1884_v22  ;;  %vm3496_vm4 = vcmp.ge.s32.totalorder %v3459_v17, %v8503_v18  ;;  %vm3528_vm5 = vcmp.lt.s32.totalorder %v3459_v17, %v8505_v63  ;;  %v3590_v22 = vld [vmem:[%s10191_s7 + $0x68] sm:$0xff]  ;;  %v3464_v17 = vadd.s32 144, %v8494_v13 }
 0x277   : > { %v1588_v32 = vpop.f32.mrf.mxu3  ;;  %v8705_v20 = vadd.f32 %v2003_v3, %v10254_v5  ;;  %vm3559_vm6 = vmand %vm3496_vm4, %vm3528_vm5 }
 0x278   : > { %v8700_v34 = vadd.f32 %v1588_v32, %v1305_v26  ;;  %v8717_v51 = vpop.f32.mrf.mxu1  ;;  %v3623_v26 = vsel %vm3561_vm3, %v3592_v9, 0.0  ;;  %v2847_v32 = vrot.slane %v2845_v56, 1  ;;  %v8724_v43 = vpop.f32.mrf.mxu2  ;;  %v3621_v3 = vsel %vm3559_vm6, %v3590_v22, 0.0  ;;  %v7242_v9 = vld [vmem:[%s10188_s4 + $0x20] sm:$0xff] }
 0x279   : > { %10255 = vst [vmem:[#allocation7_spill] sm:$0xff] %v8717_v51  ;;  %v1893_v5 = vsel %vm615_vm0, %v1888_v0, %v8715_v54  ;;  %vm3501_vm7 = vcmp.ge.s32.totalorder %v3464_v17, %v8503_v18  ;;  %vm3533_vm8 = vcmp.lt.s32.totalorder %v3464_v17, %v8505_v63  ;;  %4244 = vmatpush.bf16.msra.mxu2 %v7242_v9  ;;  %v7250_v17 = vld [vmem:[%s10188_s4 + $0x60] sm:$0xff]  ;;  %v3467_v22 = vadd.s32 168, %v8494_v13  ;;  %v10265_v51 = vld [vmem:[#allocation22_spill] sm:$0xff] }
 0x27a   : > { %10256 = vst [vmem:[#allocation11_spill] sm:$0xff] %v8724_v43  ;;  %3716 = vperm.xlu0 %7453, %v3623_v26   ;;  %v2848_v56 = vsel %vm615_vm0, %v2843_v23, %v2847_v32  ;;  %v3450_v26 = vadd.s32 32, %v8494_v13  ;;  %vm8738_vm9 = vmand %vm3501_vm7, %vm3533_vm8  ;;  %v3595_v23 = vld [vmem:[%s10191_s7 + $0x90] sm:$0xff]  ;;  %4115 = vmatpush.bf16.msra.mxu1 %v7250_v17  ;;  %v3465_v17 = vadd.s32 152, %v8494_v13 }
 0x27b   : > { %vm3504_vm2 = vcmp.ge.s32.totalorder %v3467_v22, %v8503_v18  ;;  %vm3536_vm3 = vcmp.lt.s32.totalorder %v3467_v22, %v8505_v63 }
 0x27c   : > { %3706 = vperm.xlu1 %7454, %v3621_v3   ;;  %v3462_v3 = vadd.s32 128, %v8494_v13  ;;  %vm3487_vm10 = vcmp.ge.s32.totalorder %v3450_v26, %v8503_v18  ;;  %vm3519_vm11 = vcmp.lt.s32.totalorder %v3450_v26, %v8505_v63  ;;  %vm8782_vm4 = vmand %vm3504_vm2, %vm3536_vm3  ;;  %vm3502_vm7 = vcmp.ge.s32.totalorder %v3465_v17, %v8503_v18 }
 0x27d   : > { %vm3550_vm12 = vmand %vm3487_vm10, %vm3519_vm11 }
 0x27e   : > { %v2006_v27 = vpop.f32.mrf.mxu0  ;;  %vm3499_vm13 = vcmp.ge.s32.totalorder %v3462_v3, %v8503_v18  ;;  %vm3531_vm14 = vcmp.lt.s32.totalorder %v3462_v3, %v8505_v63  ;;  %v2849_v3 = vshrl.u32 %v8689_v58, 16 }
 0x27f   : > { %v1590_v33 = vpop.f32.mrf.mxu3  ;;  %v2067_v62 = vadd.f32 %v2006_v27, %v10257_v30  ;;  %v3581_v30 = vld [vmem:[%s10191_s7 + $0x20] sm:$0xff]  ;;  %vm3562_vm15 = vmand %vm3499_vm13, %vm3531_vm14 }
 0x280   : > { %v8747_v33 = vld [vmem:[%s7684_s20 + $0x60] sm:$0xff]  ;;  %v8749_v27 = vpop.f32.mrf.mxu1 }
 0x281   : > { %v2308_v0 = vadd.f32 %v8607_v55, %v2067_v62  ;;  %2045 = vmatmul.bf16.gmra.mxu0 %v1893_v5  ;;  %v3626_v55 = vsel %vm8738_vm9, %v3595_v23, 0.0  ;;  %v8766_v62 = vpop.f32.mrf.mxu2  ;;  %v10260_v23 = vld [vmem:[#allocation21_spill] sm:$0xff]  ;;  %vm3534_vm9 = vcmp.lt.s32.totalorder %v3465_v17, %v8505_v63  ;;  %v3470_v17 = vadd.s32 192, %v8494_v13 }
 0x282   : > { %3731 = vperm.xlu0 %7453, %v3626_v55   ;;  %v3451_v55 = vadd.s32 40, %v8494_v13  ;;  %vm3565_vm10 = vmand %vm3502_vm7, %vm3534_vm9  ;;  %v2857_v61 = vshrl.u32 %v8747_v33, 16 }
 0x283   : > { %v8756_v5 = vadd.f32 %v8628_v11, %v2308_v0  ;;  %v3593_v11 = vld [vmem:[%s10191_s7 + $0x80] sm:$0xff]  ;;  %vm3507_vm11 = vcmp.ge.s32.totalorder %v3470_v17, %v8503_v18 }
 0x284   : > { %3024 = vmatmul.bf16.gmra.mxu3 %v2848_v56  ;;  %v3612_v56 = vsel %vm3550_vm12, %v3581_v30, 0.0  ;;  %v3624_v26 = vsel %vm3562_vm15, %v3593_v11, 0.0  ;;  %v2853_v30 = vshll.u32 %v8747_v33, 16  ;;  %vm3488_vm5 = vcmp.ge.s32.totalorder %v3451_v55, %v8503_v18  ;;  %v3596_v11 = vld [vmem:[%s10191_s7 + $0x98] sm:$0xff] }
 0x285   : > { %3661 = vperm.xlu2 %7455, %v3612_v56   ;;  %3721 = vperm.xlu1 %7454, %v3624_v26   ;;  %v1894_v56 = vshrl.u32 %v8588_v31, 16  ;;  %vm3520_vm6 = vcmp.lt.s32.totalorder %v3451_v55, %v8505_v63  ;;  %v2851_v31 = vor.u32 %v2849_v3, %v2847_v32  ;;  %v3627_v3 = vsel %vm3565_vm10, %v3596_v11, 0.0  ;;  %v7383_v11 = vld [vmem:[%s7684_s20 + $0x18] sm:$0xe] }
 0x286   : > { %v2008_v0 = vpop.f32.mrf.mxu0  ;;  %v8796_v22 = vrot.slane %v2853_v30, 1  ;;  %vm3551_vm8 = vmand %vm3488_vm5, %vm3520_vm6  ;;  %vm3539_vm12 = vcmp.lt.s32.totalorder %v3470_v17, %v8505_v63 }
 0x287   : > { %v1592_v9 = vpop.f32.mrf.mxu3  ;;  %v8773_v43 = vadd.f32 %v2008_v0, %v10260_v23  ;;  %v3582_v23 = vld [vmem:[%s10191_s7 + $0x28] sm:$0xff]  ;;  %v1896_v32 = vor.u32 %v1894_v56, %v8715_v54  ;;  %v3454_v54 = vadd.s32 64, %v8494_v13  ;;  %vm8816_vm13 = vmand %vm3507_vm11, %vm3539_vm12 }
 0x288   : > { %v3598_v9 = vld [vmem:[%s10191_s7 + $0xa8] sm:$0xff]  ;;  %v8789_v26 = vpop.f32.mrf.mxu1 }
 0x289   : > { %10263 = vst [vmem:[#allocation14_spill] sm:$0xff] %v8789_v26  ;;  %v3629_v0 = vsel %vm8782_vm4, %v3598_v9, 0.0  ;;  %v8805_v9 = vpop.f32.mrf.mxu2  ;;  %v3613_v26 = vsel %vm3551_vm8, %v3582_v23, 0.0  ;;  %v7382_v23 = vld [vmem:[%s7684_s20 + $0x18] sm:$0xf0]  ;;  %vm3491_vm14 = vcmp.ge.s32.totalorder %v3454_v54, %v8503_v18  ;;  %vm3523_vm15 = vcmp.lt.s32.totalorder %v3454_v54, %v8505_v63 }
 0x28a   : > { %10264 = vst [vmem:[#allocation17_spill] sm:$0xff] %v8805_v9  ;;  %3746 = vperm.xlu0 %7453, %v3629_v0   ;;  %v2856_v9 = vsel %vm615_vm0, %v2851_v31, %v8796_v22  ;;  %v3468_v0 = vadd.s32 176, %v8494_v13  ;;  %v8825_v31 = vld [vmem:[%s7684_s20 + $0x68] sm:$0xff]  ;;  %vm3554_vm2 = vmand %vm3491_vm14, %vm3523_vm15 }
 0x28c   : > { %vm3505_vm3 = vcmp.ge.s32.totalorder %v3468_v0, %v8503_v18  ;;  %vm3537_vm4 = vcmp.lt.s32.totalorder %v3468_v0, %v8505_v63 }
 0x28d   : > { %3666 = vperm.xlu2 %7455, %v3613_v26   ;;  %3736 = vperm.xlu1 %7454, %v3627_v3   ;;  %vm3568_vm5 = vmand %vm3505_vm3, %vm3537_vm4 }
 0x28e   : > { %v2011_v30 = vpop.f32.mrf.mxu0 }
 0x28f   : > { %v1593_v55 = vpop.f32.mrf.mxu3  ;;  %v2069_v25 = vadd.f32 %v2011_v30, %v10265_v51  ;;  %v3601_v51 = vld [vmem:[%s10191_s7 + $0xc0] sm:$0xff] }
 0x290   : > { %v8829_v55 = vpop.f32.mrf.mxu1 }
 0x291   : > { %v2310_v56 = vadd.f32 %v8679_v6, %v2069_v25  ;;  %2049 = vmatmul.bf16.gmra.mxu0 %v1896_v32  ;;  %v3632_v25 = vsel %vm8816_vm13, %v3601_v51, 0.0  ;;  %v3599_v32 = vld [vmem:[%s10191_s7 + $0xb0] sm:$0xff]  ;;  %v8846_v3 = vpop.f32.mrf.mxu2  ;;  %v3473_v51 = vadd.s32 216, %v8494_v13 }
 0x292   : > { %3761 = vperm.xlu0 %7453, %v3632_v25   ;;  %v3630_v54 = vsel %vm3568_vm5, %v3599_v32, 0.0 }
 0x293   : > { %v8836_v6 = vadd.f32 %v8695_v35, %v2310_v56  ;;  %v7384_v35 = vor.u32 %v7383_v11, %v7382_v23  ;;  %vm3510_vm6 = vcmp.ge.s32.totalorder %v3473_v51, %v8503_v18  ;;  %vm3542_vm7 = vcmp.lt.s32.totalorder %v3473_v51, %v8505_v63  ;;  %v3602_v51 = vld [vmem:[%s10191_s7 + $0xc8] sm:$0xff] }
 0x294   : > { %3029 = vmatmul.bf16.gmra.mxu3 %v2856_v9  ;;  %v3585_v9 = vld [vmem:[%s10191_s7 + $0x40] sm:$0xff]  ;;  %v3457_v23 = vadd.s32 88, %v8494_v13  ;;  %vm8862_vm8 = vmand %vm3510_vm6, %vm3542_vm7 }
 0x295   : > { %v3616_v30 = vsel %vm3554_vm2, %v3585_v9, 0.0  ;;  %3751 = vperm.xlu1 %7454, %v3630_v54   ;;  %v2861_v9 = vshll.u32 %v8825_v31, 16  ;;  %v3124_v11 = vrot.slane %v7384_v35, 1  ;;  %v2859_v35 = vor.u32 %v2857_v61, %v8796_v22 }
 0x296   : > { %v2013_v26 = vpop.f32.mrf.mxu0  ;;  %3681 = vperm.xlu2 %7455, %v3616_v30   ;;  %vm3494_vm9 = vcmp.ge.s32.totalorder %v3457_v23, %v8503_v18  ;;  %vm3526_vm10 = vcmp.lt.s32.totalorder %v3457_v23, %v8505_v63 }
 0x297   : > { %v2990_v17 = vpop.f32.mrf.mxu3  ;;  %v8853_v0 = vadd.f32 %v2013_v26, %v8314_v41  ;;  %v3604_v41 = vld [vmem:[%s10191_s7 + $0xd8] sm:$0xff]  ;;  %v2863_v54 = vrot.slane %v2861_v9, 1  ;;  %vm3557_vm12 = vmand %vm3494_vm9, %vm3526_vm10  ;;  %v10272_v9 = vrot.slane %v8296_v42, 1 }
 0x298   : > { %v8849_v56 = vadd.f32 %v2990_v17, %v8327_v50  ;;  %v3471_v50 = vadd.s32 200, %v8494_v13  ;;  %v8869_v30 = vpop.f32.mrf.mxu1  ;;  %v3635_v17 = vsel %vm8862_vm8, %v3604_v41, 0.0  ;;  %v3588_v26 = vld [vmem:[%s10191_s7 + $0x58] sm:$0xff] }
 0x299   : > { %10270 = vst [vmem:[#allocation8_spill] sm:$0xff] %v8869_v30  ;;  %v8884_v32 = vpop.f32.mrf.mxu2  ;;  %v3619_v41 = vsel %vm3557_vm12, %v3588_v26, 0.0  ;;  %v3126_v30 = vsel %vm1085_vm1, %v3124_v11, %v10272_v9  ;;  %v2864_v26 = vsel %vm615_vm0, %v2859_v35, %v2863_v54  ;;  %v7241_v11 = vld [vmem:[%s10188_s4 + $0x18] sm:$0xff]  ;;  %v3474_v35 = vadd.s32 224, %v8494_v13 }
 0x29a   : > { %vm3508_vm11 = vcmp.ge.s32.totalorder %v3471_v50, %v8503_v18  ;;  %vm3540_vm13 = vcmp.lt.s32.totalorder %v3471_v50, %v8505_v63  ;;  %10271 = vst [vmem:[#allocation12_spill] sm:$0xff] %v8884_v32  ;;  %3776 = vperm.xlu0 %7453, %v3635_v17   ;;  %v3476_v50 = vadd.s32 240, %v8494_v13  ;;  %4245 = vmatpush.bf16.msra.mxu2 %v7241_v11 }
 0x29b   : > { %vm3571_vm14 = vmand %vm3508_vm11, %vm3540_vm13  ;;  %vm3511_vm7 = vcmp.ge.s32.totalorder %v3474_v35, %v8503_v18  ;;  %vm3543_vm8 = vcmp.lt.s32.totalorder %v3474_v35, %v8505_v63  ;;  %v3463_v35 = vadd.s32 136, %v8494_v13 }
 0x29c   : > { %v3633_v25 = vsel %vm3571_vm14, %v3602_v51, 0.0  ;;  %vm3513_vm15 = vcmp.ge.s32.totalorder %v3476_v50, %v8503_v18  ;;  %vm3545_vm2 = vcmp.lt.s32.totalorder %v3476_v50, %v8505_v63  ;;  %v8911_v51 = vld [vmem:[%s7684_s20 + $0x70] sm:$0xff]  ;;  %vm3574_vm9 = vmand %vm3511_vm7, %vm3543_vm8 }
 0x29d   : > { %3766 = vperm.xlu1 %7454, %v3633_v25   ;;  %vm8902_vm3 = vmand %vm3513_vm15, %vm3545_vm2  ;;  %v2865_v25 = vshrl.u32 %v8825_v31, 16  ;;  %vm3500_vm10 = vcmp.ge.s32.totalorder %v3463_v35, %v8503_v18  ;;  %vm3532_vm11 = vcmp.lt.s32.totalorder %v3463_v35, %v8505_v63 }
 0x29e   : > { %v2016_v22 = vpop.f32.mrf.mxu0  ;;  %3696 = vperm.xlu2 %7455, %v3619_v41   ;;  %vm3563_vm12 = vmand %vm3500_vm10, %vm3532_vm11 }
 0x29f   : > { %v2992_v23 = vpop.f32.mrf.mxu3  ;;  %v2071_v32 = vadd.f32 %v2016_v22, %v8334_v53  ;;  %v3607_v53 = vld [vmem:[%s10191_s7 + $0xf0] sm:$0xff] }
 0x2a0   : > { %v8887_v61 = vadd.f32 %v2992_v23, %v8349_v14  ;;  %v3460_v14 = vadd.s32 112, %v8494_v13  ;;  %v8913_v41 = vpop.f32.mrf.mxu1  ;;  %v3605_v23 = vld [vmem:[%s10191_s7 + $0xe0] sm:$0xff] }
 0x2a1   : > { %v2312_v17 = vadd.f32 %v8749_v27, %v2071_v32  ;;  %3230 = vmatmul.bf16.vlgmr.msra.gmra.mxu0 %v3126_v30  ;;  %v3638_v27 = vsel %vm8902_vm3, %v3607_v53, 0.0  ;;  %v3591_v32 = vld [vmem:[%s10191_s7 + $0x70] sm:$0xff]  ;;  %v8930_v22 = vpop.f32.mrf.mxu2  ;;  %v3636_v50 = vsel %vm3574_vm9, %v3605_v23, 0.0  ;;  %v2869_v53 = vshll.u32 %v8911_v51, 16 }
 0x2a2   : > { %vm3497_vm4 = vcmp.ge.s32.totalorder %v3460_v14, %v8503_v18  ;;  %vm3529_vm5 = vcmp.lt.s32.totalorder %v3460_v14, %v8505_v63  ;;  %3791 = vperm.xlu0 %7453, %v3638_v27   ;;  %v7460_v27 = vld [vmem:[%s7684_s20 + $0x28] sm:$0xff]  ;;  %v2867_v23 = vor.u32 %v2865_v25, %v2863_v54 }
 0x2a3   : > { %v8920_v30 = vadd.f32 %v8766_v62, %v2312_v17  ;;  %vm3560_vm6 = vmand %vm3497_vm4, %vm3529_vm5  ;;  %v7249_v17 = vld [vmem:[%s10188_s4 + $0x58] sm:$0xff] }
 0x2a4   : > { %3034 = vmatmul.bf16.gmra.mxu3 %v2864_v26  ;;  %v3622_v9 = vsel %vm3560_vm6, %v3591_v32, 0.0  ;;  %4116 = vmatpush.bf16.msra.mxu1 %v7249_v17 }
 0x2a5   : > { %3781 = vperm.xlu1 %7454, %v3636_v50  }
 0x2a6   : > { %v2018_v14 = vpop.f32.mrf.mxu0  ;;  %3711 = vperm.xlu2 %7455, %v3622_v9   ;;  %v2871_v9 = vrot.slane %v2869_v53, 1  ;;  %v3466_v53 = vadd.s32 160, %v8494_v13 }
 0x2a7   : > { %v2995_v62 = vpop.f32.mrf.mxu3  ;;  %v8939_v11 = vadd.f32 %v2018_v14, %v8357_v57  ;;  %v3594_v57 = vld [vmem:[%s10191_s7 + $0x88] sm:$0xff] }
 0x2a8   : > { %v8933_v26 = vadd.f32 %v2995_v62, %v8374_v29  ;;  %v3127_v29 = vrot.slane %v7460_v27, 1  ;;  %v8945_v32 = vpop.f32.mrf.mxu1  ;;  %v3625_v50 = vsel %vm3563_vm12, %v3594_v57, 0.0  ;;  %v2872_v25 = vsel %vm615_vm0, %v2867_v23, %v2871_v9 }
 0x2a9   : > { %10275 = vst [vmem:[#allocation16_spill] sm:$0xff] %v8945_v32  ;;  %v8952_v62 = vpop.f32.mrf.mxu2  ;;  %v10277_v32 = vrot.slane %v8296_v42, 1  ;;  %vm3503_vm13 = vcmp.ge.s32.totalorder %v3466_v53, %v8503_v18  ;;  %vm3535_vm14 = vcmp.lt.s32.totalorder %v3466_v53, %v8505_v63 }
 0x2aa   : > { %10276 = vst [vmem:[#allocation19_spill] sm:$0xff] %v8952_v62  ;;  %vm3566_vm15 = vmand %vm3503_vm13, %vm3535_vm14 }
 0x2ab   : > { %v3128_v35 = vsel %vm1085_vm1, %v10277_v32, %v3127_v29 }
 0x2ae   : > { %v2021_v27 = vpop.f32.mrf.mxu0  ;;  %3726 = vperm.xlu2 %7455, %v3625_v50  }
 0x2af   : > { %v2997_v14 = vpop.f32.mrf.mxu3  ;;  %v2073_v54 = vadd.f32 %v2021_v27, %v8381_v45  ;;  %v3597_v45 = vld [vmem:[%s10191_s7 + $0xa0] sm:$0xff] }
 0x2b0   : > { %v8955_v17 = vadd.f32 %v2997_v14, %v8392_v59  ;;  %v8964_v57 = vpop.f32.mrf.mxu1  ;;  %v8972_v59 = vld [vmem:[%s7684_s20 + $0x78] sm:$0xff]  ;;  %v3628_v32 = vsel %vm3566_vm15, %v3597_v45, 0.0 }
 0x2b1   : > { %v2314_v62 = vadd.f32 %v8829_v55, %v2073_v54  ;;  %3235 = vmatmul.bf16.gmra.mxu0 %v3128_v35  ;;  %v8977_v55 = vpop.f32.mrf.mxu2  ;;  %v3469_v35 = vadd.s32 184, %v8494_v13  ;;  %v7461_v54 = vld [vmem:[%s7684_s20 + $0x30] sm:$0xff] }
 0x2b3   : > { %v8969_v42 = vadd.f32 %v8846_v3, %v2314_v62  ;;  %v2873_v3 = vshrl.u32 %v8911_v51, 16  ;;  %v2877_v62 = vshll.u32 %v8972_v59, 16  ;;  %vm3506_vm2 = vcmp.ge.s32.totalorder %v3469_v35, %v8503_v18 }
 0x2b4   : > { %3039 = vmatmul.bf16.gmra.mxu3 %v2872_v25  ;;  %v3129_v25 = vrot.slane %v7461_v54, 1  ;;  %vm3538_vm3 = vcmp.lt.s32.totalorder %v3469_v35, %v8505_v63 }
 0x2b5   : > { %v2879_v45 = vrot.slane %v2877_v62, 1  ;;  %vm3569_vm4 = vmand %vm3506_vm2, %vm3538_vm3  ;;  %v3472_v62 = vadd.s32 208, %v8494_v13 }
 0x2b6   : > { %v2023_v14 = vpop.f32.mrf.mxu0  ;;  %3741 = vperm.xlu2 %7455, %v3628_v32  }
 0x2b7   : > { %v3000_v23 = vpop.f32.mrf.mxu3  ;;  %v8983_v27 = vadd.f32 %v2023_v14, %v8397_v1  ;;  %v3600_v1 = vld [vmem:[%s10191_s7 + $0xb8] sm:$0xff]  ;;  %vm3509_vm5 = vcmp.ge.s32.totalorder %v3472_v62, %v8503_v18  ;;  %vm3541_vm6 = vcmp.lt.s32.totalorder %v3472_v62, %v8505_v63  ;;  %v3475_v62 = vadd.s32 232, %v8494_v13 }
 0x2b8   : > { %v8980_v50 = vadd.f32 %v3000_v23, %v8411_v47  ;;  %v8989_v53 = vpop.f32.mrf.mxu1  ;;  %v2875_v47 = vor.u32 %v2873_v3, %v2871_v9  ;;  %v3631_v23 = vsel %vm3569_vm4, %v3600_v1, 0.0  ;;  %vm3572_vm7 = vmand %vm3509_vm5, %vm3541_vm6 }
 0x2b9   : > { %10278 = vst [vmem:[#allocation9_spill] sm:$0xff] %v8983_v27  ;;  %v8996_v32 = vpop.f32.mrf.mxu2  ;;  %v3130_v27 = vsel %vm1085_vm1, %v3127_v29, %v3129_v25  ;;  %vm3512_vm8 = vcmp.ge.s32.totalorder %v3475_v62, %v8503_v18  ;;  %vm3544_vm9 = vcmp.lt.s32.totalorder %v3475_v62, %v8505_v63 }
 0x2ba   : > { %10279 = vst [vmem:[#allocation13_spill] sm:$0xff] %v8989_v53  ;;  %v2880_v3 = vsel %vm615_vm0, %v2875_v47, %v2879_v45  ;;  %vm3575_vm10 = vmand %vm3512_vm8, %vm3544_vm9 }
 0x2bb   : > { %10280 = vst [vmem:[#allocation18_spill] sm:$0xff] %v8996_v32  ;;  %v9007_v32 = vld [vmem:[%s7684_s20 + $0x80] sm:$0xff] }
 0x2be   : > { %v2026_v53 = vpop.f32.mrf.mxu0  ;;  %3756 = vperm.xlu2 %7455, %v3631_v23  }
 0x2bf   : > { %v3002_v14 = vpop.f32.mrf.mxu3  ;;  %v2075_v9 = vadd.f32 %v2026_v53, %v8420_v46  ;;  %v7240_v46 = vld [vmem:[%s10188_s4 + $0x10] sm:$0xff] }
 0x2c0   : > { %v8999_v54 = vadd.f32 %v3002_v14, %v8432_v52  ;;  %v9009_v1 = vpop.f32.mrf.mxu1  ;;  %4246 = vmatpush.bf16.msra.mxu2 %v7240_v46  ;;  %v2881_v14 = vshrl.u32 %v8972_v59, 16 }
 0x2c1   : > { %v2316_v35 = vadd.f32 %v8913_v41, %v2075_v9  ;;  %3240 = vmatmul.bf16.gmra.mxu0 %v3130_v27  ;;  %v3603_v41 = vld [vmem:[%s10191_s7 + $0xd0] sm:$0xff]  ;;  %v2597_v53 = vpop.f32.mrf.mxu2  ;;  %v2885_v9 = vshll.u32 %v9007_v32, 16 }
 0x2c2   : > { %v3634_v29 = vsel %vm3572_vm7, %v3603_v41, 0.0 }
 0x2c3   : > { %v9014_v52 = vadd.f32 %v8930_v22, %v2316_v35  ;;  %v7462_v35 = vld [vmem:[%s7684_s20 + $0x38] sm:$0xff]  ;;  %v2887_v41 = vrot.slane %v2885_v9, 1 }
 0x2c4   : > { %3044 = vmatmul.bf16.gmra.mxu3 %v2880_v3  ;;  %v7248_v3 = vld [vmem:[%s10188_s4 + $0x50] sm:$0xff]  ;;  %v3131_v46 = vrot.slane %v7462_v35, 1 }
 0x2c5   : > { %4117 = vmatpush.bf16.msra.mxu1 %v7248_v3 }
 0x2c6   : > { %v2028_v23 = vpop.f32.mrf.mxu0  ;;  %3771 = vperm.xlu2 %7455, %v3634_v29   ;;  %v3606_v29 = vld [vmem:[%s10191_s7 + $0xe8] sm:$0xff]  ;;  %v3132_v18 = vsel %vm1085_vm1, %v3129_v25, %v3131_v46 }
 0x2c7   : > { %v3005_v27 = vpop.f32.mrf.mxu3  ;;  %v9026_v22 = vadd.f32 %v2028_v23, %v8440_v38  ;;  %v2883_v38 = vor.u32 %v2881_v14, %v2879_v45 }
 0x2c8   : > { %v9023_v47 = vadd.f32 %v3005_v27, %v8460_v15  ;;  %v9035_v15 = vpop.f32.mrf.mxu1  ;;  %v3637_v27 = vsel %vm3575_vm10, %v3606_v29, 0.0  ;;  %v9055_v29 = vld [vmem:[%s7684_s20 + $0x88] sm:$0xff] }
 0x2c9   : > { %10281 = vst [vmem:[#allocation20_spill] sm:$0xff] %v9026_v22  ;;  %v9042_v13 = vpop.f32.mrf.mxu2  ;;  %v2888_v45 = vsel %vm615_vm0, %v2883_v38, %v2887_v41 }
 0x2ca   : > { %10282 = vst [vmem:[#allocation21_spill] sm:$0xff] %v9035_v15 }
 0x2cb   : > { %10283 = vst [vmem:[#allocation22_spill] sm:$0xff] %v9042_v13 }
 0x2ce   : > { %v2031_v35 = vpop.f32.mrf.mxu0  ;;  %3786 = vperm.xlu2 %7455, %v3637_v27  }
 0x2cf   : > { %v3007_v23 = vpop.f32.mrf.mxu3  ;;  %v2077_v63 = vadd.f32 %v2031_v35, %v8472_v37  ;;  %v7463_v35 = vld [vmem:[%s7684_s20 + $0x40] sm:$0xff] }
 0x2d0   : > { %v9045_v3 = vadd.f32 %v3007_v23, %v8485_v2  ;;  %v2282_v9 = vpop.f32.mrf.mxu1  ;;  %v7261_v2 = vld [vmem:[%s10188_s4 + $0xb8] sm:$0xff]  ;;  %v2889_v23 = vshrl.u32 %v9007_v32, 16 }
 0x2d1   : > { %v2318_v14 = vadd.f32 %v8964_v57, %v2077_v63  ;;  %3245 = vmatmul.bf16.gmra.mxu0 %v3132_v18  ;;  %v2602_v27 = vpop.f32.mrf.mxu2  ;;  %4412 = vmatpush.bf16.msra.mxu3 %v7261_v2  ;;  %v3133_v18 = vrot.slane %v7463_v35, 1  ;;  %v2623_v2 = vadd.f32 %v8438_v4, %v8546_v48  ;;  %v9084_v4 = vld [vmem:[%s7684_s20 + $0x90] sm:$0xff] }
 0x2d3   : > { %v9052_v62 = vadd.f32 %v8977_v55, %v2318_v14  ;;  %v2893_v55 = vshll.u32 %v9055_v29, 16 }
 0x2d4   : > { %3049 = vmatmul.bf16.gmra.mxu3 %v2888_v45  ;;  %v2891_v45 = vor.u32 %v2889_v23, %v2887_v41 }
 0x2d5   : > { %v2895_v14 = vrot.slane %v2893_v55, 1 }
 0x2d6   : > { %v2033_v38 = vpop.f32.mrf.mxu0 }
 0x2d7   : > { %v3010_v25 = vpop.f32.mrf.mxu3  ;;  %v9064_v57 = vadd.f32 %v2033_v38, %v8490_v60  ;;  %v3134_v38 = vsel %vm1085_vm1, %v3131_v46, %v3133_v18  ;;  %v2896_v35 = vsel %vm615_vm0, %v2891_v45, %v2895_v14  ;;  %v2897_v46 = vshrl.u32 %v9055_v29, 16 }
 0x2d8   : > { %v9061_v37 = vadd.f32 %v3010_v25, %v8519_v28  ;;  %v9069_v63 = vpop.f32.mrf.mxu1 }
 0x2d9   : > { %10284 = vst [vmem:[#allocation23_spill] sm:$0xff] %v9064_v57  ;;  %v9073_v25 = vpop.f32.mrf.mxu2  ;;  %v2899_v45 = vor.u32 %v2897_v46, %v2895_v14  ;;  %v7221_v57 = vld [vmem:[%s7684_s20 + $0x98] sm:$0x10] }
 0x2da   : > { %10285 = vst [vmem:[#allocation24_spill] sm:$0xff] %v9069_v63 }
 0x2db   : > { %10286 = vst [vmem:[#allocation25_spill] sm:$0xff] %v9073_v25 }
 0x2de   : > { %v2036_v60 = vpop.f32.mrf.mxu0 }
 0x2df   : > { %v3012_v28 = vpop.f32.mrf.mxu3  ;;  %v2079_v15 = vadd.f32 %v2036_v60, %v8533_v39  ;;  %v7239_v39 = vld [vmem:[%s10188_s4 + $0x8] sm:$0xff] }
 0x2e0   : > { %v9075_v13 = vadd.f32 %v3012_v28, %v2623_v2  ;;  %v2287_v41 = vpop.f32.mrf.mxu1  ;;  %4247 = vmatpush.bf16.msra.mxu2 %v7239_v39 }
 0x2e1   : > { %v2320_v63 = vadd.f32 %v9009_v1, %v2079_v15  ;;  %3250 = vmatmul.bf16.gmra.mxu0 %v3134_v38  ;;  %v2607_v55 = vpop.f32.mrf.mxu2  ;;  %v7247_v1 = vld [vmem:[%s10188_s4 + $0x48] sm:$0xff]  ;;  %v2901_v15 = vshll.u32 %v9084_v4, 16 }
 0x2e2   : > { %4118 = vmatpush.bf16.msra.mxu1 %v7247_v1 }
 0x2e3   : > { %v9081_v23 = vadd.f32 %v2597_v53, %v2320_v63  ;;  %v2903_v60 = vrot.slane %v2901_v15, 1 }
 0x2e4   : > { %3054 = vmatmul.bf16.gmra.mxu3 %v2896_v35 }
 0x2e6   : > { %v2038_v28 = vpop.f32.mrf.mxu0 }
 0x2e7   : > { %v3015_v48 = vpop.f32.mrf.mxu3  ;;  %v9096_v53 = vadd.f32 %v2038_v28, %v8576_v24  ;;  %v2904_v28 = vsel %vm615_vm0, %v2899_v45, %v2903_v60 }
 0x2e8   : > { %v9087_v2 = vadd.f32 %v3015_v48, %v8614_v16  ;;  %v3135_v16 = vrot.slane %v8522_v40, 1  ;;  %v2289_v63 = vpop.f32.mrf.mxu1 }
 0x2e9   : > { %10287 = vst [vmem:[#allocation26_spill] sm:$0xff] %v9096_v53  ;;  %v2609_v35 = vpop.f32.mrf.mxu2  ;;  %v6582_v53 = vld [vmem:[%s7684_s20 + $0x98] sm:$0xf] }
 0x2ea   : > { %v3136_v25 = vsel %vm1085_vm1, %v3133_v18, %v3135_v16  ;;  %v9110_v14 = vor.u32 %v7221_v57, %v6582_v53 }
 0x2ee   : > { %v2041_v48 = vpop.f32.mrf.mxu0 }
 0x2ef   : > { %v9101_v38 = vpop.f32.mrf.mxu3  ;;  %v2081_v24 = vadd.f32 %v2041_v48, %v8631_v19  ;;  %v7260_v19 = vld [vmem:[%s10188_s4 + $0xb0] sm:$0xff] }
 0x2f0   : > { %v2291_v39 = vpop.f32.mrf.mxu1  ;;  %4413 = vmatpush.bf16.msra.mxu3 %v7260_v19 }
 0x2f1   : > { %v2322_v22 = vadd.f32 %v2282_v9, %v2081_v24  ;;  %3255 = vmatmul.bf16.gmra.mxu0 %v3136_v25  ;;  %v2905_v9 = vshrl.u32 %v9084_v4, 16 }
 0x2f3   : > { %v9108_v40 = vadd.f32 %v2602_v27, %v2322_v22  ;;  %v2909_v22 = vshll.u32 %v9110_v14, 16  ;;  %v3137_v27 = vrot.slane %v8617_v8, 1  ;;  %v2907_v25 = vor.u32 %v2905_v9, %v2903_v60 }
 0x2f4   : > { %3059 = vmatmul.bf16.gmra.mxu3 %v2904_v28  ;;  %v2357_v28 = vld [vmem:[%s7684_s20 + $0x98] sm:$0xf] }
 0x2f5   : > { %v3138_v45 = vsel %vm1085_vm1, %v3135_v16, %v3137_v27  ;;  %v2440_v39 = vunpack.c.l.b16 %v2357_v28  ;;  %v3139_v16 = vrot.slane %v8689_v58, 1  ;;  %v7246_v58 = vld [vmem:[%s10188_s4 + $0x40] sm:$0xff] }
 0x2f6   : > { %v2043_v15 = vpop.f32.mrf.mxu0  ;;  %4119 = vmatpush.bf16.msra.mxu1 %v7246_v58 }
 0x2f7   : > { %v3020_v1 = vpop.f32.mrf.mxu3  ;;  %v9119_v18 = vadd.f32 %v2043_v15, %v8660_v12  ;;  %v2457_v15 = vpack.c.b16 %v2440_v39, %v2440_v39  ;;  %v9174_v39 = vld [vmem:[%s10187_s3] ss:$0 sm:$0xff] }
 0x2f8   : > { %v9113_v46 = vadd.f32 %v3020_v1, %v8686_v7  ;;  %v2292_v57 = vpop.f32.mrf.mxu1  ;;  %v2911_v7 = vrot.slane %v2909_v22, 1 }
 0x2f9   : > { %2610 = vmatmul.bf16.gmra.mxu2 %v2457_v15  ;;  %v7258_v57 = vld [vmem:[%s10188_s4 + $0xa0] sm:$0xff] }
 0x2fa   : > { %v2912_v12 = vsel %vm615_vm0, %v2907_v25, %v2911_v7  ;;  %v2913_v25 = vshrl.u32 %v9110_v14, 16 }
 0x2fe   : > { %v2046_v63 = vpop.f32.mrf.mxu0 }
 0x2ff   : > { %v9124_v53 = vpop.f32.mrf.mxu3  ;;  %v2083_v35 = vadd.f32 %v2046_v63, %v8700_v34  ;;  %v2915_v63 = vor.u32 %v2913_v25, %v2911_v7 }
 0x301   : > { %v2324_v48 = vadd.f32 %v2287_v41, %v2083_v35  ;;  %3260 = vmatmul.bf16.gmra.mxu0 %v3138_v45  ;;  %v3140_v41 = vsel %vm1085_vm1, %v3137_v27, %v3139_v16  ;;  %v3141_v45 = vrot.slane %v8747_v33, 1  ;;  %v7257_v35 = vld [vmem:[%s10188_s4 + $0x98] sm:$0xff]  ;;  %v7256_v33 = vld [vmem:[%s10188_s4 + $0x90] sm:$0xff] }
 0x303   : > { %v9129_v24 = vadd.f32 %v2607_v55, %v2324_v48  ;;  %v7259_v55 = vld [vmem:[%s10188_s4 + $0xa8] sm:$0xff]  ;;  %v3142_v28 = vsel %vm1085_vm1, %v3139_v16, %v3141_v45  ;;  %v3642_v16 = vpop.permute.xlu0 %3641 }
 0x304   : > { %3064 = vmatmul.bf16.gmra.mxu3 %v2912_v12  ;;  %v9164_v12 = vld [vmem:[%s10186_s2] ss:$0 sm:$0xff] }
 0x305   : > { %4414 = vmatpush.bf16.msra.mxu3 %v7259_v55  ;;  %v7254_v55 = vld [vmem:[%s10188_s4 + $0x80] sm:$0xff] }
 0x306   : > { %v2048_v1 = vpop.f32.mrf.mxu0 }
 0x307   : > { %v3025_v8 = vpop.f32.mrf.mxu3  ;;  %v7255_v1 = vld [vmem:[%s10188_s4 + $0x88] sm:$0xff] }
 0x308   : > { %v9133_v60 = vadd.f32 %v3025_v8, %v8756_v5  ;;  %v7238_v5 = vld [vmem:[%s10188_s4] sm:$0xff] }
 0x309   : > { %4248 = vmatpush.bf16.msra.mxu2 %v7238_v5  ;;  %4415 = vmatpush.bf16.msra.mxu3 %v7258_v57 }
 0x30d   : > { %4416 = vmatpush.bf16.msra.mxu3 %v7257_v35 }
 0x30e   : > { %v2050_v34 = vpop.f32.mrf.mxu0 }
 0x30f   : > { %v9136_v19 = vpop.f32.mrf.mxu3 }
 0x311   : > { %3265 = vmatmul.bf16.gmra.mxu0 %v3140_v41  ;;  %4417 = vmatpush.bf16.msra.mxu3 %v7256_v33 }
 0x314   : > { %3068 = vmatmul.bf16.gmra.mxu3 %v2915_v63 }
 0x315   : > { %4418 = vmatpush.bf16.msra.mxu3 %v7255_v1 }
 0x316   : > { %v2051_v27 = vpop.f32.mrf.mxu0 }
 0x317   : > { %v3030_v9 = vpop.f32.mrf.mxu3  ;;  %v3143_v27 = vrot.slane %v8825_v31, 1 }
 0x318   : > { %v9149_v22 = vadd.f32 %v3030_v9, %v8836_v6 }
 0x319   : > { %4419 = vmatpush.bf16.msra.mxu3 %v7254_v55 }
 0x31e   : > { %v3231_v48 = vpop.f32.mrf.mxu0 }
 0x31f   : > { %v9159_v6 = vpop.f32.mrf.mxu3  ;;  %v3313_v7 = vadd.f32 %v3231_v48, %v8849_v56 }
 0x321   : > { %v3348_v8 = vmul.f32 %v9164_v12, %v3313_v7  ;;  %3270 = vmatmul.bf16.gmra.mxu0 %v3142_v28  ;;  %v3144_v28 = vsel %vm1085_vm1, %v3141_v45, %v3143_v27  ;;  %v7269_v45 = vld [vmem:[%s10188_s4 + $0xf8] sm:$0xff] }
 0x322   : > { %4598 = vmatpush.bf16.msrb.mxu1 %v7269_v45 }
 0x323   : > { %v3383_v15 = vadd.f32 %v9174_v39, %v3348_v8 }
 0x325   : > { %v3414_v5 = vmax.f32 %v3383_v15, 0.0 }
 0x326   : > { %v3233_v41 = vpop.f32.mrf.mxu0 }
 0x327   : > { %v3035_v34 = vpop.f32.mrf.mxu3  ;;  %v3314_v9 = vadd.f32 %v3233_v41, %v8887_v61  ;;  %v3794_v57 = vmul.f32 %v3642_v16, %v3414_v5  ;;  %v3652_v41 = vpop.permute.xlu1 %3651 }
 0x328   : > { %v9182_v56 = vadd.f32 %v3035_v34, %v8920_v30  ;;  %v3647_v30 = vpop.permute.xlu0 %3646  ;;  %v7277_v34 = vld [vmem:[%s10188_s4 + $0x138] sm:$0xff] }
 0x329   : > { %v3349_v58 = vmul.f32 %v9164_v12, %v3314_v9  ;;  %v3825_v33 = vpack.c.bf16 %v3794_v57, %v3794_v57  ;;  %4871 = vmatpush.bf16.msrb.mxu2 %v7277_v34 }
 0x32b   : > { %v3384_v25 = vadd.f32 %v9174_v39, %v3349_v58  ;;  %v3914_v15 = vunpack.c.l.b16 %v3825_v33 }
 0x32d   : > { %v3415_v63 = vmax.f32 %v3384_v25, 0.0 }
 0x32e   : > { %v3236_v48 = vpop.f32.mrf.mxu0 }
 0x32f   : > { %v9191_v35 = vpop.f32.mrf.mxu3  ;;  %v3795_v7 = vmul.f32 %v3647_v30, %v3415_v63  ;;  %v3315_v8 = vadd.f32 %v3236_v48, %v8933_v26  ;;  %v3145_v63 = vrot.slane %v8911_v51, 1 }
 0x331   : > { %v3826_v61 = vpack.c.bf16 %v3795_v7, %v3795_v7  ;;  %v3350_v1 = vmul.f32 %v9164_v12, %v3315_v8  ;;  %3275 = vmatmul.bf16.gmra.mxu0 %v3144_v28  ;;  %v3657_v7 = vpop.permute.xlu1 %3656 }
 0x333   : > { %v3915_v31 = vunpack.c.l.b16 %v3826_v61  ;;  %v3385_v16 = vadd.f32 %v9174_v39, %v3350_v1 }
 0x335   : > { %v3939_v55 = vpack.c.b16 %v3915_v31, %v3914_v15  ;;  %v3416_v58 = vmax.f32 %v3385_v16, 0.0 }
 0x336   : > { %v3238_v9 = vpop.f32.mrf.mxu0 }
 0x337   : > { %v3040_v5 = vpop.f32.mrf.mxu3  ;;  %v3316_v57 = vadd.f32 %v3238_v9, %v8955_v17  ;;  %4249 = vmatmul.bf16.vlgmr.msra.gmra.mxu2 %v3939_v55  ;;  %v3796_v30 = vmul.f32 %v3652_v41, %v3416_v58  ;;  %v3955_v17 = vshll.u32 %v3939_v55, 16  ;;  %v3662_v41 = vpop.permute.xlu2 %3661 }
 0x338   : > { %v9204_v26 = vadd.f32 %v3040_v5, %v8969_v42  ;;  %v3146_v42 = vsel %vm1085_vm1, %v3143_v27, %v3145_v63 }
 0x339   : > { %v3351_v25 = vmul.f32 %v9164_v12, %v3316_v57  ;;  %v3827_v61 = vpack.c.bf16 %v3796_v30, %v3796_v30  ;;  %v3957_v5 = vrot.slane %v3955_v17, 1  ;;  %v4327_v30 = vrot.slane %v3939_v55, 1 }
 0x33b   : > { %v3386_v48 = vadd.f32 %v9174_v39, %v3351_v25  ;;  %v3916_v51 = vunpack.c.l.b16 %v3827_v61 }
 0x33d   : > { %v3417_v28 = vmax.f32 %v3386_v48, 0.0 }
 0x33e   : > { %v3241_v8 = vpop.f32.mrf.mxu0 }
 0x33f   : > { %v9210_v33 = vpop.f32.mrf.mxu3  ;;  %v3797_v1 = vmul.f32 %v3657_v7, %v3417_v28  ;;  %v3317_v15 = vadd.f32 %v3241_v8, %v8980_v50  ;;  %v3953_v50 = vshrl.u32 %v3939_v55, 16 }
 0x341   : > { %v3828_v31 = vpack.c.bf16 %v3797_v1, %v3797_v1  ;;  %v3352_v16 = vmul.f32 %v9164_v12, %v3317_v15  ;;  %3280 = vmatmul.bf16.gmra.mxu0 %v3146_v42  ;;  %v3958_v42 = vor.u32 %v3957_v5, %v3953_v50  ;;  %v7268_v5 = vld [vmem:[%s10188_s4 + $0xf0] sm:$0xff] }
 0x342   : > { %4599 = vmatpush.bf16.msrb.mxu1 %v7268_v5 }
 0x343   : > { %v3917_v34 = vunpack.c.l.b16 %v3828_v31  ;;  %v3387_v45 = vadd.f32 %v9174_v39, %v3352_v16 }
 0x345   : > { %v3418_v9 = vmax.f32 %v3387_v45, 0.0  ;;  %v3940_v57 = vpack.c.b16 %v3917_v34, %v3916_v51 }
 0x346   : > { %v3243_v25 = vpop.f32.mrf.mxu0 }
 0x347   : > { %v3045_v58 = vpop.f32.mrf.mxu3  ;;  %v3798_v48 = vmul.f32 %v3662_v41, %v3418_v9  ;;  %v3318_v28 = vadd.f32 %v3243_v25, %v8999_v54  ;;  %4254 = vmatmul.bf16.gmra.mxu2 %v3940_v57  ;;  %v4328_v7 = vrot.slane %v3940_v57, 1  ;;  %v3960_v8 = vshll.u32 %v3940_v57, 16  ;;  %v7276_v41 = vld [vmem:[%s10188_s4 + $0x130] sm:$0xff] }
 0x348   : > { %v9217_v27 = vadd.f32 %v3045_v58, %v9014_v52  ;;  %v3147_v52 = vrot.slane %v8972_v59, 1  ;;  %v3667_v59 = vpop.permute.xlu2 %3666  ;;  %4872 = vmatpush.bf16.msrb.mxu2 %v7276_v41 }
 0x349   : > { %v3829_v61 = vpack.c.bf16 %v3798_v48, %v3798_v48  ;;  %v3353_v1 = vmul.f32 %v9164_v12, %v3318_v28  ;;  %v4329_v15 = vsel %vm1085_vm1, %v4327_v30, %v4328_v7  ;;  %v3962_v17 = vrot.slane %v3960_v8, 1 }
 0x34a   : > { %4420 = vmatmul.bf16.vlgmr.msra.gmra.mxu3 %v4329_v15  ;;  %v3148_v58 = vsel %vm1085_vm1, %v3145_v63, %v3147_v52 }
 0x34b   : > { %v3918_v31 = vunpack.c.l.b16 %v3829_v61  ;;  %v3388_v16 = vadd.f32 %v9174_v39, %v3353_v1  ;;  %v3963_v55 = vsel %vm615_vm0, %v3958_v42, %v3962_v17  ;;  %v3672_v1 = vpop.permute.xlu0 %3671 }
 0x34c   : > { %4120 = vmatmul.bf16.vlgmr.msra.gmra.mxu1 %v3963_v55 }
 0x34d   : > { %v9225_v54 = vpack.c.b16 %v3918_v31, %v3917_v34  ;;  %v3419_v51 = vmax.f32 %v3388_v16, 0.0  ;;  %v3964_v16 = vshrl.u32 %v3940_v57, 16  ;;  %v3149_v57 = vrot.slane %v9007_v32, 1 }
 0x34e   : > { %v3246_v9 = vpop.f32.mrf.mxu0 }
 0x34f   : > { %v9227_v45 = vpop.f32.mrf.mxu3  ;;  %v3799_v25 = vmul.f32 %v3667_v59, %v3419_v51  ;;  %v3319_v30 = vadd.f32 %v3246_v9, %v9023_v47  ;;  %v3966_v5 = vor.u32 %v3964_v16, %v3962_v17  ;;  %v4714_v59 = vshll.u32 %v9225_v54, 16 }
 0x350   : > { %v4712_v32 = vshrl.u32 %v9225_v54, 16 }
 0x351   : > { %v3830_v34 = vpack.c.bf16 %v3799_v25, %v3799_v25  ;;  %v3354_v50 = vmul.f32 %v9164_v12, %v3319_v30  ;;  %3285 = vmatmul.bf16.gmra.mxu0 %v3148_v58 }
 0x353   : > { %v3919_v48 = vunpack.c.l.b16 %v3830_v34  ;;  %v3389_v28 = vadd.f32 %v9174_v39, %v3354_v50 }
 0x355   : > { %v3420_v8 = vmax.f32 %v3389_v28, 0.0  ;;  %v9239_v61 = vpack.c.b16 %v3919_v48, %v3918_v31  ;;  %v4716_v28 = vrot.slane %v4714_v59, 1 }
 0x356   : > { %v3248_v63 = vpop.f32.mrf.mxu0 }
 0x357   : > { %v3050_v42 = vpop.f32.mrf.mxu3  ;;  %v3800_v47 = vmul.f32 %v3672_v1, %v3420_v8  ;;  %v3320_v55 = vadd.f32 %v3248_v63, %v9045_v3  ;;  %4259 = vmatmul.bf16.gmra.mxu2 %v9239_v61  ;;  %v4330_v51 = vrot.slane %v9239_v61, 1  ;;  %v3968_v41 = vshll.u32 %v9239_v61, 16  ;;  %v3677_v8 = vpop.permute.xlu1 %3676 }
 0x358   : > { %v9242_v15 = vadd.f32 %v3050_v42, %v9052_v62 }
 0x359   : > { %v3831_v31 = vpack.c.bf16 %v3800_v47, %v3800_v47  ;;  %v3355_v9 = vmul.f32 %v9164_v12, %v3320_v55  ;;  %v4331_v62 = vsel %vm1085_vm1, %v4328_v7, %v4330_v51  ;;  %v3970_v58 = vrot.slane %v3968_v41, 1 }
 0x35a   : > { %4425 = vmatmul.bf16.gmra.mxu3 %v4331_v62  ;;  %v3150_v7 = vsel %vm1085_vm1, %v3147_v52, %v3149_v57  ;;  %v4981_v47 = vrot.slane %v9225_v54, 1 }
 0x35b   : > { %v3920_v25 = vunpack.c.l.b16 %v3831_v31  ;;  %v3390_v3 = vadd.f32 %v9174_v39, %v3355_v9  ;;  %v3971_v30 = vsel %vm615_vm0, %v3966_v5, %v3970_v58  ;;  %v4717_v5 = vor.u32 %v4716_v28, %v4712_v32  ;;  %v7267_v28 = vld [vmem:[%s10188_s4 + $0xe8] sm:$0xff] }
 0x35c   : > { %4125 = vmatmul.bf16.gmra.mxu1 %v3971_v30 }
 0x35d   : > { %v9254_v34 = vpack.c.b16 %v3920_v25, %v3919_v48  ;;  %v3421_v17 = vmax.f32 %v3390_v3, 0.0  ;;  %4600 = vmatpush.bf16.msrb.mxu1 %v7267_v28 }
 0x35e   : > { %v3251_v42 = vpop.f32.mrf.mxu0 }
 0x35f   : > { %v9256_v50 = vpop.f32.mrf.mxu3  ;;  %v3801_v1 = vmul.f32 %v3677_v8, %v3421_v17  ;;  %v3321_v63 = vadd.f32 %v3251_v42, %v9061_v37  ;;  %v4719_v16 = vshll.u32 %v9254_v34, 16  ;;  %v4982_v48 = vrot.slane %v9254_v34, 1  ;;  %v7275_v17 = vld [vmem:[%s10188_s4 + $0x128] sm:$0xff]  ;;  %v3682_v8 = vpop.permute.xlu2 %3681 }
 0x360   : > { %4873 = vmatpush.bf16.msrb.mxu2 %v7275_v17  ;;  %v2305_v17 = vadd.f32 %v8482_v21, %v8636_v49  ;;  %v7293_v21 = vld [vmem:[%s10188_s4 + $0x1b8] sm:$0xff] }
 0x361   : > { %v3832_v55 = vpack.c.bf16 %v3801_v1, %v3801_v1  ;;  %v3356_v41 = vmul.f32 %v9164_v12, %v3321_v63  ;;  %3290 = vmatmul.bf16.gmra.mxu0 %v3150_v7  ;;  %v4721_v59 = vrot.slane %v4719_v16, 1  ;;  %v9266_v31 = vsel %vm1085_vm1, %v4981_v47, %v4982_v48 }
 0x362   : > { %v3972_v1 = vshrl.u32 %v9239_v61, 16  ;;  %v3151_v61 = vrot.slane %v9055_v29, 1  ;;  %5234 = vmatpush.bf16.msrb.mxu0 %v7293_v21  ;;  %v7289_v29 = vld [vmem:[%s10188_s4 + $0x198] sm:$0xff] }
 0x363   : > { %v3921_v52 = vunpack.c.l.b16 %v3832_v55  ;;  %v3391_v37 = vadd.f32 %v9174_v39, %v3356_v41  ;;  %v9270_v9 = vsel %vm615_vm0, %v4717_v5, %v4721_v59 }
 0x364   : > { %v3974_v47 = vor.u32 %v3972_v1, %v3970_v58 }
 0x365   : > { %v9272_v62 = vpack.c.b16 %v3921_v52, %v3920_v25  ;;  %v3422_v3 = vmax.f32 %v3391_v37, 0.0 }
 0x366   : > { %v3253_v7 = vpop.f32.mrf.mxu0 }
 0x367   : > { %v3055_v30 = vpop.f32.mrf.mxu3  ;;  %v3802_v63 = vmul.f32 %v3682_v8, %v3422_v3  ;;  %v3322_v25 = vadd.f32 %v3253_v7, %v9075_v13  ;;  %4264 = vmatmul.bf16.gmra.mxu2 %v9272_v62  ;;  %v4332_v32 = vrot.slane %v9272_v62, 1  ;;  %v3976_v16 = vshll.u32 %v9272_v62, 16  ;;  %v3687_v8 = vpop.permute.xlu0 %3686 }
 0x368   : > { %v9281_v42 = vadd.f32 %v3055_v30, %v9081_v23  ;;  %v3152_v7 = vsel %vm1085_vm1, %v3149_v57, %v3151_v61  ;;  %v2625_v57 = vadd.f32 %v8488_v10, %v2305_v17 }
 0x369   : > { %v3833_v55 = vpack.c.bf16 %v3802_v63, %v3802_v63  ;;  %v3357_v41 = vmul.f32 %v9164_v12, %v3322_v25  ;;  %v4333_v23 = vsel %vm1085_vm1, %v4330_v51, %v4332_v32  ;;  %v3978_v5 = vrot.slane %v3976_v16, 1 }
 0x36a   : > { %4430 = vmatmul.bf16.gmra.mxu3 %v4333_v23  ;;  %v4723_v25 = vshrl.u32 %v9254_v34, 16 }
 0x36b   : > { %v3922_v37 = vunpack.c.l.b16 %v3833_v55  ;;  %v3392_v13 = vadd.f32 %v9174_v39, %v3357_v41  ;;  %v3979_v3 = vsel %vm615_vm0, %v3974_v47, %v3978_v5 }
 0x36c   : > { %4130 = vmatmul.bf16.gmra.mxu1 %v3979_v3  ;;  %v4725_v49 = vor.u32 %v4723_v25, %v4721_v59 }
 0x36d   : > { %v9293_v30 = vpack.c.b16 %v3922_v37, %v3921_v52  ;;  %v3423_v28 = vmax.f32 %v3392_v13, 0.0 }
 0x36e   : > { %v3256_v51 = vpop.f32.mrf.mxu0 }
 0x36f   : > { %v9295_v58 = vpop.f32.mrf.mxu3  ;;  %v3803_v1 = vmul.f32 %v3687_v8, %v3423_v28  ;;  %v3323_v63 = vadd.f32 %v3256_v51, %v9087_v2  ;;  %v4727_v52 = vshll.u32 %v9293_v30, 16  ;;  %v4984_v16 = vrot.slane %v9293_v30, 1 }
 0x370   : > { %v3083_v28 = vadd.f32 %v9101_v38, %v2625_v57  ;;  %v3153_v57 = vrot.slane %v9084_v4, 1 }
 0x371   : > { %v3834_v47 = vpack.c.bf16 %v3803_v1, %v3803_v1  ;;  %v3358_v55 = vmul.f32 %v9164_v12, %v3323_v63  ;;  %3295 = vmatmul.bf16.gmra.mxu0 %v3152_v7  ;;  %v4729_v41 = vrot.slane %v4727_v52, 1  ;;  %v9313_v2 = vsel %vm1085_vm1, %v4982_v48, %v4984_v16  ;;  %v7292_v48 = vld [vmem:[%s10188_s4 + $0x1b0] sm:$0xff]  ;;  %v3692_v7 = vpop.permute.xlu1 %3691 }
 0x372   : > { %v3980_v1 = vshrl.u32 %v9272_v62, 16  ;;  %5235 = vmatpush.bf16.msrb.mxu0 %v7292_v48  ;;  %v7274_v48 = vld [vmem:[%s10188_s4 + $0x120] sm:$0xff] }
 0x373   : > { %v3923_v23 = vunpack.c.l.b16 %v3834_v47  ;;  %v3393_v13 = vadd.f32 %v9174_v39, %v3358_v55  ;;  %v9318_v3 = vsel %vm615_vm0, %v4725_v49, %v4729_v41  ;;  %v7291_v49 = vld [vmem:[%s10188_s4 + $0x1a8] sm:$0xff]  ;;  %4874 = vmatpush.bf16.msrb.mxu2 %v7274_v48 }
 0x374   : > { %v3982_v52 = vor.u32 %v3980_v1, %v3978_v5  ;;  %v2307_v1 = vadd.f32 %v8557_v44, %v8705_v20 }
 0x375   : > { %v9321_v8 = vpack.c.b16 %v3923_v23, %v3922_v37  ;;  %v3424_v59 = vmax.f32 %v3393_v13, 0.0 }
 0x376   : > { %v3258_v17 = vpop.f32.mrf.mxu0  ;;  %5236 = vmatpush.bf16.msrb.mxu0 %v7291_v49 }
 0x377   : > { %v3060_v51 = vpop.f32.mrf.mxu3  ;;  %v3804_v63 = vmul.f32 %v3692_v7, %v3424_v59  ;;  %v3324_v25 = vadd.f32 %v3258_v17, %v3083_v28  ;;  %4269 = vmatmul.bf16.gmra.mxu2 %v9321_v8  ;;  %v4334_v38 = vrot.slane %v9321_v8, 1  ;;  %v3984_v37 = vshll.u32 %v9321_v8, 16  ;;  %v7266_v7 = vld [vmem:[%s10188_s4 + $0xe0] sm:$0xff] }
 0x378   : > { %v9327_v10 = vadd.f32 %v3060_v51, %v9108_v40  ;;  %v7290_v17 = vld [vmem:[%s10188_s4 + $0x1a0] sm:$0xff]  ;;  %4601 = vmatpush.bf16.msrb.mxu1 %v7266_v7 }
 0x379   : > { %v3835_v47 = vpack.c.bf16 %v3804_v63, %v3804_v63  ;;  %v3359_v55 = vmul.f32 %v9164_v12, %v3324_v25  ;;  %v9337_v40 = vsel %vm1085_vm1, %v4332_v32, %v4334_v38  ;;  %v3986_v21 = vrot.slane %v3984_v37, 1 }
 0x37a   : > { %10288 = vst [vmem:[#allocation27_spill] sm:$0xff] %v9337_v40  ;;  %4435 = vmatmul.bf16.gmra.mxu3 %v9337_v40  ;;  %v3154_v25 = vsel %vm1085_vm1, %v3151_v61, %v3153_v57  ;;  %5237 = vmatpush.bf16.msrb.mxu0 %v7290_v17 }
 0x37b   : > { %v3924_v13 = vunpack.c.l.b16 %v3835_v47  ;;  %v3394_v5 = vadd.f32 %v9174_v39, %v3359_v55  ;;  %v9346_v28 = vsel %vm615_vm0, %v3982_v52, %v3986_v21  ;;  %v4731_v47 = vshrl.u32 %v9293_v30, 16 }
 0x37c   : > { %10289 = vst [vmem:[#allocation28_spill] sm:$0xff] %v9346_v28  ;;  %4135 = vmatmul.bf16.gmra.mxu1 %v9346_v28 }
 0x37d   : > { %v9349_v32 = vpack.c.b16 %v3924_v13, %v3923_v23  ;;  %v3425_v59 = vmax.f32 %v3394_v5, 0.0  ;;  %v3697_v23 = vpop.permute.xlu2 %3696  ;;  %v4733_v61 = vor.u32 %v4731_v47, %v4729_v41 }
 0x37e   : > { %v3261_v63 = vpop.f32.mrf.mxu0  ;;  %5238 = vmatpush.bf16.msrb.mxu0 %v7289_v29 }
 0x37f   : > { %v9351_v51 = vpop.f32.mrf.mxu3  ;;  %v3805_v37 = vmul.f32 %v3697_v23, %v3425_v59  ;;  %v3325_v52 = vadd.f32 %v3261_v63, %v9113_v46  ;;  %v4735_v55 = vshll.u32 %v9349_v32, 16  ;;  %v4986_v44 = vrot.slane %v9349_v32, 1 }
 0x380   : > { %v2627_v59 = vadd.f32 %v8569_v36, %v2307_v1 }
 0x381   : > { %v3836_v20 = vpack.c.bf16 %v3805_v37, %v3805_v37  ;;  %v3360_v49 = vmul.f32 %v9164_v12, %v3325_v52  ;;  %3300 = vmatmul.bf16.gmra.mxu0 %v3154_v25  ;;  %v4737_v5 = vrot.slane %v4735_v55, 1  ;;  %v9380_v46 = vsel %vm1085_vm1, %v4984_v16, %v4986_v44  ;;  %v7288_v16 = vld [vmem:[%s10188_s4 + $0x190] sm:$0xff]  ;;  %v3702_v37 = vpop.permute.xlu0 %3701 }
 0x382   : > { %v3085_v23 = vadd.f32 %v9124_v53, %v2627_v59  ;;  %v3988_v52 = vshrl.u32 %v9321_v8, 16  ;;  %5239 = vmatpush.bf16.msrb.mxu0 %v7288_v16  ;;  %v7287_v59 = vld [vmem:[%s10188_s4 + $0x188] sm:$0xff] }
 0x383   : > { %v3925_v48 = vunpack.c.l.b16 %v3836_v20  ;;  %v3395_v7 = vadd.f32 %v9174_v39, %v3360_v49  ;;  %v9385_v17 = vsel %vm615_vm0, %v4733_v61, %v4737_v5 }
 0x384   : > { %v3990_v20 = vor.u32 %v3988_v52, %v3986_v21  ;;  %v10292_v52 = vld [vmem:[#allocation10_spill] sm:$0xff] }
 0x385   : > { %v9388_v63 = vpack.c.b16 %v3925_v48, %v3924_v13  ;;  %v3426_v41 = vmax.f32 %v3395_v7, 0.0  ;;  %v10193_v7 = vrot.slane %v9110_v14, 1 }
 0x386   : > { %v3263_v1 = vpop.f32.mrf.mxu0  ;;  %5240 = vmatpush.bf16.msrb.mxu0 %v7287_v59 }
 0x387   : > { %v3065_v25 = vpop.f32.mrf.mxu3  ;;  %v3806_v47 = vmul.f32 %v3702_v37, %v3426_v41  ;;  %v3326_v55 = vadd.f32 %v3263_v1, %v3085_v23  ;;  %4274 = vmatmul.bf16.gmra.mxu2 %v9388_v63  ;;  %v4336_v53 = vrot.slane %v9388_v63, 1  ;;  %v3992_v13 = vshll.u32 %v9388_v63, 16  ;;  %v7286_v37 = vld [vmem:[%s10188_s4 + $0x180] sm:$0xff] }
 0x388   : > { %v9394_v36 = vadd.f32 %v3065_v25, %v9129_v24  ;;  %v2611_v25 = vpop.f32.mrf.mxu2 }
 0x389   : > { %v3837_v49 = vpack.c.bf16 %v3806_v47, %v3806_v47  ;;  %v3361_v29 = vmul.f32 %v9164_v12, %v3326_v55  ;;  %v9404_v24 = vsel %vm1085_vm1, %v4334_v38, %v4336_v53  ;;  %v3994_v61 = vrot.slane %v3992_v13, 1  ;;  %v3707_v55 = vpop.permute.xlu1 %3706 }
 0x38a   : > { %10290 = vst [vmem:[#allocation29_spill] sm:$0xff] %v9404_v24  ;;  %4440 = vmatmul.bf16.gmra.mxu3 %v9404_v24  ;;  %v2309_v47 = vadd.f32 %v10292_v52, %v8773_v43  ;;  %5241 = vmatpush.bf16.msrb.mxu0 %v7286_v37 }
 0x38b   : > { %v3926_v23 = vunpack.c.l.b16 %v3837_v49  ;;  %v3396_v21 = vadd.f32 %v9174_v39, %v3361_v29  ;;  %v9413_v41 = vsel %vm615_vm0, %v3990_v20, %v3994_v61  ;;  %v3156_v20 = vsel %vm1085_vm1, %v3153_v57, %v10193_v7  ;;  %v10293_v57 = vld [vmem:[#allocation15_spill] sm:$0xff] }
 0x38c   : > { %10291 = vst [vmem:[#allocation30_spill] sm:$0xff] %v9413_v41  ;;  %4140 = vmatmul.bf16.gmra.mxu1 %v9413_v41  ;;  %v4739_v29 = vshrl.u32 %v9349_v32, 16 }
 0x38d   : > { %v9416_v38 = vpack.c.b16 %v3926_v23, %v3925_v48  ;;  %v3427_v16 = vmax.f32 %v3396_v21, 0.0 }
 0x38e   : > { %v3266_v13 = vpop.f32.mrf.mxu0 }
 0x38f   : > { %v3067_v1 = vpop.f32.mrf.mxu3  ;;  %v3807_v49 = vmul.f32 %v3707_v55, %v3427_v16  ;;  %v3327_v48 = vadd.f32 %v3266_v13, %v9133_v60  ;;  %v4743_v59 = vshll.u32 %v9416_v38, 16  ;;  %v4988_v21 = vrot.slane %v9416_v38, 1 }
 0x390   : > { %v4741_v1 = vor.u32 %v4739_v29, %v4737_v5  ;;  %v2629_v16 = vadd.f32 %v10293_v57, %v2309_v47  ;;  %v2612_v13 = vpop.f32.mrf.mxu2  ;;  %v7273_v5 = vld [vmem:[%s10188_s4 + $0x118] sm:$0xff]  ;;  %v3712_v47 = vpop.permute.xlu2 %3711  ;;  %v3996_v29 = vshrl.u32 %v9388_v63, 16 }
 0x391   : > { %v3838_v25 = vpack.c.bf16 %v3807_v49, %v3807_v49  ;;  %v3362_v43 = vmul.f32 %v9164_v12, %v3327_v48  ;;  %3305 = vmatmul.bf16.gmra.mxu0 %v3156_v20  ;;  %v4745_v52 = vrot.slane %v4743_v59, 1  ;;  %v9434_v4 = vsel %vm1085_vm1, %v4986_v44, %v4988_v21  ;;  %v7265_v44 = vld [vmem:[%s10188_s4 + $0xd8] sm:$0xff]  ;;  %4875 = vmatpush.bf16.msrb.mxu2 %v7273_v5 }
 0x392   : > { %v3087_v37 = vadd.f32 %v9136_v19, %v2629_v16  ;;  %4602 = vmatpush.bf16.msrb.mxu1 %v7265_v44  ;;  %v3717_v44 = vpop.permute.xlu0 %3716 }
 0x393   : > { %v3927_v55 = vunpack.c.l.b16 %v3838_v25  ;;  %v3397_v60 = vadd.f32 %v9174_v39, %v3362_v43  ;;  %v9439_v7 = vsel %vm615_vm0, %v4741_v1, %v4745_v52  ;;  %v3998_v43 = vor.u32 %v3996_v29, %v3994_v61 }
 0x395   : > { %v9442_v49 = vpack.c.b16 %v3927_v55, %v3926_v23  ;;  %v3428_v48 = vmax.f32 %v3397_v60, 0.0 }
 0x396   : > { %v3268_v20 = vpop.f32.mrf.mxu0 }
 0x397   : > { %v3808_v59 = vmul.f32 %v3712_v47, %v3428_v48  ;;  %v3328_v25 = vadd.f32 %v3268_v20, %v3087_v37  ;;  %4279 = vmatmul.bf16.gmra.mxu2 %v9442_v49  ;;  %v4338_v19 = vrot.slane %v9442_v49, 1  ;;  %v4000_v23 = vshll.u32 %v9442_v49, 16  ;;  %v10296_v47 = vld [vmem:[#allocation7_spill] sm:$0xff]  ;;  %v3069_v29 = vpop.f32.mrf.mxu3 }
 0x398   : > { %v2311_v20 = vadd.f32 %v10296_v47, %v8853_v0  ;;  %v3722_v29 = vpop.permute.xlu1 %3721 }
 0x399   : > { %v3839_v1 = vpack.c.bf16 %v3808_v59, %v3808_v59  ;;  %v3363_v57 = vmul.f32 %v9164_v12, %v3328_v25  ;;  %v9456_v16 = vsel %vm1085_vm1, %v4336_v53, %v4338_v19  ;;  %v4002_v60 = vrot.slane %v4000_v23, 1 }
 0x39a   : > { %10294 = vst [vmem:[#allocation10_spill] sm:$0xff] %v9456_v16  ;;  %4445 = vmatmul.bf16.gmra.mxu3 %v9456_v16  ;;  %v4747_v23 = vshrl.u32 %v9416_v38, 16 }
 0x39b   : > { %v3928_v13 = vunpack.c.l.b16 %v3839_v1  ;;  %v3398_v37 = vadd.f32 %v9174_v39, %v3363_v57  ;;  %v9461_v48 = vsel %vm615_vm0, %v3998_v43, %v4002_v60 }
 0x39c   : > { %10295 = vst [vmem:[#allocation15_spill] sm:$0xff] %v9461_v48  ;;  %4145 = vmatmul.bf16.gmra.mxu1 %v9461_v48 }
 0x39d   : > { %v9464_v61 = vpack.c.b16 %v3928_v13, %v3927_v55  ;;  %v3429_v5 = vmax.f32 %v3398_v37, 0.0  ;;  %v10297_v55 = vrot.slane %v9110_v14, 1  ;;  %v4749_v37 = vor.u32 %v4747_v23, %v4745_v52 }
 0x39e   : > { %v3271_v53 = vpop.f32.mrf.mxu0  ;;  %v4004_v52 = vshrl.u32 %v9442_v49, 16 }
 0x39f   : > { %v3809_v59 = vmul.f32 %v3717_v44, %v3429_v5  ;;  %v3329_v25 = vadd.f32 %v3271_v53, %v9149_v22  ;;  %v4751_v1 = vshll.u32 %v9464_v61, 16  ;;  %v4990_v43 = vrot.slane %v9464_v61, 1  ;;  %v10298_v44 = vld [vmem:[#allocation11_spill] sm:$0xff]  ;;  %v3070_v23 = vpop.f32.mrf.mxu3 }
 0x3a0   : > { %v2631_v5 = vadd.f32 %v10298_v44, %v2311_v20  ;;  %v3727_v23 = vpop.permute.xlu2 %3726 }
 0x3a1   : > { %v3840_v57 = vpack.c.bf16 %v3809_v59, %v3809_v59  ;;  %v3364_v48 = vmul.f32 %v9164_v12, %v3329_v25  ;;  %3309 = vmatmul.bf16.gmra.mxu0 %v10297_v55  ;;  %v4753_v41 = vrot.slane %v4751_v1, 1  ;;  %v9476_v0 = vsel %vm1085_vm1, %v4988_v21, %v4990_v43 }
 0x3a2   : > { %v3089_v59 = vadd.f32 %v9159_v6, %v2631_v5 }
 0x3a3   : > { %v3929_v22 = vunpack.c.l.b16 %v3840_v57  ;;  %v3399_v47 = vadd.f32 %v9174_v39, %v3364_v48  ;;  %v9481_v53 = vsel %vm615_vm0, %v4749_v37, %v4753_v41  ;;  %v4006_v57 = vor.u32 %v4004_v52, %v4002_v60 }
 0x3a5   : > { %v9484_v25 = vpack.c.b16 %v3929_v22, %v3928_v13  ;;  %v3430_v14 = vmax.f32 %v3399_v47, 0.0 }
 0x3a6   : > { %v3273_v55 = vpop.f32.mrf.mxu0 }
 0x3a7   : > { %v3810_v21 = vmul.f32 %v3722_v29, %v3430_v14  ;;  %v3330_v1 = vadd.f32 %v3273_v55, %v3089_v59  ;;  %4284 = vmatmul.bf16.gmra.mxu2 %v9484_v25  ;;  %v4340_v20 = vrot.slane %v9484_v25, 1  ;;  %v4008_v48 = vshll.u32 %v9484_v25, 16  ;;  %v7272_v14 = vld [vmem:[%s10188_s4 + $0x110] sm:$0xff]  ;;  %v10301_v55 = vld [vmem:[#allocation14_spill] sm:$0xff] }
 0x3a8   : > { %v2313_v52 = vadd.f32 %v10301_v55, %v8939_v11  ;;  %4876 = vmatpush.bf16.msrb.mxu2 %v7272_v14 }
 0x3a9   : > { %v3841_v37 = vpack.c.bf16 %v3810_v21, %v3810_v21  ;;  %v3365_v44 = vmul.f32 %v9164_v12, %v3330_v1  ;;  %v9492_v6 = vsel %vm1085_vm1, %v4338_v19, %v4340_v20  ;;  %v4010_v13 = vrot.slane %v4008_v48, 1  ;;  %v7264_v19 = vld [vmem:[%s10188_s4 + $0xd0] sm:$0xff] }
 0x3aa   : > { %10299 = vst [vmem:[#allocation7_spill] sm:$0xff] %v9492_v6  ;;  %4450 = vmatmul.bf16.gmra.mxu3 %v9492_v6  ;;  %4603 = vmatpush.bf16.msrb.mxu1 %v7264_v19  ;;  %v3732_v6 = vpop.permute.xlu0 %3731 }
 0x3ab   : > { %v3930_v5 = vunpack.c.l.b16 %v3841_v37  ;;  %v3400_v47 = vadd.f32 %v9174_v39, %v3365_v44  ;;  %v9497_v29 = vsel %vm615_vm0, %v4006_v57, %v4010_v13 }
 0x3ac   : > { %10300 = vst [vmem:[#allocation11_spill] sm:$0xff] %v9497_v29  ;;  %4150 = vmatmul.bf16.gmra.mxu1 %v9497_v29 }
 0x3ad   : > { %v9500_v59 = vpack.c.b16 %v3930_v5, %v3929_v22  ;;  %v3431_v60 = vmax.f32 %v3400_v47, 0.0  ;;  %v4755_v22 = vshrl.u32 %v9464_v61, 16 }
 0x3ae   : > { %v3276_v21 = vpop.f32.mrf.mxu0 }
 0x3af   : > { %v3811_v1 = vmul.f32 %v3727_v23, %v3431_v60  ;;  %v3331_v48 = vadd.f32 %v3276_v21, %v9182_v56  ;;  %v4759_v57 = vshll.u32 %v9500_v59, 16  ;;  %v4992_v37 = vrot.slane %v9500_v59, 1  ;;  %v10302_v60 = vld [vmem:[#allocation17_spill] sm:$0xff] }
 0x3b0   : > { %v4757_v29 = vor.u32 %v4755_v22, %v4753_v41  ;;  %v2633_v56 = vadd.f32 %v10302_v60, %v2313_v52  ;;  %v4012_v41 = vshrl.u32 %v9484_v25, 16 }
 0x3b1   : > { %v3842_v44 = vpack.c.bf16 %v3811_v1, %v3811_v1  ;;  %v3366_v47 = vmul.f32 %v9164_v12, %v3331_v48  ;;  %5242 = vmatmul.bf16.vlgmr.msrb.gmra.mxu0 %v9272_v62  ;;  %v4761_v11 = vrot.slane %v4759_v57, 1  ;;  %v9517_v55 = vsel %vm1085_vm1, %v4990_v43, %v4992_v37 }
 0x3b2   : > { %v3091_v21 = vadd.f32 %v9191_v35, %v2633_v56 }
 0x3b3   : > { %v3931_v14 = vunpack.c.l.b16 %v3842_v44  ;;  %v3401_v19 = vadd.f32 %v9174_v39, %v3366_v47  ;;  %v9522_v23 = vsel %vm615_vm0, %v4757_v29, %v4761_v11  ;;  %v4014_v44 = vor.u32 %v4012_v41, %v4010_v13 }
 0x3b5   : > { %v9525_v1 = vpack.c.b16 %v3931_v14, %v3930_v5  ;;  %v3432_v48 = vmax.f32 %v3401_v19, 0.0 }
 0x3b6   : > { %v3278_v62 = vpop.f32.mrf.mxu0 }
 0x3b7   : > { %v3812_v22 = vmul.f32 %v3732_v6, %v3432_v48  ;;  %v3332_v43 = vadd.f32 %v3278_v62, %v3091_v21  ;;  %4289 = vmatmul.bf16.gmra.mxu2 %v9525_v1  ;;  %v4342_v52 = vrot.slane %v9525_v1, 1  ;;  %v4016_v57 = vshll.u32 %v9525_v1, 16  ;;  %v10305_v48 = vld [vmem:[#allocation9_spill] sm:$0xff]  ;;  %v10306_v62 = vld [vmem:[#allocation8_spill] sm:$0xff] }
 0x3b8   : > { %v2315_v41 = vadd.f32 %v10306_v62, %v10305_v48 }
 0x3b9   : > { %v3843_v29 = vpack.c.bf16 %v3812_v22, %v3812_v22  ;;  %v3367_v47 = vmul.f32 %v9164_v12, %v3332_v43  ;;  %v9533_v35 = vsel %vm1085_vm1, %v4340_v20, %v4342_v52  ;;  %v4018_v5 = vrot.slane %v4016_v57, 1  ;;  %v3737_v20 = vpop.permute.xlu1 %3736 }
 0x3ba   : > { %10303 = vst [vmem:[#allocation14_spill] sm:$0xff] %v9533_v35  ;;  %v4250_v60 = vpop.f32.mrf.mxu2  ;;  %4455 = vmatmul.bf16.gmra.mxu3 %v9533_v35 }
 0x3bb   : > { %v3932_v56 = vunpack.c.l.b16 %v3843_v29  ;;  %v3402_v6 = vadd.f32 %v9174_v39, %v3367_v47  ;;  %v9538_v19 = vsel %vm615_vm0, %v4014_v44, %v4018_v5  ;;  %v4763_v29 = vshrl.u32 %v9500_v59, 16 }
 0x3bc   : > { %10304 = vst [vmem:[#allocation17_spill] sm:$0xff] %v9538_v19  ;;  %4155 = vmatmul.bf16.gmra.mxu1 %v9538_v19 }
 0x3bd   : > { %v9541_v21 = vpack.c.b16 %v3932_v56, %v3931_v14  ;;  %v3433_v13 = vmax.f32 %v3402_v6, 0.0  ;;  %v4765_v14 = vor.u32 %v4763_v29, %v4761_v11  ;;  %v7271_v11 = vld [vmem:[%s10188_s4 + $0x108] sm:$0xff] }
 0x3be   : > { %v3281_v22 = vpop.f32.mrf.mxu0  ;;  %4877 = vmatpush.bf16.msrb.mxu2 %v7271_v11 }
 0x3bf   : > { %v3813_v43 = vmul.f32 %v3737_v20, %v3433_v13  ;;  %v3333_v57 = vadd.f32 %v3281_v22, %v9204_v26  ;;  %v4767_v47 = vshll.u32 %v9541_v21, 16  ;;  %v10201_v44 = vrot.slane %v9541_v21, 1  ;;  %v10307_v26 = vld [vmem:[#allocation12_spill] sm:$0xff] }
 0x3c0   : > { %v2635_v48 = vadd.f32 %v10307_v26, %v2315_v41  ;;  %v3742_v41 = vpop.permute.xlu2 %3741 }
 0x3c1   : > { %v3844_v35 = vpack.c.bf16 %v3813_v43, %v3813_v43  ;;  %v3368_v19 = vmul.f32 %v9164_v12, %v3333_v57  ;;  %5247 = vmatmul.bf16.gmra.mxu0 %v9321_v8  ;;  %v4769_v6 = vrot.slane %v4767_v47, 1  ;;  %v9554_v13 = vsel %vm1085_vm1, %v4992_v37, %v10201_v44  ;;  %v7263_v37 = vld [vmem:[%s10188_s4 + $0xc8] sm:$0xff] }
 0x3c2   : > { %v4252_v16 = vpop.f32.mrf.mxu2  ;;  %v3093_v43 = vadd.f32 %v9210_v33, %v2635_v48  ;;  %4604 = vmatpush.bf16.msrb.mxu1 %v7263_v37  ;;  %v7285_v37 = vld [vmem:[%s10188_s4 + $0x178] sm:$0xff] }
 0x3c3   : > { %v3933_v62 = vunpack.c.l.b16 %v3844_v35  ;;  %v3403_v20 = vadd.f32 %v9174_v39, %v3368_v19  ;;  %v9559_v22 = vsel %vm615_vm0, %v4765_v14, %v4769_v6  ;;  %v4020_v19 = vshrl.u32 %v9525_v1, 16  ;;  %5066 = vmatpush.bf16.msrb.mxu3 %v7285_v37 }
 0x3c4   : > { %v4771_v37 = vshrl.u32 %v9541_v21, 16 }
 0x3c5   : > { %v9562_v57 = vpack.c.b16 %v3933_v62, %v3932_v56  ;;  %v3434_v8 = vmax.f32 %v3403_v20, 0.0  ;;  %v4022_v14 = vor.u32 %v4020_v19, %v4018_v5 }
 0x3c6   : > { %v3283_v35 = vpop.f32.mrf.mxu0 }
 0x3c7   : > { %v3814_v29 = vmul.f32 %v3742_v41, %v3434_v8  ;;  %v3334_v47 = vadd.f32 %v3283_v35, %v3093_v43  ;;  %4294 = vmatmul.bf16.gmra.mxu2 %v9562_v57  ;;  %v10202_v33 = vrot.slane %v9562_v57, 1  ;;  %v4024_v56 = vshll.u32 %v9562_v57, 16 }
 0x3c9   : > { %v3845_v26 = vpack.c.bf16 %v3814_v29, %v3814_v29  ;;  %v3369_v48 = vmul.f32 %v9164_v12, %v3334_v47  ;;  %v4121_v20 = vpop.f32.mrf.mxu1  ;;  %v9578_v44 = vsel %vm1085_vm1, %v4342_v52, %v10202_v33  ;;  %v4026_v8 = vrot.slane %v4024_v56, 1  ;;  %v10311_v29 = vld [vmem:[#allocation20_spill] sm:$0xff] }
 0x3ca   : > { %10308 = vst [vmem:[#allocation9_spill] sm:$0xff] %v9578_v44  ;;  %v4251_v43 = vadd.f32 %v4250_v60, %v4121_v20  ;;  %v4255_v41 = vpop.f32.mrf.mxu2  ;;  %4460 = vmatmul.bf16.gmra.mxu3 %v9578_v44  ;;  %v10312_v47 = vld [vmem:[#allocation16_spill] sm:$0xff]  ;;  %v3747_v20 = vpop.permute.xlu0 %3746 }
 0x3cb   : > { %v3934_v5 = vunpack.c.l.b16 %v3845_v26  ;;  %v3404_v11 = vadd.f32 %v9174_v39, %v3369_v48  ;;  %v9586_v35 = vsel %vm615_vm0, %v4022_v14, %v4026_v8  ;;  %v2317_v56 = vadd.f32 %v10312_v47, %v10311_v29  ;;  %v7284_v26 = vld [vmem:[%s10188_s4 + $0x170] sm:$0xff] }
 0x3cc   : > { %10309 = vst [vmem:[#allocation8_spill] sm:$0xff] %v9586_v35  ;;  %4160 = vmatmul.bf16.gmra.mxu1 %v9586_v35  ;;  %5067 = vmatpush.bf16.msrb.mxu3 %v7284_v26 }
 0x3cd   : > { %v9589_v52 = vpack.c.b16 %v3934_v5, %v3933_v62  ;;  %v3435_v19 = vmax.f32 %v3404_v11, 0.0  ;;  %v4421_v60 = vpop.f32.mrf.mxu3 }
 0x3ce   : > { %v9593_v33 = vadd.f32 %v4421_v60, %v4251_v43  ;;  %v3286_v44 = vpop.f32.mrf.mxu0  ;;  %v4773_v60 = vor.u32 %v4771_v37, %v4769_v6 }
 0x3cf   : > { %10310 = vst [vmem:[#allocation12_spill] sm:$0xff] %v9589_v52  ;;  %v3815_v14 = vmul.f32 %v3747_v20, %v3435_v19  ;;  %v3335_v48 = vadd.f32 %v3286_v44, %v9217_v27  ;;  %v4775_v62 = vshll.u32 %v9589_v52, 16  ;;  %v10207_v11 = vrot.slane %v9589_v52, 1  ;;  %v7283_v27 = vld [vmem:[%s10188_s4 + $0x168] sm:$0xff] }
 0x3d0   : > { %10313 = vst [vmem:[#allocation20_spill] sm:$0xff] %v9593_v33  ;;  %v10314_v44 = vrot.slane %v9541_v21, 1  ;;  %5068 = vmatpush.bf16.msrb.mxu3 %v7283_v27 }
 0x3d1   : > { %v3846_v35 = vpack.c.bf16 %v3815_v14, %v3815_v14  ;;  %v3370_v29 = vmul.f32 %v9164_v12, %v3335_v48  ;;  %v4123_v43 = vpop.f32.mrf.mxu1  ;;  %5252 = vmatmul.bf16.gmra.mxu0 %v9388_v63  ;;  %v9604_v47 = vrot.slane %v4775_v62, 1  ;;  %v10315_v12 = vld [vmem:[#allocation19_spill] sm:$0xff] }
 0x3d2   : > { %v4253_v28 = vadd.f32 %v4252_v16, %v4123_v43  ;;  %v9606_v19 = vpop.f32.mrf.mxu2  ;;  %v9616_v20 = vsel %vm1085_vm1, %v10314_v44, %v10207_v11  ;;  %v2637_v26 = vadd.f32 %v10315_v12, %v2317_v56  ;;  %v7270_v16 = vld [vmem:[%s10188_s4 + $0x100] sm:$0xff]  ;;  %v3752_v56 = vpop.permute.xlu1 %3751 }
 0x3d3   : > { %v3935_v63 = vunpack.c.l.b16 %v3846_v35  ;;  %v3405_v6 = vadd.f32 %v9174_v39, %v3370_v29  ;;  %v9625_v14 = vsel %vm615_vm0, %v4773_v60, %v9604_v47  ;;  %4878 = vmatpush.bf16.msrb.mxu2 %v7270_v16  ;;  %v4028_v29 = vshrl.u32 %v9562_v57, 16  ;;  %v7282_v44 = vld [vmem:[%s10188_s4 + $0x160] sm:$0xff] }
 0x3d4   : > { %v3095_v48 = vadd.f32 %v9227_v45, %v2637_v26  ;;  %5069 = vmatpush.bf16.msrb.mxu3 %v7282_v44  ;;  %v9659_v44 = vld [vmem:[%s10187_s3] ss:$0 sm:$0xff] }
 0x3d5   : > { %v9628_v37 = vpack.c.b16 %v3935_v63, %v3934_v5  ;;  %v3436_v62 = vmax.f32 %v3405_v6, 0.0  ;;  %v4423_v43 = vpop.f32.mrf.mxu3  ;;  %v4030_v27 = vor.u32 %v4028_v29, %v4026_v8 }
 0x3d6   : > { %v9630_v35 = vadd.f32 %v4423_v43, %v4253_v28  ;;  %v3288_v39 = vpop.f32.mrf.mxu0  ;;  %v9642_v28 = vld [vmem:[%s10186_s2] ss:$0 sm:$0xff] }
 0x3d7   : > { %v3816_v60 = vmul.f32 %v3752_v56, %v3436_v62  ;;  %v3336_v12 = vadd.f32 %v3288_v39, %v3095_v48  ;;  %4299 = vmatmul.bf16.gmra.mxu2 %v9628_v37  ;;  %v10206_v45 = vrot.slane %v9628_v37, 1  ;;  %v4032_v5 = vshll.u32 %v9628_v37, 16  ;;  %v7281_v39 = vld [vmem:[%s10188_s4 + $0x158] sm:$0xff] }
 0x3d8   : > { %10316 = vst [vmem:[#allocation16_spill] sm:$0xff] %v9630_v35  ;;  %v10317_v48 = vrot.slane %v9562_v57, 1  ;;  %5070 = vmatpush.bf16.msrb.mxu3 %v7281_v39  ;;  %v3762_v35 = vpop.permute.xlu0 %3761 }
 0x3d9   : > { %v3847_v26 = vpack.c.bf16 %v3816_v60, %v3816_v60  ;;  %v3371_v6 = vmul.f32 %v9642_v28, %v3336_v12  ;;  %v4126_v16 = vpop.f32.mrf.mxu1  ;;  %v4034_v43 = vrot.slane %v4032_v5, 1 }
 0x3da   : > { %v9650_v62 = vsel %vm1085_vm1, %v10317_v48, %v10206_v45  ;;  %v4256_v56 = vadd.f32 %v4255_v41, %v4126_v16  ;;  %v4260_v8 = vpop.f32.mrf.mxu2  ;;  %v10321_v48 = vld [vmem:[#allocation23_spill] sm:$0xff]  ;;  %v10322_v45 = vld [vmem:[#allocation13_spill] sm:$0xff] }
 0x3db   : > { %10318 = vst [vmem:[#allocation19_spill] sm:$0xff] %v9650_v62  ;;  %4465 = vmatmul.bf16.gmra.mxu3 %v9650_v62  ;;  %v3936_v29 = vunpack.c.l.b16 %v3847_v26  ;;  %v3406_v60 = vadd.f32 %v9659_v44, %v3371_v6  ;;  %v9663_v12 = vsel %vm615_vm0, %v4030_v27, %v4034_v43  ;;  %v7262_v26 = vld [vmem:[%s10188_s4 + $0xc0] sm:$0xff]  ;;  %v2319_v11 = vadd.f32 %v10322_v45, %v10321_v48  ;;  %v3757_v62 = vpop.permute.xlu2 %3756  ;;  %v7280_v27 = vld [vmem:[%s10188_s4 + $0x150] sm:$0xff] }
 0x3dc   : > { %10319 = vst [vmem:[#allocation31_spill] sm:$0xff] %v9663_v12  ;;  %4165 = vmatmul.bf16.gmra.mxu1 %v9663_v12  ;;  %5071 = vmatpush.bf16.msrb.mxu3 %v7280_v27  ;;  %v10326_v27 = vld [vmem:[#allocation18_spill] sm:$0xff] }
 0x3dd   : > { %v9666_v41 = vpack.c.b16 %v3936_v29, %v3935_v63  ;;  %v3437_v5 = vmax.f32 %v3406_v60, 0.0  ;;  %v4426_v16 = vpop.f32.mrf.mxu3  ;;  %4605 = vmatpush.bf16.msrb.mxu1 %v7262_v26  ;;  %v4779_v60 = vshrl.u32 %v9589_v52, 16  ;;  %v10324_v26 = vrot.slane %v9589_v52, 1 }
 0x3de   : > { %v9673_v24 = vadd.f32 %v4426_v16, %v4256_v56  ;;  %v3291_v6 = vpop.f32.mrf.mxu0 }
 0x3df   : > { %10320 = vst [vmem:[#allocation32_spill] sm:$0xff] %v9666_v41  ;;  %v3817_v39 = vmul.f32 %v3757_v62, %v3437_v5  ;;  %v3337_v63 = vadd.f32 %v3291_v6, %v9242_v15  ;;  %v4783_v12 = vshll.u32 %v9666_v41, 16  ;;  %v10213_v40 = vrot.slane %v9666_v41, 1  ;;  %v7279_v5 = vld [vmem:[%s10188_s4 + $0x148] sm:$0xff] }
 0x3e0   : > { %10323 = vst [vmem:[#allocation23_spill] sm:$0xff] %v9673_v24  ;;  %v4781_v48 = vor.u32 %v4779_v60, %v9604_v47  ;;  %5072 = vmatpush.bf16.msrb.mxu3 %v7279_v5 }
 0x3e1   : > { %v3848_v45 = vpack.c.bf16 %v3817_v39, %v3817_v39  ;;  %v3372_v56 = vmul.f32 %v9642_v28, %v3337_v63  ;;  %v4128_v16 = vpop.f32.mrf.mxu1  ;;  %5257 = vmatmul.bf16.gmra.mxu0 %v9442_v49  ;;  %v4785_v24 = vrot.slane %v4783_v12, 1  ;;  %v9694_v6 = vsel %vm1085_vm1, %v10324_v26, %v10213_v40 }
 0x3e2   : > { %v4258_v62 = vadd.f32 %v9606_v19, %v4128_v16  ;;  %v4262_v15 = vpop.f32.mrf.mxu2  ;;  %10325 = vst [vmem:[#allocation13_spill] sm:$0xff] %v9694_v6  ;;  %v2639_v39 = vadd.f32 %v10326_v27, %v2319_v11  ;;  %v4036_v40 = vshrl.u32 %v9628_v37, 16  ;;  %v7278_v11 = vld [vmem:[%s10188_s4 + $0x140] sm:$0xff] }
 0x3e3   : > { %v3937_v49 = vunpack.c.l.b16 %v3848_v45  ;;  %v3407_v47 = vadd.f32 %v9659_v44, %v3372_v56  ;;  %v9699_v12 = vsel %vm615_vm0, %v4781_v48, %v4785_v24 }
 0x3e4   : > { %v3097_v19 = vadd.f32 %v9256_v50, %v2639_v39  ;;  %v4038_v48 = vor.u32 %v4036_v40, %v4034_v43  ;;  %5073 = vmatpush.bf16.msrb.mxu3 %v7278_v11  ;;  %v10328_v39 = vrot.slane %v9628_v37, 1 }
 0x3e5   : > { %v9702_v63 = vpack.c.b16 %v3937_v49, %v3936_v29  ;;  %v3438_v60 = vmax.f32 %v3407_v47, 0.0  ;;  %v4428_v16 = vpop.f32.mrf.mxu3 }
 0x3e6   : > { %v9704_v52 = vadd.f32 %v4428_v16, %v4258_v62  ;;  %v3293_v26 = vpop.f32.mrf.mxu0 }
 0x3e7   : > { %v3818_v45 = vmul.f32 %v3762_v35, %v3438_v60  ;;  %v3338_v56 = vadd.f32 %v3293_v26, %v3097_v19  ;;  %4304 = vmatmul.bf16.gmra.mxu2 %v9702_v63  ;;  %v9712_v50 = vrot.slane %v9702_v63, 1  ;;  %v4040_v29 = vshll.u32 %v9702_v63, 16 }
 0x3e8   : > { %10327 = vst [vmem:[#allocation18_spill] sm:$0xff] %v9704_v52 }
 0x3e9   : > { %v3849_v62 = vpack.c.bf16 %v3818_v45, %v3818_v45  ;;  %v3373_v5 = vmul.f32 %v9642_v28, %v3338_v56  ;;  %v4131_v27 = vpop.f32.mrf.mxu1  ;;  %v9720_v47 = vsel %vm1085_vm1, %v10328_v39, %v9712_v50  ;;  %v4042_v35 = vrot.slane %v4040_v29, 1  ;;  %v3767_v56 = vpop.permute.xlu1 %3766 }
 0x3ea   : > { %10329 = vst [vmem:[#allocation33_spill] sm:$0xff] %v9720_v47  ;;  %v4261_v19 = vadd.f32 %v4260_v8, %v4131_v27  ;;  %v4265_v60 = vpop.f32.mrf.mxu2  ;;  %v10332_v8 = vld [vmem:[#allocation26_spill] sm:$0xff]  ;;  %v10333_v27 = vld [vmem:[#allocation21_spill] sm:$0xff] }
 0x3eb   : > { %4470 = vmatmul.bf16.gmra.mxu3 %v9720_v47  ;;  %v3938_v16 = vunpack.c.l.b16 %v3849_v62  ;;  %v3408_v26 = vadd.f32 %v9659_v44, %v3373_v5  ;;  %v9725_v40 = vsel %vm615_vm0, %v4038_v48, %v4042_v35  ;;  %v2321_v52 = vadd.f32 %v10333_v27, %v10332_v8 }
 0x3ec   : > { %10330 = vst [vmem:[#allocation34_spill] sm:$0xff] %v9725_v40  ;;  %4170 = vmatmul.bf16.gmra.mxu1 %v9725_v40  ;;  %v4787_v48 = vshrl.u32 %v9666_v41, 16 }
 0x3ed   : > { %v9728_v43 = vpack.c.b16 %v3938_v16, %v3937_v49  ;;  %v3439_v11 = vmax.f32 %v3408_v26, 0.0  ;;  %v4431_v45 = vpop.f32.mrf.mxu3  ;;  %v3951_v5 = vpack.c.b16 %v3938_v16, %v3938_v16 }
 0x3ee   : > { %v9730_v39 = vadd.f32 %v4431_v45, %v4261_v19  ;;  %v3296_v29 = vpop.f32.mrf.mxu0 }
 0x3ef   : > { %v3819_v47 = vmul.f32 %v3767_v56, %v3439_v11  ;;  %v3339_v62 = vadd.f32 %v3296_v29, %v9281_v42  ;;  %v4791_v6 = vshll.u32 %v9728_v43, 16  ;;  %v10216_v49 = vrot.slane %v9728_v43, 1  ;;  %v10336_v56 = vld [vmem:[#allocation22_spill] sm:$0xff] }
 0x3f0   : > { %10331 = vst [vmem:[#allocation35_spill] sm:$0xff] %v9730_v39  ;;  %v4789_v39 = vor.u32 %v4787_v48, %v4785_v24  ;;  %v10334_v42 = vrot.slane %v9666_v41, 1  ;;  %v2641_v29 = vadd.f32 %v10336_v56, %v2321_v52  ;;  %v7301_v24 = vld [vmem:[%s10188_s4 + $0x1f8] sm:$0xff]  ;;  %v4350_v52 = vrot.slane %v3951_v5, 1 }
 0x3f1   : > { %v3850_v40 = vpack.c.bf16 %v3819_v47, %v3819_v47  ;;  %v3374_v26 = vmul.f32 %v9642_v28, %v3339_v62  ;;  %v4133_v33 = vpop.f32.mrf.mxu1  ;;  %5262 = vmatmul.bf16.gmra.mxu0 %v9484_v25  ;;  %v4793_v8 = vrot.slane %v4791_v6, 1  ;;  %v4048_v62 = vshll.u32 %v3951_v5, 16  ;;  %v7309_v25 = vld [vmem:[%s10188_s4 + $0x238] sm:$0xff]  ;;  %5428 = vmatpush.bf16.msra.mxu1 %v7301_v24 }
 0x3f2   : > { %v4263_v19 = vadd.f32 %v4262_v15, %v4133_v33  ;;  %v4267_v45 = vpop.f32.mrf.mxu2  ;;  %v9745_v11 = vsel %vm1085_vm1, %v10334_v42, %v10216_v49  ;;  %v3099_v15 = vadd.f32 %v9295_v58, %v2641_v29  ;;  %5598 = vmatpush.bf16.msra.mxu2 %v7309_v25  ;;  %v4351_v5 = vsel %vm1085_vm1, %v9712_v50, %v4350_v52 }
 0x3f3   : > { %10335 = vst [vmem:[#allocation26_spill] sm:$0xff] %v9745_v11  ;;  %v4524_v27 = vunpack.c.l.b16 %v3850_v40  ;;  %v3409_v47 = vadd.f32 %v9659_v44, %v3374_v26  ;;  %v9756_v33 = vsel %vm615_vm0, %v4789_v39, %v4793_v8  ;;  %v3772_v26 = vpop.permute.xlu2 %3771  ;;  %v4044_v39 = vshrl.u32 %v9702_v63, 16 }
 0x3f4   : > { %10337 = vst [vmem:[#allocation21_spill] sm:$0xff] %v9756_v33  ;;  %v4050_v11 = vrot.slane %v4048_v62, 1 }
 0x3f5   : > { %v3440_v6 = vmax.f32 %v3409_v47, 0.0  ;;  %v4433_v48 = vpop.f32.mrf.mxu3  ;;  %v9759_v40 = vpack.c.b16 %v4524_v27, %v3938_v16  ;;  %v9768_v16 = vor.u32 %v4044_v39, %v4042_v35 }
 0x3f6   : > { %v9761_v42 = vadd.f32 %v4433_v48, %v4263_v19  ;;  %v3298_v56 = vpop.f32.mrf.mxu0  ;;  %v3777_v48 = vpop.permute.xlu0 %3776 }
 0x3f7   : > { %v3820_v49 = vmul.f32 %v3772_v26, %v3440_v6  ;;  %v3340_v41 = vadd.f32 %v3298_v56, %v3099_v15  ;;  %4879 = vmatmul.bf16.vlgmr.msrb.gmra.mxu2 %v9270_v9  ;;  %v4051_v9 = vsel %vm615_vm0, %v9768_v16, %v4050_v11  ;;  %v10338_v15 = vld [vmem:[#allocation24_spill] sm:$0xff]  ;;  %v4795_v11 = vshrl.u32 %v9728_v43, 16 }
 0x3f8   : > { %v2323_v6 = vadd.f32 %v10338_v15, %v9119_v18 }
 0x3f9   : > { %v3851_v33 = vpack.c.bf16 %v3820_v49, %v3820_v49  ;;  %v3375_v58 = vmul.f32 %v9642_v28, %v3340_v41  ;;  %v4136_v29 = vpop.f32.mrf.mxu1 }
 0x3fa   : > { %v4266_v47 = vadd.f32 %v4265_v60, %v4136_v29  ;;  %v4270_v19 = vpop.f32.mrf.mxu2  ;;  %v4797_v29 = vor.u32 %v4795_v11, %v4793_v8 }
 0x3fb   : > { %4475 = vmatmul.bf16.gmra.mxu3 %v4351_v5  ;;  %v4525_v25 = vunpack.c.l.b16 %v3851_v33  ;;  %v3410_v24 = vadd.f32 %v9659_v44, %v3375_v58  ;;  %v7308_v33 = vld [vmem:[%s10188_s4 + $0x230] sm:$0xff] }
 0x3fc   : > { %4175 = vmatmul.bf16.gmra.mxu1 %v4051_v9  ;;  %5599 = vmatpush.bf16.msra.mxu2 %v7308_v33  ;;  %v10339_v9 = vrot.slane %v9728_v43, 1 }
 0x3fd   : > { %v9773_v62 = vpack.c.b16 %v4525_v25, %v4524_v27  ;;  %v3441_v49 = vmax.f32 %v3410_v24, 0.0  ;;  %v4436_v41 = vpop.f32.mrf.mxu3 }
 0x3fe   : > { %v9777_v35 = vadd.f32 %v4436_v41, %v4266_v47  ;;  %v3301_v60 = vpop.f32.mrf.mxu0  ;;  %v10340_v41 = vld [vmem:[#allocation25_spill] sm:$0xff] }
 0x3ff   : > { %v3821_v52 = vmul.f32 %v3777_v48, %v3441_v49  ;;  %v3341_v26 = vadd.f32 %v3301_v60, %v9327_v10  ;;  %v4799_v27 = vshll.u32 %v9773_v62, 16  ;;  %v5002_v56 = vrot.slane %v9773_v62, 1  ;;  %v7300_v10 = vld [vmem:[%s10188_s4 + $0x1f0] sm:$0xff] }
 0x400   : > { %v2643_v15 = vadd.f32 %v10340_v41, %v2323_v6  ;;  %5429 = vmatpush.bf16.msra.mxu1 %v7300_v10  ;;  %v3782_v41 = vpop.permute.xlu1 %3781 }
 0x401   : > { %v3852_v39 = vpack.c.bf16 %v3821_v52, %v3821_v52  ;;  %v3376_v18 = vmul.f32 %v9642_v28, %v3341_v26  ;;  %v4138_v58 = vpop.f32.mrf.mxu1  ;;  %5267 = vmatmul.bf16.gmra.mxu0 %v9525_v1  ;;  %v4801_v5 = vrot.slane %v4799_v27, 1  ;;  %v9794_v49 = vsel %vm1085_vm1, %v10339_v9, %v5002_v56 }
 0x402   : > { %v4268_v47 = vadd.f32 %v4267_v45, %v4138_v58  ;;  %v4272_v24 = vpop.f32.mrf.mxu2  ;;  %v3101_v45 = vadd.f32 %v9351_v51, %v2643_v15  ;;  %v4803_v27 = vshrl.u32 %v9773_v62, 16 }
 0x403   : > { %v4709_v48 = vunpack.c.l.b16 %v3852_v39  ;;  %v3411_v60 = vadd.f32 %v9659_v44, %v3376_v18  ;;  %v9799_v1 = vsel %vm615_vm0, %v4797_v29, %v4801_v5 }
 0x404   : > { %v4805_v9 = vor.u32 %v4803_v27, %v4801_v5  ;;  %v3787_v5 = vpop.permute.xlu2 %3786 }
 0x405   : > { %v4438_v8 = vpop.f32.mrf.mxu3  ;;  %v9802_v33 = vpack.c.b16 %v4709_v48, %v4525_v25  ;;  %v4710_v52 = vpack.c.b16 %v4709_v48, %v4709_v48  ;;  %v3442_v58 = vmax.f32 %v3411_v60, 0.0 }
 0x406   : > { %v9804_v26 = vadd.f32 %v4438_v8, %v4268_v47  ;;  %v3303_v11 = vpop.f32.mrf.mxu0 }
 0x407   : > { %v3342_v6 = vadd.f32 %v3303_v11, %v3101_v45  ;;  %4884 = vmatmul.bf16.gmra.mxu2 %v9318_v3  ;;  %v4807_v39 = vshll.u32 %v4710_v52, 16  ;;  %v5004_v18 = vrot.slane %v4710_v52, 1  ;;  %v3822_v48 = vmul.f32 %v3782_v41, %v3442_v58 }
 0x409   : > { %v3377_v29 = vmul.f32 %v9642_v28, %v3342_v6  ;;  %v4141_v10 = vpop.f32.mrf.mxu1  ;;  %v4809_v51 = vrot.slane %v4807_v39, 1  ;;  %v9810_v25 = vsel %vm1085_vm1, %v5002_v56, %v5004_v18  ;;  %v3853_v11 = vpack.c.bf16 %v3822_v48, %v3822_v48 }
 0x40a   : > { %v4271_v47 = vadd.f32 %v4270_v19, %v4141_v10  ;;  %v4275_v15 = vpop.f32.mrf.mxu2 }
 0x40b   : > { %5074 = vmatmul.bf16.vlgmr.msrb.gmra.mxu3 %v9266_v31  ;;  %v3412_v60 = vadd.f32 %v9659_v44, %v3377_v29  ;;  %v9815_v3 = vsel %vm615_vm0, %v4805_v9, %v4809_v51  ;;  %v5178_v18 = vunpack.c.l.b16 %v3853_v11 }
 0x40c   : > { %4606 = vmatmul.bf16.vlgmr.msrb.gmra.mxu1 %v9225_v54 }
 0x40d   : > { %v3443_v45 = vmax.f32 %v3412_v60, 0.0  ;;  %v4441_v8 = vpop.f32.mrf.mxu3 }
 0x40e   : > { %v9818_v52 = vadd.f32 %v4441_v8, %v4271_v47  ;;  %v3306_v56 = vpop.f32.mrf.mxu0 }
 0x40f   : > { %v3823_v27 = vmul.f32 %v3787_v5, %v3443_v45  ;;  %v9821_v19 = vadd.f32 %v3306_v56, %v9394_v36  ;;  %v7307_v36 = vld [vmem:[%s10188_s4 + $0x228] sm:$0xff] }
 0x410   : > { %5600 = vmatpush.bf16.msra.mxu2 %v7307_v36 }
 0x411   : > { %v3854_v31 = vpack.c.bf16 %v3823_v27, %v3823_v27  ;;  %v4143_v58 = vpop.f32.mrf.mxu1  ;;  %5272 = vmatmul.bf16.gmra.mxu0 %v9562_v57 }
 0x412   : > { %v4273_v6 = vadd.f32 %v4272_v24, %v4143_v58  ;;  %v4277_v39 = vpop.f32.mrf.mxu2  ;;  %v7299_v24 = vld [vmem:[%s10188_s4 + $0x1e8] sm:$0xff] }
 0x413   : > { %v5179_v29 = vunpack.c.l.b16 %v3854_v31  ;;  %5430 = vmatpush.bf16.msra.mxu1 %v7299_v24 }
 0x415   : > { %v4443_v54 = vpop.f32.mrf.mxu3  ;;  %v9824_v10 = vpack.c.b16 %v5179_v29, %v5178_v18  ;;  %v7298_v18 = vld [vmem:[%s10188_s4 + $0x1e0] sm:$0xff] }
 0x416   : > { %v9826_v9 = vadd.f32 %v4443_v54, %v4273_v6  ;;  %v3308_v51 = vpop.f32.mrf.mxu0 }
 0x417   : > { %4889 = vmatmul.bf16.gmra.mxu2 %v9385_v17  ;;  %5431 = vmatpush.bf16.msra.mxu1 %v7298_v18  ;;  %v7296_v18 = vld [vmem:[%s10188_s4 + $0x1d0] sm:$0xff] }
 0x419   : > { %v4146_v41 = vpop.f32.mrf.mxu1 }
 0x41a   : > { %v4276_v47 = vadd.f32 %v4275_v15, %v4146_v41  ;;  %v4280_v57 = vpop.f32.mrf.mxu2 }
 0x41b   : > { %5079 = vmatmul.bf16.gmra.mxu3 %v9313_v2 }
 0x41c   : > { %4611 = vmatmul.bf16.gmra.mxu1 %v9254_v34 }
 0x41d   : > { %v4446_v48 = vpop.f32.mrf.mxu3 }
 0x41e   : > { %v9837_v60 = vadd.f32 %v4446_v48, %v4276_v47  ;;  %v3310_v17 = vpop.f32.mrf.mxu0 }
 0x421   : > { %v4148_v45 = vpop.f32.mrf.mxu1  ;;  %5277 = vmatmul.bf16.gmra.mxu0 %v9628_v37  ;;  %v7306_v37 = vld [vmem:[%s10188_s4 + $0x220] sm:$0xff] }
 0x422   : > { %v4278_v8 = vadd.f32 %v4277_v39, %v4148_v45  ;;  %v4282_v5 = vpop.f32.mrf.mxu2  ;;  %5601 = vmatpush.bf16.msra.mxu2 %v7306_v37  ;;  %v7297_v45 = vld [vmem:[%s10188_s4 + $0x1d8] sm:$0xff] }
 0x423   : > { %5432 = vmatpush.bf16.msra.mxu1 %v7297_v45 }
 0x425   : > { %v4448_v15 = vpop.f32.mrf.mxu3 }
 0x426   : > { %v9840_v56 = vadd.f32 %v4448_v15, %v4278_v8  ;;  %v3311_v2 = vpop.f32.mrf.mxu0 }
 0x427   : > { %4894 = vmatmul.bf16.gmra.mxu2 %v9439_v7  ;;  %5433 = vmatpush.bf16.msra.mxu1 %v7296_v18 }
 0x429   : > { %v4151_v34 = vpop.f32.mrf.mxu1 }
 0x42a   : > { %v4281_v11 = vadd.f32 %v4280_v57, %v4151_v34  ;;  %v4285_v27 = vpop.f32.mrf.mxu2 }
 0x42b   : > { %5084 = vmatmul.bf16.gmra.mxu3 %v9380_v46 }
 0x42c   : > { %4616 = vmatmul.bf16.gmra.mxu1 %v9293_v30 }
 0x42d   : > { %v4451_v31 = vpop.f32.mrf.mxu3 }
 0x42e   : > { %v9845_v58 = vadd.f32 %v4451_v31, %v4281_v11 }
 0x431   : > { %v4153_v6 = vpop.f32.mrf.mxu1  ;;  %5282 = vmatmul.bf16.gmra.mxu0 %v9702_v63 }
 0x432   : > { %v4283_v39 = vadd.f32 %v4282_v5, %v4153_v6  ;;  %v4287_v7 = vpop.f32.mrf.mxu2  ;;  %v7304_v6 = vld [vmem:[%s10188_s4 + $0x210] sm:$0xff] }
 0x435   : > { %v4453_v46 = vpop.f32.mrf.mxu3 }
 0x436   : > { %v9854_v30 = vadd.f32 %v4453_v46, %v4283_v39 }
 0x437   : > { %4899 = vmatmul.bf16.gmra.mxu2 %v9481_v53  ;;  %v7305_v53 = vld [vmem:[%s10188_s4 + $0x218] sm:$0xff] }
 0x438   : > { %5602 = vmatpush.bf16.msra.mxu2 %v7305_v53 }
 0x439   : > { %v4156_v29 = vpop.f32.mrf.mxu1 }
 0x43a   : > { %v4286_v54 = vadd.f32 %v4285_v27, %v4156_v29  ;;  %v4290_v51 = vpop.f32.mrf.mxu2 }
 0x43b   : > { %5089 = vmatmul.bf16.gmra.mxu3 %v9434_v4 }
 0x43c   : > { %4621 = vmatmul.bf16.gmra.mxu1 %v9349_v32  ;;  %5603 = vmatpush.bf16.msra.mxu2 %v7304_v6 }
 0x43d   : > { %v4456_v63 = vpop.f32.mrf.mxu3 }
 0x43e   : > { %v9859_v36 = vadd.f32 %v4456_v63, %v4286_v54 }
 0x441   : > { %v4158_v41 = vpop.f32.mrf.mxu1  ;;  %5287 = vmatmul.bf16.gmra.mxu0 %v9759_v40 }
 0x442   : > { %v4288_v47 = vadd.f32 %v4287_v7, %v4158_v41  ;;  %v4292_v57 = vpop.f32.mrf.mxu2 }
 0x445   : > { %v4458_v24 = vpop.f32.mrf.mxu3 }
 0x446   : > { %v9862_v48 = vadd.f32 %v4458_v24, %v4288_v47 }
 0x447   : > { %4904 = vmatmul.bf16.gmra.mxu2 %v9522_v23 }
 0x449   : > { %v4161_v4 = vpop.f32.mrf.mxu1 }
 0x44a   : > { %v4291_v32 = vadd.f32 %v4290_v51, %v4161_v4  ;;  %v4295_v17 = vpop.f32.mrf.mxu2 }
 0x44b   : > { %5094 = vmatmul.bf16.gmra.mxu3 %v9476_v0 }
 0x44c   : > { %4626 = vmatmul.bf16.gmra.mxu1 %v9416_v38 }
 0x44d   : > { %v4461_v8 = vpop.f32.mrf.mxu3 }
 0x44e   : > { %v9873_v5 = vadd.f32 %v4461_v8, %v4291_v32 }
 0x451   : > { %v4163_v23 = vpop.f32.mrf.mxu1  ;;  %5292 = vmatmul.bf16.gmra.mxu0 %v9802_v33 }
 0x452   : > { %v4293_v15 = vadd.f32 %v4292_v57, %v4163_v23  ;;  %v4297_v2 = vpop.f32.mrf.mxu2 }
 0x455   : > { %v4463_v34 = vpop.f32.mrf.mxu3 }
 0x456   : > { %v9876_v11 = vadd.f32 %v4463_v34, %v4293_v15  ;;  %v10341_v34 = vld [vmem:[#allocation21_spill] sm:$0xff] }
 0x457   : > { %4909 = vmatmul.bf16.gmra.mxu2 %v9559_v22 }
 0x459   : > { %v4166_v0 = vpop.f32.mrf.mxu1 }
 0x45a   : > { %v4296_v38 = vadd.f32 %v4295_v17, %v4166_v0  ;;  %v4300_v27 = vpop.f32.mrf.mxu2 }
 0x45b   : > { %5099 = vmatmul.bf16.gmra.mxu3 %v9517_v55 }
 0x45c   : > { %4631 = vmatmul.bf16.gmra.mxu1 %v9464_v61 }
 0x45e   : > { %v4466_v31 = vpop.f32.mrf.mxu3 }
 0x45f   : > { %v9881_v37 = vadd.f32 %v4466_v31, %v4296_v38  ;;  %v10344_v31 = vld [vmem:[#allocation12_spill] sm:$0xff] }
 0x461   : > { %v4168_v39 = vpop.f32.mrf.mxu1  ;;  %5297 = vmatmul.bf16.gmra.mxu0 %v9824_v10 }
 0x462   : > { %v4298_v7 = vadd.f32 %v4297_v2, %v4168_v39  ;;  %v4302_v22 = vpop.f32.mrf.mxu2  ;;  %v7302_v39 = vld [vmem:[%s10188_s4 + $0x200] sm:$0xff] }
 0x466   : > { %v4468_v55 = vpop.f32.mrf.mxu3 }
 0x467   : > { %v9890_v61 = vadd.f32 %v4468_v55, %v4298_v7  ;;  %4914 = vmatmul.bf16.gmra.mxu2 %v9625_v14  ;;  %v7303_v14 = vld [vmem:[%s10188_s4 + $0x208] sm:$0xff] }
 0x468   : > { %5604 = vmatpush.bf16.msra.mxu2 %v7303_v14 }
 0x469   : > { %v4171_v46 = vpop.f32.mrf.mxu1 }
 0x46a   : > { %v4301_v29 = vadd.f32 %v4300_v27, %v4171_v46  ;;  %v4305_v54 = vpop.f32.mrf.mxu2  ;;  %v10343_v27 = vld [vmem:[#allocation13_spill] sm:$0xff] }
 0x46b   : > { %5104 = vmatmul.bf16.gmra.mxu3 %v9554_v13  ;;  %v7294_v46 = vld [vmem:[%s10188_s4 + $0x1c0] sm:$0xff] }
 0x46c   : > { %4636 = vmatmul.bf16.gmra.mxu1 %v9500_v59  ;;  %v7295_v59 = vld [vmem:[%s10188_s4 + $0x1c8] sm:$0xff]  ;;  %5605 = vmatpush.bf16.msra.mxu2 %v7302_v39 }
 0x46d   : > { %5434 = vmatpush.bf16.msra.mxu1 %v7295_v59 }
 0x46e   : > { %v4471_v51 = vpop.f32.mrf.mxu3 }
 0x46f   : > { %v9895_v63 = vadd.f32 %v4471_v51, %v4301_v29  ;;  %v10346_v51 = vld [vmem:[#allocation23_spill] sm:$0xff] }
 0x471   : > { %v4173_v41 = vpop.f32.mrf.mxu1  ;;  %5435 = vmatpush.bf16.msra.mxu1 %v7294_v46 }
 0x472   : > { %v4303_v47 = vadd.f32 %v4302_v22, %v4173_v41  ;;  %v4307_v57 = vpop.f32.mrf.mxu2  ;;  %v10345_v22 = vld [vmem:[#allocation16_spill] sm:$0xff] }
 0x476   : > { %v4473_v24 = vpop.f32.mrf.mxu3 }
 0x477   : > { %v9897_v53 = vadd.f32 %v4473_v24, %v4303_v47  ;;  %4919 = vmatmul.bf16.gmra.mxu2 %v9699_v12  ;;  %v10348_v24 = vld [vmem:[#allocation32_spill] sm:$0xff] }
 0x479   : > { %v4176_v4 = vpop.f32.mrf.mxu1 }
 0x47a   : > { %v4306_v13 = vadd.f32 %v4305_v54, %v4176_v4  ;;  %v4880_v32 = vpop.f32.mrf.mxu2 }
 0x47b   : > { %5109 = vmatmul.bf16.gmra.mxu3 %v9616_v20  ;;  %v10342_v20 = vld [vmem:[#allocation20_spill] sm:$0xff] }
 0x47c   : > { %4641 = vmatmul.bf16.gmra.mxu1 %v9541_v21 }
 0x47e   : > { %v4476_v17 = vpop.f32.mrf.mxu3 }
 0x47f   : > { %v9908_v45 = vadd.f32 %v4476_v17, %v4306_v13  ;;  %v10349_v13 = vld [vmem:[#allocation18_spill] sm:$0xff] }
 0x481   : > { %v4178_v12 = vpop.f32.mrf.mxu1 }
 0x482   : > { %v4308_v8 = vadd.f32 %v4307_v57, %v4178_v12  ;;  %v4882_v23 = vpop.f32.mrf.mxu2  ;;  %v10347_v57 = vld [vmem:[#allocation26_spill] sm:$0xff] }
 0x486   : > { %v4478_v15 = vpop.f32.mrf.mxu3 }
 0x487   : > { %v9910_v2 = vadd.f32 %v4478_v15, %v4308_v8  ;;  %4924 = vmatmul.bf16.gmra.mxu2 %v10341_v34 }
 0x489   : > { %v4607_v0 = vpop.f32.mrf.mxu1 }
 0x48a   : > { %v4667_v38 = vadd.f32 %v4607_v0, %v10342_v20  ;;  %v4885_v21 = vpop.f32.mrf.mxu2 }
 0x48b   : > { %5114 = vmatmul.bf16.gmra.mxu3 %v10343_v27 }
 0x48c   : > { %4646 = vmatmul.bf16.gmra.mxu1 %v10344_v31  ;;  %v9916_v6 = vadd.f32 %v4880_v32, %v4667_v38 }
 0x491   : > { %v4609_v7 = vpop.f32.mrf.mxu1 }
 0x492   : > { %v4668_v18 = vadd.f32 %v4609_v7, %v10345_v22  ;;  %v4887_v55 = vpop.f32.mrf.mxu2  ;;  %v10352_v22 = vld [vmem:[#allocation29_spill] sm:$0xff] }
 0x494   : > { %v9925_v29 = vadd.f32 %v4882_v23, %v4668_v18 }
 0x497   : > { %4929 = vmatmul.bf16.gmra.mxu2 %v9799_v1  ;;  %v10350_v1 = vld [vmem:[#allocation35_spill] sm:$0xff] }
 0x499   : > { %v4612_v54 = vpop.f32.mrf.mxu1 }
 0x49a   : > { %v4669_v41 = vadd.f32 %v4612_v54, %v10346_v51  ;;  %v4890_v47 = vpop.f32.mrf.mxu2 }
 0x49b   : > { %5119 = vmatmul.bf16.gmra.mxu3 %v10347_v57 }
 0x49c   : > { %4651 = vmatmul.bf16.gmra.mxu1 %v10348_v24  ;;  %v9931_v14 = vadd.f32 %v4885_v21, %v4669_v41  ;;  %v10351_v21 = vld [vmem:[#allocation27_spill] sm:$0xff] }
 0x4a1   : > { %v4614_v4 = vpop.f32.mrf.mxu1 }
 0x4a2   : > { %v4670_v32 = vadd.f32 %v4614_v4, %v10349_v13  ;;  %v4892_v59 = vpop.f32.mrf.mxu2  ;;  %v10355_v4 = vld [vmem:[#allocation30_spill] sm:$0xff] }
 0x4a4   : > { %v9934_v17 = vadd.f32 %v4887_v55, %v4670_v32 }
 0x4a7   : > { %4934 = vmatmul.bf16.gmra.mxu2 %v9815_v3 }
 0x4a9   : > { %v4617_v12 = vpop.f32.mrf.mxu1 }
 0x4aa   : > { %v4671_v8 = vadd.f32 %v4617_v12, %v10350_v1  ;;  %v4895_v23 = vpop.f32.mrf.mxu2 }
 0x4ab   : > { %5124 = vmatmul.bf16.gmra.mxu3 %v9794_v49 }
 0x4ac   : > { %4656 = vmatmul.bf16.gmra.mxu1 %v9728_v43  ;;  %v9940_v15 = vadd.f32 %v4890_v47, %v4671_v8 }
 0x4b1   : > { %v4619_v34 = vpop.f32.mrf.mxu1 }
 0x4b2   : > { %v4672_v0 = vadd.f32 %v4619_v34, %v9761_v42  ;;  %v4897_v20 = vpop.f32.mrf.mxu2  ;;  %v10357_v34 = vld [vmem:[#allocation15_spill] sm:$0xff] }
 0x4b4   : > { %v9943_v38 = vadd.f32 %v4892_v59, %v4672_v0 }
 0x4b7   : > { %5606 = vmatmul.bf16.vlgmr.msra.gmra.mxu2 %v10351_v21 }
 0x4b9   : > { %v4622_v27 = vpop.f32.mrf.mxu1 }
 0x4ba   : > { %v4673_v3 = vadd.f32 %v4622_v27, %v9777_v35  ;;  %v4900_v31 = vpop.f32.mrf.mxu2  ;;  %v10353_v35 = vld [vmem:[#allocation28_spill] sm:$0xff] }
 0x4bb   : > { %5129 = vmatmul.bf16.gmra.mxu3 %v9810_v25 }
 0x4bc   : > { %4661 = vmatmul.bf16.gmra.mxu1 %v9773_v62  ;;  %v9949_v49 = vadd.f32 %v4895_v23, %v4673_v3 }
 0x4c1   : > { %v4624_v43 = vpop.f32.mrf.mxu1 }
 0x4c2   : > { %v4674_v39 = vadd.f32 %v4624_v43, %v9804_v26  ;;  %v4902_v7 = vpop.f32.mrf.mxu2  ;;  %v10354_v26 = vld [vmem:[#allocation10_spill] sm:$0xff] }
 0x4c4   : > { %v9952_v42 = vadd.f32 %v4897_v20, %v4674_v39  ;;  %v10359_v39 = vld [vmem:[#allocation11_spill] sm:$0xff] }
 0x4c7   : > { %5611 = vmatmul.bf16.gmra.mxu2 %v10352_v22 }
 0x4c9   : > { %v4627_v18 = vpop.f32.mrf.mxu1 }
 0x4ca   : > { %v4675_v55 = vadd.f32 %v4627_v18, %v9818_v52  ;;  %v4905_v46 = vpop.f32.mrf.mxu2 }
 0x4cc   : > { %5436 = vmatmul.bf16.vlgmr.msra.gmra.mxu1 %v10353_v35  ;;  %v9957_v54 = vadd.f32 %v4900_v31, %v4675_v55 }
 0x4d1   : > { %v4629_v25 = vpop.f32.mrf.mxu1 }
 0x4d2   : > { %v4676_v62 = vadd.f32 %v4629_v25, %v9826_v9  ;;  %v4907_v51 = vpop.f32.mrf.mxu2  ;;  %v10356_v9 = vld [vmem:[#allocation7_spill] sm:$0xff] }
 0x4d4   : > { %v9960_v41 = vadd.f32 %v4902_v7, %v4676_v62  ;;  %v10361_v62 = vld [vmem:[#allocation17_spill] sm:$0xff] }
 0x4d7   : > { %5616 = vmatmul.bf16.gmra.mxu2 %v10354_v26  ;;  %v5075_v26 = vpop.f32.mrf.mxu3 }
 0x4d9   : > { %v4632_v47 = vpop.f32.mrf.mxu1 }
 0x4da   : > { %v4677_v57 = vadd.f32 %v4632_v47, %v9837_v60  ;;  %v4910_v24 = vpop.f32.mrf.mxu2 }
 0x4dc   : > { %5441 = vmatmul.bf16.gmra.mxu1 %v10355_v4  ;;  %v9965_v52 = vadd.f32 %v4905_v46, %v4677_v57  ;;  %v5243_v4 = vpop.f32.mrf.mxu0 }
 0x4e1   : > { %v4634_v13 = vpop.f32.mrf.mxu1 }
 0x4e2   : > { %v4678_v32 = vadd.f32 %v4634_v13, %v9840_v56  ;;  %v4912_v59 = vpop.f32.mrf.mxu2  ;;  %v10358_v56 = vld [vmem:[#allocation14_spill] sm:$0xff] }
 0x4e4   : > { %v9968_v12 = vadd.f32 %v4907_v51, %v4678_v32 }
 0x4e7   : > { %5621 = vmatmul.bf16.gmra.mxu2 %v10356_v9  ;;  %v10363_v9 = vld [vmem:[#allocation8_spill] sm:$0xff] }
 0x4e9   : > { %v4637_v1 = vpop.f32.mrf.mxu1 }
 0x4ea   : > { %v4679_v8 = vadd.f32 %v4637_v1, %v9845_v58  ;;  %v4915_v23 = vpop.f32.mrf.mxu2 }
 0x4ec   : > { %5446 = vmatmul.bf16.gmra.mxu1 %v10357_v34  ;;  %v9973_v60 = vadd.f32 %v4910_v24, %v4679_v8 }
 0x4f1   : > { %v4639_v0 = vpop.f32.mrf.mxu1 }
 0x4f2   : > { %v4680_v20 = vadd.f32 %v4639_v0, %v9854_v30  ;;  %v4917_v21 = vpop.f32.mrf.mxu2  ;;  %v10360_v30 = vld [vmem:[#allocation9_spill] sm:$0xff] }
 0x4f4   : > { %v9976_v27 = vadd.f32 %v4912_v59, %v4680_v20 }
 0x4f7   : > { %5626 = vmatmul.bf16.gmra.mxu2 %v10358_v56 }
 0x4f9   : > { %v4642_v3 = vpop.f32.mrf.mxu1 }
 0x4fa   : > { %v4681_v31 = vadd.f32 %v4642_v3, %v9859_v36  ;;  %v4920_v43 = vpop.f32.mrf.mxu2 }
 0x4fc   : > { %5451 = vmatmul.bf16.gmra.mxu1 %v10359_v39  ;;  %v9981_v58 = vadd.f32 %v4915_v23, %v4681_v31  ;;  %v10365_v31 = vld [vmem:[#allocation31_spill] sm:$0xff] }
 0x501   : > { %v4644_v7 = vpop.f32.mrf.mxu1 }
 0x502   : > { %v4682_v22 = vadd.f32 %v4644_v7, %v9862_v48  ;;  %v4922_v18 = vpop.f32.mrf.mxu2  ;;  %v10362_v48 = vld [vmem:[#allocation19_spill] sm:$0xff] }
 0x504   : > { %v9984_v55 = vadd.f32 %v4917_v21, %v4682_v22  ;;  %v10364_v21 = vld [vmem:[#allocation33_spill] sm:$0xff] }
 0x507   : > { %5631 = vmatmul.bf16.gmra.mxu2 %v10360_v30  ;;  %v5538_v30 = vrot.slane %v9759_v40, 1 }
 0x509   : > { %v4647_v46 = vpop.f32.mrf.mxu1 }
 0x50a   : > { %v4683_v35 = vadd.f32 %v4647_v46, %v9873_v5  ;;  %v4925_v25 = vpop.f32.mrf.mxu2  ;;  %v5077_v5 = vpop.f32.mrf.mxu3 }
 0x50c   : > { %5456 = vmatmul.bf16.gmra.mxu1 %v10361_v62  ;;  %v9989_v36 = vadd.f32 %v4920_v43, %v4683_v35 }
 0x511   : > { %v4649_v51 = vpop.f32.mrf.mxu1 }
 0x512   : > { %v4684_v47 = vadd.f32 %v4649_v51, %v9876_v11  ;;  %v4927_v57 = vpop.f32.mrf.mxu2  ;;  %v5245_v11 = vpop.f32.mrf.mxu0 }
 0x513   : > { %v5080_v20 = vpop.f32.mrf.mxu3 }
 0x514   : > { %v9992_v24 = vadd.f32 %v4922_v18, %v4684_v47 }
 0x517   : > { %5636 = vmatmul.bf16.gmra.mxu2 %v10362_v48 }
 0x519   : > { %v4652_v13 = vpop.f32.mrf.mxu1 }
 0x51a   : > { %v4685_v32 = vadd.f32 %v4652_v13, %v9881_v37  ;;  %v4930_v59 = vpop.f32.mrf.mxu2  ;;  %v10007_v39 = vpop.f32.mrf.mxu0 }
 0x51b   : > { %v10009_v7 = vpop.f32.mrf.mxu3 }
 0x51c   : > { %5461 = vmatmul.bf16.gmra.mxu1 %v10363_v9  ;;  %v9997_v1 = vadd.f32 %v4925_v25, %v4685_v32  ;;  %v5348_v9 = vshll.u32 %v9759_v40, 16 }
 0x521   : > { %v4654_v8 = vpop.f32.mrf.mxu1 }
 0x522   : > { %v4686_v23 = vadd.f32 %v4654_v8, %v9890_v61  ;;  %v4932_v34 = vpop.f32.mrf.mxu2  ;;  %v10017_v35 = vpop.f32.mrf.mxu0  ;;  %v5135_v8 = vadd.f32 %v5075_v26, %v9916_v6  ;;  %v5136_v26 = vadd.f32 %v5077_v5, %v9925_v29 }
 0x523   : > { %v10019_v62 = vpop.f32.mrf.mxu3 }
 0x524   : > { %v10000_v0 = vadd.f32 %v4927_v57, %v4686_v23  ;;  %v10366_v57 = vld [vmem:[#allocation34_spill] sm:$0xff] }
 0x527   : > { %5641 = vmatmul.bf16.gmra.mxu2 %v10364_v21 }
 0x529   : > { %v4657_v56 = vpop.f32.mrf.mxu1 }
 0x52a   : > { %v4687_v3 = vadd.f32 %v4657_v56, %v9895_v63  ;;  %v4935_v37 = vpop.f32.mrf.mxu2  ;;  %v5539_v63 = vsel %vm1085_vm1, %v9712_v50, %v5538_v30  ;;  %v10025_v48 = vpop.f32.mrf.mxu0  ;;  %v5540_v50 = vrot.slane %v9802_v33, 1  ;;  %v5350_v56 = vrot.slane %v5348_v9, 1 }
 0x52b   : > { %v10031_v23 = vpop.f32.mrf.mxu3 }
 0x52c   : > { %5466 = vmatmul.bf16.gmra.mxu1 %v10365_v31  ;;  %v10005_v43 = vadd.f32 %v4930_v59, %v4687_v3  ;;  %v5541_v21 = vsel %vm1085_vm1, %v5538_v30, %v5540_v50  ;;  %v5303_v3 = vadd.f32 %v5243_v4, %v5135_v8  ;;  %v5351_v6 = vsel %vm615_vm0, %v9768_v16, %v5350_v56  ;;  %v10049_v4 = vld [vmem:[%s10189_s5] ss:$0 sm:$0xff]  ;;  %v3792_v30 = vpop.permute.xlu0 %3791 }
 0x52d   : > { %v10055_v16 = vld [vmem:[%s10190_s6] ss:$0 sm:$0xff] }
 0x531   : > { %v4659_v61 = vpop.f32.mrf.mxu1 }
 0x532   : > { %v4688_v22 = vadd.f32 %v4659_v61, %v9897_v53  ;;  %v4937_v18 = vpop.f32.mrf.mxu2 }
 0x534   : > { %v10013_v46 = vadd.f32 %v4932_v34, %v4688_v22  ;;  %v3378_v34 = vmul.f32 %v9642_v28, %v9821_v19  ;;  %v10039_v22 = vpop.f32.mrf.mxu0  ;;  %v10044_v28 = vpop.f32.mrf.mxu3 }
 0x537   : > { %5646 = vmatmul.bf16.gmra.mxu2 %v5539_v63 }
 0x539   : > { %v4662_v25 = vpop.f32.mrf.mxu1 }
 0x53a   : > { %v4689_v51 = vadd.f32 %v4662_v25, %v9908_v45  ;;  %v5607_v47 = vpop.f32.mrf.mxu2 }
 0x53c   : > { %5471 = vmatmul.bf16.gmra.mxu1 %v10366_v57  ;;  %v10023_v53 = vadd.f32 %v4935_v37, %v4689_v51  ;;  %v3413_v37 = vadd.f32 %v9659_v44, %v3378_v34  ;;  %v5304_v44 = vadd.f32 %v5245_v11, %v5136_v26  ;;  %v5356_v57 = vshll.u32 %v9802_v33, 16  ;;  %v10060_v11 = vpop.f32.mrf.mxu0 }
 0x541   : > { %v4664_v13 = vpop.f32.mrf.mxu1 }
 0x542   : > { %v4690_v32 = vadd.f32 %v4664_v13, %v9910_v2  ;;  %v5609_v59 = vpop.f32.mrf.mxu2  ;;  %v5137_v13 = vadd.f32 %v5080_v20, %v9931_v14 }
 0x544   : > { %v10033_v45 = vadd.f32 %v4937_v18, %v4690_v32  ;;  %v3444_v18 = vmax.f32 %v3413_v37, 0.0  ;;  %v10066_v37 = vpop.f32.mrf.mxu3  ;;  %v5305_v14 = vadd.f32 %v10007_v39, %v5137_v13 }
 0x546   : > { %v3824_v25 = vmul.f32 %v3792_v30, %v3444_v18 }
 0x547   : > { %5651 = vmatmul.bf16.gmra.mxu2 %v5541_v21 }
 0x548   : > { %v3855_v9 = vpack.c.bf16 %v3824_v25, %v3824_v25 }
 0x549   : > { %v5437_v2 = vpop.f32.mrf.mxu1 }
 0x54a   : > { %v5497_v31 = vadd.f32 %v5437_v2, %v5303_v3  ;;  %v5612_v61 = vpop.f32.mrf.mxu2  ;;  %v5352_v3 = vshrl.u32 %v9759_v40, 16  ;;  %v5358_v2 = vrot.slane %v5356_v57, 1  ;;  %v5138_v40 = vadd.f32 %v10009_v7, %v9934_v17 }
 0x54b   : > { %v5139_v17 = vadd.f32 %v10019_v62, %v9940_v15 }
 0x54c   : > { %5476 = vmatmul.bf16.gmra.mxu1 %v5351_v6  ;;  %v5667_v19 = vadd.f32 %v5607_v47, %v5497_v31  ;;  %v5542_v47 = vrot.slane %v9824_v10, 1  ;;  %v5345_v6 = vunpack.c.l.b16 %v3855_v9  ;;  %v5306_v39 = vadd.f32 %v10017_v35, %v5138_v40 }
 0x54e   : > { %v5695_v51 = vmul.f32 %v10049_v4, %v5667_v19  ;;  %v5543_v21 = vsel %vm1085_vm1, %v5540_v50, %v5542_v47  ;;  %v5346_v25 = vpack.c.b16 %v5345_v6, %v5345_v6 }
 0x550   : > { %v5723_v8 = vadd.f32 %v10055_v16, %v5695_v51  ;;  %v10074_v51 = vpop.f32.mrf.mxu0  ;;  %v5544_v9 = vrot.slane %v5346_v25, 1 }
 0x551   : > { %v5439_v63 = vpop.f32.mrf.mxu1 }
 0x552   : > { %v5498_v29 = vadd.f32 %v5439_v63, %v5304_v44  ;;  %v5614_v5 = vpop.f32.mrf.mxu2  ;;  %v5747_v26 = vmax.f32 %v5723_v8, 0.0  ;;  %v5364_v8 = vshll.u32 %v9824_v10, 16  ;;  %v5545_v35 = vsel %vm1085_vm1, %v5542_v47, %v5544_v9 }
 0x553   : > { %v5140_v47 = vadd.f32 %v10031_v23, %v9943_v38 }
 0x554   : > { %v5668_v32 = vadd.f32 %v5609_v59, %v5498_v29  ;;  %v5354_v59 = vor.u32 %v5352_v3, %v5350_v56  ;;  %v10077_v29 = vpop.f32.mrf.mxu3  ;;  %v5366_v3 = vrot.slane %v5364_v8, 1 }
 0x555   : > { %v5308_v40 = vadd.f32 %v10039_v22, %v5140_v47 }
 0x556   : > { %v5696_v34 = vmul.f32 %v10049_v4, %v5668_v32  ;;  %v5359_v50 = vsel %vm615_vm0, %v5354_v59, %v5358_v2 }
 0x557   : > { %5656 = vmatmul.bf16.gmra.mxu2 %v5543_v21  ;;  %v5360_v21 = vshrl.u32 %v9802_v33, 16 }
 0x558   : > { %v5724_v31 = vadd.f32 %v10055_v16, %v5696_v34 }
 0x559   : > { %v5442_v20 = vpop.f32.mrf.mxu1  ;;  %v5362_v6 = vor.u32 %v5360_v21, %v5358_v2 }
 0x55a   : > { %v5748_v18 = vmax.f32 %v5724_v31, 0.0  ;;  %v5499_v19 = vadd.f32 %v5442_v20, %v5305_v14  ;;  %v5617_v44 = vpop.f32.mrf.mxu2  ;;  %v5307_v14 = vadd.f32 %v10025_v48, %v5139_v17  ;;  %v5263_v20 = vpop.f32.mrf.mxu0 }
 0x55c   : > { %v7321_v30 = vpack.c.bf16 %v5748_v18, %v5747_v26  ;;  %5481 = vmatmul.bf16.gmra.mxu1 %v5359_v50  ;;  %v5669_v63 = vadd.f32 %v5612_v61, %v5499_v19  ;;  %v5367_v18 = vsel %vm615_vm0, %v5362_v6, %v5366_v3  ;;  %v5097_v19 = vpop.f32.mrf.mxu3 }
 0x55e   : > { %7322 = vst [vmem:[%s7596_s18] sm:$0xff] %v7321_v30   ;;  %v5697_v57 = vmul.f32 %v10049_v4, %v5669_v63 }
 0x560   : > { %v5725_v61 = vadd.f32 %v10055_v16, %v5697_v57  ;;  %v5141_v57 = vadd.f32 %v10044_v28, %v9949_v49 }
 0x561   : > { %v5444_v56 = vpop.f32.mrf.mxu1 }
 0x562   : > { %v5500_v13 = vadd.f32 %v5444_v56, %v5306_v39  ;;  %v5619_v32 = vpop.f32.mrf.mxu2  ;;  %v5749_v15 = vmax.f32 %v5725_v61, 0.0  ;;  %v5265_v39 = vpop.f32.mrf.mxu0  ;;  %v5372_v56 = vshll.u32 %v5346_v25, 16  ;;  %v5309_v17 = vadd.f32 %v10060_v11, %v5141_v57 }
 0x564   : > { %v5670_v7 = vadd.f32 %v5614_v5, %v5500_v13  ;;  %v5100_v9 = vpop.f32.mrf.mxu3  ;;  %v5374_v22 = vrot.slane %v5372_v56, 1 }
 0x566   : > { %v5698_v34 = vmul.f32 %v10049_v4, %v5670_v7 }
 0x567   : > { %5661 = vmatmul.bf16.gmra.mxu2 %v5545_v35 }
 0x568   : > { %v5726_v31 = vadd.f32 %v10055_v16, %v5698_v34 }
 0x569   : > { %v5447_v59 = vpop.f32.mrf.mxu1 }
 0x56a   : > { %v5750_v62 = vmax.f32 %v5726_v31, 0.0  ;;  %v5501_v5 = vadd.f32 %v5447_v59, %v5307_v14  ;;  %v5622_v26 = vpop.f32.mrf.mxu2  ;;  %v5268_v31 = vpop.f32.mrf.mxu0 }
 0x56c   : > { %v7326_v33 = vpack.c.bf16 %v5750_v62, %v5749_v15  ;;  %5486 = vmatmul.bf16.gmra.mxu1 %v5367_v18  ;;  %v5671_v50 = vadd.f32 %v5617_v44, %v5501_v5  ;;  %v5368_v44 = vshrl.u32 %v9824_v10, 16  ;;  %v5102_v14 = vpop.f32.mrf.mxu3  ;;  %v5143_v62 = vadd.f32 %v10077_v29, %v9957_v54 }
 0x56e   : > { %7385 = vst [vmem:[%s7596_s18 + $0x8] sm:$0xff] %v7326_v33   ;;  %v5699_v30 = vmul.f32 %v10049_v4, %v5671_v50  ;;  %v5370_v61 = vor.u32 %v5368_v44, %v5366_v3  ;;  %v5311_v47 = vadd.f32 %v5263_v20, %v5143_v62  ;;  %v5145_v20 = vadd.f32 %v5100_v9, %v9965_v52 }
 0x570   : > { %v5727_v38 = vadd.f32 %v10055_v16, %v5699_v30  ;;  %v5375_v28 = vsel %vm615_vm0, %v5370_v61, %v5374_v22 }
 0x571   : > { %v5449_v48 = vpop.f32.mrf.mxu1 }
 0x572   : > { %v5502_v2 = vadd.f32 %v5449_v48, %v5308_v40  ;;  %v5624_v63 = vpop.f32.mrf.mxu2  ;;  %v5751_v25 = vmax.f32 %v5727_v38, 0.0  ;;  %v5270_v18 = vpop.f32.mrf.mxu0 }
 0x574   : > { %v5672_v13 = vadd.f32 %v5619_v32, %v5502_v2  ;;  %v5142_v32 = vadd.f32 %v10066_v37, %v9952_v42  ;;  %v5144_v2 = vadd.f32 %v5097_v19, %v9960_v41  ;;  %v5313_v19 = vadd.f32 %v5268_v31, %v5145_v20 }
 0x576   : > { %v5700_v23 = vmul.f32 %v10049_v4, %v5672_v13  ;;  %v5310_v59 = vadd.f32 %v10074_v51, %v5142_v32  ;;  %v5105_v51 = vpop.f32.mrf.mxu3  ;;  %v5312_v29 = vadd.f32 %v5265_v39, %v5144_v2 }
 0x577   : > { %v5147_v31 = vadd.f32 %v5105_v51, %v9973_v60 }
 0x578   : > { %v5728_v8 = vadd.f32 %v10055_v16, %v5700_v23 }
 0x579   : > { %v5452_v7 = vpop.f32.mrf.mxu1 }
 0x57a   : > { %v5752_v34 = vmax.f32 %v5728_v8, 0.0  ;;  %v5503_v35 = vadd.f32 %v5452_v7, %v5309_v17  ;;  %v5627_v49 = vpop.f32.mrf.mxu2 }
 0x57c   : > { %v7331_v21 = vpack.c.bf16 %v5752_v34, %v5751_v25  ;;  %5491 = vmatmul.bf16.gmra.mxu1 %v5375_v28  ;;  %v5673_v10 = vadd.f32 %v5622_v26, %v5503_v35 }
 0x57e   : > { %7386 = vst [vmem:[%s7596_s18 + $0x10] sm:$0xff] %v7331_v21   ;;  %v5701_v3 = vmul.f32 %v10049_v4, %v5673_v10  ;;  %v5107_v44 = vpop.f32.mrf.mxu3 }
 0x580   : > { %v5729_v42 = vadd.f32 %v10055_v16, %v5701_v3 }
 0x581   : > { %v5454_v11 = vpop.f32.mrf.mxu1 }
 0x582   : > { %v5504_v6 = vadd.f32 %v5454_v11, %v5310_v59  ;;  %v5629_v15 = vpop.f32.mrf.mxu2  ;;  %v5753_v50 = vmax.f32 %v5729_v42, 0.0 }
 0x584   : > { %v5674_v5 = vadd.f32 %v5624_v63, %v5504_v6  ;;  %v5273_v63 = vpop.f32.mrf.mxu0 }
 0x586   : > { %v5702_v37 = vmul.f32 %v10049_v4, %v5674_v5  ;;  %v5110_v52 = vpop.f32.mrf.mxu3  ;;  %v5315_v5 = vadd.f32 %v5273_v63, %v5147_v31 }
 0x588   : > { %v5730_v26 = vadd.f32 %v10055_v16, %v5702_v37 }
 0x589   : > { %v5457_v33 = vpop.f32.mrf.mxu1 }
 0x58a   : > { %v5754_v40 = vmax.f32 %v5730_v26, 0.0  ;;  %v5505_v48 = vadd.f32 %v5457_v33, %v5311_v47  ;;  %v5632_v30 = vpop.f32.mrf.mxu2  ;;  %v5148_v33 = vadd.f32 %v5107_v44, %v9976_v27 }
 0x58c   : > { %v7336_v56 = vpack.c.bf16 %v5754_v40, %v5753_v50  ;;  %v5675_v54 = vadd.f32 %v5627_v49, %v5505_v48  ;;  %v5275_v35 = vpop.f32.mrf.mxu0  ;;  %v5146_v49 = vadd.f32 %v5102_v14, %v9968_v12 }
 0x58d   : > { %v5316_v40 = vadd.f32 %v5275_v35, %v5148_v33 }
 0x58e   : > { %7387 = vst [vmem:[%s7596_s18 + $0x18] sm:$0xff] %v7336_v56   ;;  %v5703_v13 = vmul.f32 %v10049_v4, %v5675_v54  ;;  %v5314_v32 = vadd.f32 %v5270_v18, %v5146_v49  ;;  %v5112_v12 = vpop.f32.mrf.mxu3 }
 0x590   : > { %v5731_v8 = vadd.f32 %v10055_v16, %v5703_v13 }
 0x591   : > { %v5459_v57 = vpop.f32.mrf.mxu1 }
 0x592   : > { %v5506_v38 = vadd.f32 %v5459_v57, %v5312_v29  ;;  %v5634_v23 = vpop.f32.mrf.mxu2  ;;  %v5755_v39 = vmax.f32 %v5731_v8, 0.0  ;;  %v5149_v29 = vadd.f32 %v5110_v52, %v9981_v58 }
 0x594   : > { %v5676_v22 = vadd.f32 %v5629_v15, %v5506_v38  ;;  %v5278_v6 = vpop.f32.mrf.mxu0 }
 0x595   : > { %v5317_v38 = vadd.f32 %v5278_v6, %v5149_v29 }
 0x596   : > { %v5704_v17 = vmul.f32 %v10049_v4, %v5676_v22 }
 0x598   : > { %v5732_v41 = vadd.f32 %v10055_v16, %v5704_v17  ;;  %v5150_v17 = vadd.f32 %v5112_v12, %v9984_v55 }
 0x599   : > { %v5462_v7 = vpop.f32.mrf.mxu1 }
 0x59a   : > { %v5756_v61 = vmax.f32 %v5732_v41, 0.0  ;;  %v5507_v25 = vadd.f32 %v5462_v7, %v5313_v19  ;;  %v5637_v34 = vpop.f32.mrf.mxu2 }
 0x59c   : > { %v7341_v28 = vpack.c.bf16 %v5756_v61, %v5755_v39  ;;  %v5677_v9 = vadd.f32 %v5632_v30, %v5507_v25  ;;  %v5280_v51 = vpop.f32.mrf.mxu0  ;;  %v5115_v30 = vpop.f32.mrf.mxu3 }
 0x59d   : > { %v5318_v39 = vadd.f32 %v5280_v51, %v5150_v17  ;;  %v5151_v49 = vadd.f32 %v5115_v30, %v9989_v36 }
 0x59e   : > { %7388 = vst [vmem:[%s7596_s18 + $0x20] sm:$0xff] %v7341_v28   ;;  %v5705_v10 = vmul.f32 %v10049_v4, %v5677_v9 }
 0x5a0   : > { %v5733_v15 = vadd.f32 %v10055_v16, %v5705_v10 }
 0x5a1   : > { %v5464_v21 = vpop.f32.mrf.mxu1 }
 0x5a2   : > { %v5508_v59 = vadd.f32 %v5464_v21, %v5314_v32  ;;  %v5639_v11 = vpop.f32.mrf.mxu2  ;;  %v5757_v37 = vmax.f32 %v5733_v15, 0.0 }
 0x5a4   : > { %v5678_v3 = vadd.f32 %v5634_v23, %v5508_v59  ;;  %v5283_v23 = vpop.f32.mrf.mxu0  ;;  %v5117_v41 = vpop.f32.mrf.mxu3 }
 0x5a5   : > { %v5319_v10 = vadd.f32 %v5283_v23, %v5151_v49  ;;  %v5152_v6 = vadd.f32 %v5117_v41, %v9992_v24 }
 0x5a6   : > { %v5706_v62 = vmul.f32 %v10049_v4, %v5678_v3 }
 0x5a8   : > { %v5734_v14 = vadd.f32 %v10055_v16, %v5706_v62 }
 0x5a9   : > { %v5467_v42 = vpop.f32.mrf.mxu1 }
 0x5aa   : > { %v5758_v18 = vmax.f32 %v5734_v14, 0.0  ;;  %v5509_v26 = vadd.f32 %v5467_v42, %v5315_v5  ;;  %v5642_v47 = vpop.f32.mrf.mxu2 }
 0x5ac   : > { %v7346_v50 = vpack.c.bf16 %v5758_v18, %v5757_v37  ;;  %v5679_v60 = vadd.f32 %v5637_v34, %v5509_v26  ;;  %v5285_v35 = vpop.f32.mrf.mxu0  ;;  %v5120_v52 = vpop.f32.mrf.mxu3 }
 0x5ad   : > { %v5320_v14 = vadd.f32 %v5285_v35, %v5152_v6  ;;  %v5153_v26 = vadd.f32 %v5120_v52, %v9997_v1 }
 0x5ae   : > { %7389 = vst [vmem:[%s7596_s18 + $0x28] sm:$0xff] %v7346_v50   ;;  %v5707_v2 = vmul.f32 %v10049_v4, %v5679_v60 }
 0x5b0   : > { %v5735_v57 = vadd.f32 %v10055_v16, %v5707_v2 }
 0x5b1   : > { %v5469_v48 = vpop.f32.mrf.mxu1 }
 0x5b2   : > { %v5510_v56 = vadd.f32 %v5469_v48, %v5316_v40  ;;  %v5644_v54 = vpop.f32.mrf.mxu2  ;;  %v5759_v44 = vmax.f32 %v5735_v57, 0.0 }
 0x5b4   : > { %v5680_v63 = vadd.f32 %v5639_v11, %v5510_v56  ;;  %v5288_v62 = vpop.f32.mrf.mxu0  ;;  %v5122_v12 = vpop.f32.mrf.mxu3 }
 0x5b5   : > { %v5321_v51 = vadd.f32 %v5288_v62, %v5153_v26  ;;  %v5154_v29 = vadd.f32 %v5122_v12, %v10000_v0 }
 0x5b6   : > { %v5708_v13 = vmul.f32 %v10049_v4, %v5680_v63 }
 0x5b8   : > { %v5736_v27 = vadd.f32 %v10055_v16, %v5708_v13 }
 0x5b9   : > { %v5472_v20 = vpop.f32.mrf.mxu1 }
 0x5ba   : > { %v5760_v22 = vmax.f32 %v5736_v27, 0.0  ;;  %v5511_v8 = vadd.f32 %v5472_v20, %v5317_v38  ;;  %v5647_v7 = vpop.f32.mrf.mxu2 }
 0x5bc   : > { %v7351_v19 = vpack.c.bf16 %v5760_v22, %v5759_v44  ;;  %v5681_v58 = vadd.f32 %v5642_v47, %v5511_v8  ;;  %v5290_v24 = vpop.f32.mrf.mxu0  ;;  %v5125_v48 = vpop.f32.mrf.mxu3 }
 0x5bd   : > { %v5322_v57 = vadd.f32 %v5290_v24, %v5154_v29  ;;  %v5155_v20 = vadd.f32 %v5125_v48, %v10005_v43 }
 0x5be   : > { %7390 = vst [vmem:[%s7596_s18 + $0x30] sm:$0xff] %v7351_v19   ;;  %v5709_v25 = vmul.f32 %v10049_v4, %v5681_v58 }
 0x5c0   : > { %v5737_v9 = vadd.f32 %v10055_v16, %v5709_v25 }
 0x5c1   : > { %v5474_v61 = vpop.f32.mrf.mxu1 }
 0x5c2   : > { %v5512_v34 = vadd.f32 %v5474_v61, %v5318_v39  ;;  %v5649_v32 = vpop.f32.mrf.mxu2  ;;  %v5761_v11 = vmax.f32 %v5737_v9, 0.0 }
 0x5c4   : > { %v5682_v28 = vadd.f32 %v5644_v54, %v5512_v34  ;;  %v5293_v13 = vpop.f32.mrf.mxu0  ;;  %v5127_v44 = vpop.f32.mrf.mxu3 }
 0x5c5   : > { %v5323_v19 = vadd.f32 %v5293_v13, %v5155_v20  ;;  %v5156_v34 = vadd.f32 %v5127_v44, %v10013_v46 }
 0x5c6   : > { %v5710_v55 = vmul.f32 %v10049_v4, %v5682_v28 }
 0x5c8   : > { %v5738_v21 = vadd.f32 %v10055_v16, %v5710_v55 }
 0x5c9   : > { %v5477_v59 = vpop.f32.mrf.mxu1 }
 0x5ca   : > { %v5762_v31 = vmax.f32 %v5738_v21, 0.0  ;;  %v5513_v3 = vadd.f32 %v5477_v59, %v5319_v10  ;;  %v5652_v5 = vpop.f32.mrf.mxu2 }
 0x5cc   : > { %v7356_v15 = vpack.c.bf16 %v5762_v31, %v5761_v11  ;;  %v5683_v36 = vadd.f32 %v5647_v7, %v5513_v3  ;;  %v5295_v25 = vpop.f32.mrf.mxu0  ;;  %v5130_v43 = vpop.f32.mrf.mxu3 }
 0x5cd   : > { %v5324_v52 = vadd.f32 %v5295_v25, %v5156_v34  ;;  %v5157_v21 = vadd.f32 %v5130_v43, %v10023_v53 }
 0x5ce   : > { %7391 = vst [vmem:[%s7596_s18 + $0x38] sm:$0xff] %v7356_v15   ;;  %v5711_v37 = vmul.f32 %v10049_v4, %v5683_v36 }
 0x5d0   : > { %v5739_v33 = vadd.f32 %v10055_v16, %v5711_v37 }
 0x5d1   : > { %v5479_v42 = vpop.f32.mrf.mxu1 }
 0x5d2   : > { %v5514_v18 = vadd.f32 %v5479_v42, %v5320_v14  ;;  %v5763_v30 = vmax.f32 %v5739_v33, 0.0  ;;  %v5654_v54 = vpop.f32.mrf.mxu2 }
 0x5d4   : > { %v5684_v47 = vadd.f32 %v5649_v32, %v5514_v18  ;;  %v5298_v59 = vpop.f32.mrf.mxu0  ;;  %v5132_v46 = vpop.f32.mrf.mxu3 }
 0x5d5   : > { %v5325_v6 = vadd.f32 %v5298_v59, %v5157_v21 }
 0x5d6   : > { %v5712_v50 = vmul.f32 %v10049_v4, %v5684_v47 }
 0x5d8   : > { %v5740_v60 = vadd.f32 %v10055_v16, %v5712_v50 }
 0x5d9   : > { %v5482_v40 = vpop.f32.mrf.mxu1 }
 0x5da   : > { %v5764_v2 = vmax.f32 %v5740_v60, 0.0  ;;  %v5515_v56 = vadd.f32 %v5482_v40, %v5321_v51  ;;  %v5657_v8 = vpop.f32.mrf.mxu2 }
 0x5dc   : > { %v7361_v63 = vpack.c.bf16 %v5764_v2, %v5763_v30  ;;  %v5685_v1 = vadd.f32 %v5652_v5, %v5515_v56  ;;  %v5158_v5 = vadd.f32 %v5132_v46, %v10033_v45  ;;  %v5300_v37 = vpop.f32.mrf.mxu0 }
 0x5de   : > { %7392 = vst [vmem:[%s7596_s18 + $0x40] sm:$0xff] %v7361_v63   ;;  %v5713_v38 = vmul.f32 %v10049_v4, %v5685_v1  ;;  %v5326_v18 = vadd.f32 %v5300_v37, %v5158_v5 }
 0x5e0   : > { %v5741_v17 = vadd.f32 %v10055_v16, %v5713_v38 }
 0x5e1   : > { %v5484_v27 = vpop.f32.mrf.mxu1 }
 0x5e2   : > { %v5516_v23 = vadd.f32 %v5484_v27, %v5322_v57  ;;  %v5765_v58 = vmax.f32 %v5741_v17, 0.0  ;;  %v5659_v28 = vpop.f32.mrf.mxu2 }
 0x5e4   : > { %v5686_v22 = vadd.f32 %v5654_v54, %v5516_v23 }
 0x5e6   : > { %v5714_v41 = vmul.f32 %v10049_v4, %v5686_v22 }
 0x5e8   : > { %v5742_v0 = vadd.f32 %v10055_v16, %v5714_v41 }
 0x5e9   : > { %v5487_v7 = vpop.f32.mrf.mxu1 }
 0x5ea   : > { %v5766_v39 = vmax.f32 %v5742_v0, 0.0  ;;  %v5517_v61 = vadd.f32 %v5487_v7, %v5323_v19  ;;  %v5662_v15 = vpop.f32.mrf.mxu2 }
 0x5ec   : > { %v7366_v35 = vpack.c.bf16 %v5766_v39, %v5765_v58  ;;  %v5687_v49 = vadd.f32 %v5657_v8, %v5517_v61 }
 0x5ee   : > { %7393 = vst [vmem:[%s7596_s18 + $0x48] sm:$0xff] %v7366_v35   ;;  %v5715_v55 = vmul.f32 %v10049_v4, %v5687_v49 }
 0x5f0   : > { %v5743_v11 = vadd.f32 %v10055_v16, %v5715_v55 }
 0x5f1   : > { %v5489_v9 = vpop.f32.mrf.mxu1 }
 0x5f2   : > { %v5518_v32 = vadd.f32 %v5489_v9, %v5324_v52  ;;  %v5767_v36 = vmax.f32 %v5743_v11, 0.0  ;;  %v5664_v50 = vpop.f32.mrf.mxu2 }
 0x5f4   : > { %v5688_v10 = vadd.f32 %v5659_v28, %v5518_v32 }
 0x5f6   : > { %v5716_v31 = vmul.f32 %v10049_v4, %v5688_v10 }
 0x5f8   : > { %v5744_v3 = vadd.f32 %v10055_v16, %v5716_v31 }
 0x5f9   : > { %v5492_v62 = vpop.f32.mrf.mxu1 }
 0x5fa   : > { %v5768_v12 = vmax.f32 %v5744_v3, 0.0  ;;  %v5519_v14 = vadd.f32 %v5492_v62, %v5325_v6 }
 0x5fc   : > { %v7371_v42 = vpack.c.bf16 %v5768_v12, %v5767_v36  ;;  %v5689_v53 = vadd.f32 %v5662_v15, %v5519_v14 }
 0x5fe   : > { %7394 = vst [vmem:[%s7596_s18 + $0x50] sm:$0xff] %v7371_v42   ;;  %v5717_v47 = vmul.f32 %v10049_v4, %v5689_v53 }
 0x600   : > { %v5745_v60 = vadd.f32 %v10055_v16, %v5717_v47 }
 0x601   : > { %v5494_v26 = vpop.f32.mrf.mxu1 }
 0x602   : > { %v5520_v33 = vadd.f32 %v5494_v26, %v5326_v18  ;;  %v5769_v48 = vmax.f32 %v5745_v60, 0.0 }
 0x604   : > { %v5690_v24 = vadd.f32 %v5664_v50, %v5520_v33 }
 0x606   : > { %v5718_v51 = vmul.f32 %v10049_v4, %v5690_v24 }
 0x608   : > { %v5746_v40 = vadd.f32 %v10055_v16, %v5718_v51 }
 0x60a   : > { %v5770_v45 = vmax.f32 %v5746_v40, 0.0 }
 0x60c   : > { %v7376_v30 = vpack.c.bf16 %v5770_v45, %v5769_v48 }
 0x60e   : > { %7395 = vst [vmem:[%s7596_s18 + $0x58] sm:$0xff] %v7376_v30  }
 0x60f PF: > { %s18_s9 = sadd.s32 1, %s7509_s9   ;;  %s10367_s27 = smov %s7501_s29 }
 0x610   : > { %p15_p13 = scmp.ge.s32.totalorder %s18_s9, 6   ;;  %s10368_s28 = smov %s7505_s30 }
 0x611   : > { %s10369_s29 = smov %s10372_s10  ;;  %s10370_s30 = smov %s10376_s11 }
 0x612   :  { %17 = sbr.rel (!%p15_p13) target bundleno = 3 (0x3), region = 152 }
 0x617   :  { %5847 = vsyncmov [#allocation3] }
 0x61a   :  { %s5848_s18 = vpop.sfrf %5847 }
 0x61b   :  { %p7083_p0 = scmp.ne.s32.totalorder %s5848_s18, 0 }
 0x61d   :  { %5852 = shalt.err (%p7083_p0)  }
 0x61e   :  { %5854 = vsyncmov [#allocation3 + $0x1] }
 0x621   :  { %s5855_s14 = vpop.sfrf %5854 }
 0x622   :  { %p7084_p1 = scmp.ne.s32.totalorder %s5855_s14, 0 }
 0x624   :  { %5859 = shalt.err (%p7084_p1)  }

</bundles_post_ra>
